<compile_context>
chip_gen: v5e
topology: v5e:2x2
jax: 0.10.0
libtpu: 0.0.40
codegen_flags: <defaults>
</compile_context>

<pallas_src>
import functools

import jax
import jax.numpy as jnp
import numpy as np
from jax import lax
from jax.experimental import pallas as pl
from jax.experimental.pallas import tpu as pltpu

WINDOW = 9          # kernel_size[0] * kernel_size[1]
LEAKY_SLOPE = 0.2


def _decoding_kernel(li_ref, lm_ref, si_ref, sm_ref, w_ref,
                     out_ref, om_ref, comb_ref, slab_ref,
                     *, c_low, c_sh, h0, w0, hh, ww, c_out):
    """Fused DecodingLayer forward for one batch element.

    li_ref : (1, c_low*h0, w0)   low-res decoder image (rows = (channel, row) pairs)
    lm_ref : (1, c_low*h0, w0)   low-res mask
    si_ref : (1, c_sh, hh*ww)    skip/shared image, spatial flattened on lanes
    sm_ref : (1, c_sh, hh*ww)    skip/shared mask
    w_ref  : (c_out+1, 18*cin)   combined conv + mask-sum weight matrix (bf16)
    out_ref: (1, c_out, hh*ww)   LeakyReLU(partial-conv) output (lane-dense)
    om_ref : (1, 1, hh*ww)       clamped mask-conv output (single channel)
    comb_ref: VMEM (2*cin, hh*ww) f32   [combined image ; combined mask]
    slab_ref: VMEM (18*cin, hh*ww) bf16 im2col slab
    """
    cin = c_low + c_sh
    hw = hh * ww
    log2_w = ww.bit_length() - 1
    log2_h0 = h0.bit_length() - 1
    f32 = jnp.float32

    # Flattened-lane coordinates (i = y*ww + x).
    lane = lax.broadcasted_iota(jnp.int32, (1, hw), 1)
    xi = lane & (ww - 1)
    yi = lane >> log2_w

    # --- nearest x2 upsample of the low-res inputs, built directly in flattened form.
    # up[c, y*ww + x] = low[c, y//2, x//2];  low arrives as rows r = c*h0 + h.
    w_sel = (lax.broadcasted_iota(jnp.int32, (w0, 1), 0)
             == (xi >> 1)).astype(f32)                             # (w0, hw)
    r_col = lax.broadcasted_iota(jnp.int32, (c_low * h0, 1), 0)
    h_sel = ((r_col & (h0 - 1)) == (yi >> 1)).astype(f32)          # (c_low*h0, hw)
    c_sel = (lax.broadcasted_iota(jnp.int32, (c_low, 1), 0)
             == (lax.broadcasted_iota(jnp.int32, (1, c_low * h0), 1) >> log2_h0)
             ).astype(f32)                                         # (c_low, c_low*h0)

    def upsample2x(x):                       # (c_low*h0, w0) -> (c_low, hw)
        p = jnp.dot(x, w_sel, preferred_element_type=f32)          # width selection (MXU)
        p = p * h_sel                                              # height selection (VPU)
        return jnp.dot(c_sel, p, preferred_element_type=f32)       # fold rows per channel

    # Combined (cat) channels: [upsampled low ; shared], image then mask.
    comb_ref[0:c_low, :] = upsample2x(li_ref[0].astype(f32))
    comb_ref[c_low:cin, :] = si_ref[0].astype(f32)
    comb_ref[cin:cin + c_low, :] = upsample2x(lm_ref[0].astype(f32))
    comb_ref[cin + c_low:2 * cin, :] = sm_ref[0].astype(f32)

    stacked = comb_ref[...]                  # (2*cin, hw): [image ; mask]

    # --- build the im2col slab: for tap t rows [t*2cin, t*2cin+cin) hold the masked
    #     image, rows [t*2cin+cin, (t+1)*2cin) hold the (zero-padded) raw mask.
    for ky in range(3):
        for kx in range(3):
            dy, dx = ky - 1, kx - 1
            shift = dy * ww + dx
            rolled = stacked if shift == 0 else pltpu.roll(stacked, (-shift) % hw, 1)
            img_t = rolled[0:cin, :]
            msk_t = rolled[cin:2 * cin, :]
            conds = []
            if dx == 1:
                conds.append(xi < (ww - 1))
            elif dx == -1:
                conds.append(xi > 0)
            if dy == 1:
                conds.append(yi < (hh - 1))
            elif dy == -1:
                conds.append(yi > 0)
            if conds:
                ok = conds[0]
                for cnd in conds[1:]:
                    ok = jnp.logical_and(ok, cnd)
                msk_t = msk_t * ok.astype(f32)      # zero padding via validity mask
            img_t = img_t * msk_t                   # masked image (mask is exactly {0,1})
            base = (ky * 3 + kx) * 2 * cin
            slab_ref[base:base + cin, :] = img_t.astype(jnp.bfloat16)
            slab_ref[base + cin:base + 2 * cin, :] = msk_t.astype(jnp.bfloat16)

    # --- single MXU matmul: conv output in rows 0..c_out-1, mask-window sum in row c_out.
    acc = jnp.dot(w_ref[...], slab_ref[...], preferred_element_type=f32)
    conv = acc[0:c_out, :]
    msum = acc[c_out:c_out + 1, :]           # exact (mask is {0,1}, f32 accumulation)

    denom = msum + 1e-8
    recip = pl.reciprocal(denom, approx=True)
    recip = recip * (2.0 - denom * recip)    # one Newton step -> ~f32 accuracy
    out_mask = jnp.clip(msum, 0.0, 1.0)
    scale = (WINDOW * recip) * out_mask
    y = conv * scale
    y = jnp.where(y >= 0, y, LEAKY_SLOPE * y)  # LeakyReLU(0.2)

    out_ref[0] = y.astype(out_ref.dtype)
    om_ref[0] = out_mask.astype(om_ref.dtype)


def prepare_weights(w_oihw):
    """OIHW conv weight -> combined (Cout+1, 18*Cin) bf16 matmul matrix (host side).

    Column order matches the kernel's slab: for tap t = ky*3+kx, the first Cin columns
    multiply the masked-image rows and the next Cin columns the raw-mask rows (ones
    there only in the extra mask-sum output row).
    """
    c_out, c_in, kh, kw = w_oihw.shape
    w_taps = jnp.transpose(w_oihw, (0, 2, 3, 1)).reshape(c_out, kh * kw, c_in)
    w_full = jnp.zeros((c_out + 1, kh * kw, 2, c_in), jnp.float32)
    w_full = w_full.at[:c_out, :, 0, :].set(w_taps)
    w_full = w_full.at[c_out, :, 1, :].set(1.0)
    return w_full.reshape(c_out + 1, kh * kw * 2 * c_in).astype(jnp.bfloat16)


@jax.jit
def decoding_layer(input_image, input_mask, shared_image, shared_mask, w_mat):
    """All image/mask args are NCHW (PyTorch convention); w_mat from prepare_weights."""
    n, c_low, h0, w0 = input_image.shape
    _, c_sh, hh, ww = shared_image.shape
    assert hh == 2 * h0 and ww == 2 * w0
    assert (ww & (ww - 1)) == 0 and (h0 & (h0 - 1)) == 0, "pow2 spatial dims assumed"
    cin = c_low + c_sh
    c_out = w_mat.shape[0] - 1
    assert w_mat.shape[1] == 18 * cin
    hw = hh * ww

    # Free (layout-preserving) reshapes only -- no extra HBM passes in the wrapper.
    li = input_image.reshape(n, c_low * h0, w0)
    lm = input_mask.reshape(n, c_low * h0, w0)
    si = shared_image.reshape(n, c_sh, hw)
    sm = shared_mask.reshape(n, c_sh, hw)

    kernel = functools.partial(
        _decoding_kernel, c_low=c_low, c_sh=c_sh, h0=h0, w0=w0, hh=hh, ww=ww,
        c_out=c_out)

    # TODO(synk): for larger H/W/C add a row-tile grid dimension with a 2-row halo
    # (instead of whole-image blocks) so the tiling also fits v7x's 64 MiB VMEM.
    out_flat, om_flat = pl.pallas_call(
        kernel,
        out_shape=(
            jax.ShapeDtypeStruct((n, c_out, hw), input_image.dtype),
            jax.ShapeDtypeStruct((n, 1, hw), input_image.dtype),
        ),
        grid_spec=pltpu.PrefetchScalarGridSpec(
            num_scalar_prefetch=0,
            grid=(n,),   # batch axis, parallel -> uses both TCs on v7x
            in_specs=[
                pl.BlockSpec((1, c_low * h0, w0), lambda i: (i, 0, 0)),
                pl.BlockSpec((1, c_low * h0, w0), lambda i: (i, 0, 0)),
                pl.BlockSpec((1, c_sh, hw), lambda i: (i, 0, 0)),
                pl.BlockSpec((1, c_sh, hw), lambda i: (i, 0, 0)),
                pl.BlockSpec((c_out + 1, 18 * cin), lambda i: (0, 0)),
            ],
            out_specs=[
                pl.BlockSpec((1, c_out, hw), lambda i: (i, 0, 0)),
                pl.BlockSpec((1, 1, hw), lambda i: (i, 0, 0)),
            ],
            scratch_shapes=[
                pltpu.VMEM((2 * cin, hw), jnp.float32),      # combined [image ; mask]
                pltpu.VMEM((18 * cin, hw), jnp.bfloat16),    # im2col slab
            ],
        ),
        compiler_params=pltpu.CompilerParams(
            dimension_semantics=("parallel",)),
    )(li, lm, si, sm, w_mat)

    out = out_flat.reshape(n, c_out, hh, ww)
    out_mask = jnp.broadcast_to(om_flat.reshape(n, 1, hh, ww), (n, c_out, hh, ww))
    return out, out_mask


def _reference(input_image, input_mask, shared_image, shared_mask, w_oihw):
    """Pure-JAX reference mirroring the PyTorch forward."""
    up_img = jnp.repeat(jnp.repeat(input_image, 2, axis=2), 2, axis=3)
    up_msk = jnp.repeat(jnp.repeat(input_mask, 2, axis=2), 2, axis=3)
    ci = jnp.concatenate([up_img, shared_image], axis=1)
    cm = jnp.concatenate([up_msk, shared_mask], axis=1)

    conv = lambda x, w: lax.conv_general_dilated(
        x, w, window_strides=(1, 1), padding=((1, 1), (1, 1)),
        dimension_numbers=("NCHW", "OIHW", "NCHW"),
        precision=lax.Precision.HIGHEST)

    out = conv(ci * cm, w_oihw)
    om_raw = conv(cm, jnp.ones_like(w_oihw))
    ratio = WINDOW / (om_raw + 1e-8)
    om = jnp.clip(om_raw, 0.0, 1.0)
    out = out * ratio * om
    out = jnp.where(out >= 0, out, LEAKY_SLOPE * out)
    return out, om


if __name__ == "__main__":
    key = jax.random.PRNGKey(0)
    k1, k2, k3, k4, kw = jax.random.split(key, 5)

    N = 2
    C_IN_LOW = 4       # channels of the low-res decoder input
    C_SHARED = 4       # channels of the skip/shared features
    IN_FILTERS = C_IN_LOW + C_SHARED   # Partial_Conv input channels
    OUT_FILTERS = 4
    H = W = 16         # low-res spatial; upsampled to 32x32 inside the kernel

    input_image = jax.random.normal(k1, (N, C_IN_LOW, H, W), jnp.float32)
    input_mask = (jax.random.uniform(k2, (N, C_IN_LOW, H, W)) > 0.3).astype(jnp.float32)
    shared_image = jax.random.normal(k3, (N, C_SHARED, 2 * H, 2 * W), jnp.float32)
    shared_mask = (jax.random.uniform(k4, (N, C_SHARED, 2 * H, 2 * W)) > 0.3).astype(jnp.float32)

    # Kaiming-normal (fan_in, a=0) init for input_conv; mask_conv all-ones is folded
    # into the combined weight matrix on the host.
    fan_in = IN_FILTERS * 3 * 3
    w_oihw = jax.random.normal(kw, (OUT_FILTERS, IN_FILTERS, 3, 3), jnp.float32) * jnp.sqrt(2.0 / fan_in)
    w_mat = prepare_weights(w_oihw)

    out, out_mask = decoding_layer(input_image, input_mask, shared_image, shared_mask, w_mat)
    out, out_mask = jax.block_until_ready((out, out_mask))

    ref_out, ref_mask = _reference(input_image, input_mask, shared_image, shared_mask, w_oihw)
    np.testing.assert_allclose(np.asarray(out), np.asarray(ref_out), rtol=5e-3, atol=5e-3)
    np.testing.assert_allclose(np.asarray(out_mask), np.asarray(ref_mask), rtol=5e-3, atol=5e-3)

    print("KERNEL_OK")
</pallas_src>

<mosaic_0001>
module attributes {stable_mosaic.version = 11 : i64} {
  func.func @_decoding_kernel(%arg0: i32, %arg1: memref<1x64x16xf32, #tpu.memory_space<vmem>>, %arg2: memref<1x64x16xf32, #tpu.memory_space<vmem>>, %arg3: memref<1x4x1024xf32, #tpu.memory_space<vmem>>, %arg4: memref<1x4x1024xf32, #tpu.memory_space<vmem>>, %arg5: memref<5x144xbf16, #tpu.memory_space<vmem>>, %arg6: memref<1x4x1024xf32, #tpu.memory_space<vmem>>, %arg7: memref<1x1x1024xf32, #tpu.memory_space<vmem>>, %arg8: memref<16x1024xf32, #tpu.memory_space<vmem>>, %arg9: memref<144x1024xbf16, #tpu.memory_space<vmem>>) attributes {dimension_semantics = [#tpu.dimension_semantics<parallel>], iteration_bounds = array<i64: 2>, scalar_prefetch = 0 : i64, scratch_operands = 2 : i64, tpu.core_type = #tpu.core_type<tc>, window_params = [{transform_indices = @transform_0, window_bounds = array<i64: 1, 64, 16>}, {transform_indices = @transform_1, window_bounds = array<i64: 1, 64, 16>}, {transform_indices = @transform_2, window_bounds = array<i64: 1, 4, 1024>}, {transform_indices = @transform_3, window_bounds = array<i64: 1, 4, 1024>}, {pipeline_mode = #tpu.pipeline_mode<synchronous>, transform_indices = @transform_4, window_bounds = array<i64: 5, 144>}, {transform_indices = @transform_5, window_bounds = array<i64: 1, 4, 1024>}, {transform_indices = @transform_6, window_bounds = array<i64: 1, 1, 1024>}]} {
    %0 = tpu.iota {dimensions = array<i32: 1>} : vector<1x1024xi32>
    %c31_i32 = arith.constant 31 : i32
    %1 = vector.broadcast %c31_i32 : i32 to vector<1x1024xi32>
    %2 = arith.andi %0, %1 : vector<1x1024xi32>
    %c5_i32 = arith.constant 5 : i32
    %3 = vector.broadcast %c5_i32 : i32 to vector<1x1024xi32>
    %4 = arith.shrsi %0, %3 : vector<1x1024xi32>
    %5 = tpu.iota {dimensions = array<i32: 0>} : vector<16x1xi32>
    %c1_i32 = arith.constant 1 : i32
    %6 = vector.broadcast %c1_i32 : i32 to vector<1x1024xi32>
    %7 = arith.shrsi %2, %6 : vector<1x1024xi32>
    %8 = vector.broadcast %5 : vector<16x1xi32> to vector<16x1024xi32>
    %9 = vector.broadcast %7 : vector<1x1024xi32> to vector<16x1024xi32>
    %10 = arith.cmpi eq, %8, %9 : vector<16x1024xi32>
    %11 = arith.extui %10 : vector<16x1024xi1> to vector<16x1024xi32>
    %12 = arith.sitofp %11 : vector<16x1024xi32> to vector<16x1024xf32>
    %13 = tpu.iota {dimensions = array<i32: 0>} : vector<64x1xi32>
    %c15_i32 = arith.constant 15 : i32
    %14 = vector.broadcast %c15_i32 : i32 to vector<64x1xi32>
    %15 = arith.andi %13, %14 : vector<64x1xi32>
    %c1_i32_0 = arith.constant 1 : i32
    %16 = vector.broadcast %c1_i32_0 : i32 to vector<1x1024xi32>
    %17 = arith.shrsi %4, %16 : vector<1x1024xi32>
    %18 = vector.broadcast %15 : vector<64x1xi32> to vector<64x1024xi32>
    %19 = vector.broadcast %17 : vector<1x1024xi32> to vector<64x1024xi32>
    %20 = arith.cmpi eq, %18, %19 : vector<64x1024xi32>
    %21 = arith.extui %20 : vector<64x1024xi1> to vector<64x1024xi32>
    %22 = arith.sitofp %21 : vector<64x1024xi32> to vector<64x1024xf32>
    %23 = tpu.iota {dimensions = array<i32: 0>} : vector<4x1xi32>
    %24 = tpu.iota {dimensions = array<i32: 1>} : vector<1x64xi32>
    %c4_i32 = arith.constant 4 : i32
    %25 = vector.broadcast %c4_i32 : i32 to vector<1x64xi32>
    %26 = arith.shrsi %24, %25 : vector<1x64xi32>
    %27 = vector.broadcast %23 : vector<4x1xi32> to vector<4x64xi32>
    %28 = vector.broadcast %26 : vector<1x64xi32> to vector<4x64xi32>
    %29 = arith.cmpi eq, %27, %28 : vector<4x64xi32>
    %30 = arith.extui %29 : vector<4x64xi1> to vector<4x64xi32>
    %31 = arith.sitofp %30 : vector<4x64xi32> to vector<4x64xf32>
    %c0 = arith.constant 0 : index
    %c0_1 = arith.constant 0 : index
    %c0_2 = arith.constant 0 : index
    %32 = vector.load %arg1[%c0, %c0_1, %c0_2] : memref<1x64x16xf32, #tpu.memory_space<vmem>>, vector<1x64x16xf32>
    %33 = vector.shape_cast %32 : vector<1x64x16xf32> to vector<64x16xf32>
    %cst = arith.constant dense<0.000000e+00> : vector<64x1024xf32>
    %34 = tpu.matmul %33, %12, %cst {dimension_numbers = #tpu.dot_dimension_numbers<[1], [0], [0], [1], [0, 0, 1, 1], [], []>} : vector<64x16xf32>, vector<16x1024xf32>, vector<64x1024xf32> -> vector<64x1024xf32>
    %35 = arith.mulf %34, %22 : vector<64x1024xf32>
    %cst_3 = arith.constant dense<0.000000e+00> : vector<4x1024xf32>
    %36 = tpu.matmul %31, %35, %cst_3 {dimension_numbers = #tpu.dot_dimension_numbers<[1], [0], [0], [1], [0, 0, 1, 1], [], []>} : vector<4x64xf32>, vector<64x1024xf32>, vector<4x1024xf32> -> vector<4x1024xf32>
    %c0_4 = arith.constant 0 : index
    %c0_5 = arith.constant 0 : index
    %37 = vector.load %arg8[%c0_4, %c0_5] : memref<16x1024xf32, #tpu.memory_space<vmem>>, vector<4x1024xf32>
    tpu.vector_store %arg8[%c0_4, %c0_5], %36 {strides = array<i32>} : memref<16x1024xf32, #tpu.memory_space<vmem>>, vector<4x1024xf32>,
    %c0_6 = arith.constant 0 : index
    %c0_7 = arith.constant 0 : index
    %c0_8 = arith.constant 0 : index
    %38 = vector.load %arg3[%c0_6, %c0_7, %c0_8] : memref<1x4x1024xf32, #tpu.memory_space<vmem>>, vector<1x4x1024xf32>
    %39 = vector.shape_cast %38 : vector<1x4x1024xf32> to vector<4x1024xf32>
    %c4 = arith.constant 4 : index
    %c0_9 = arith.constant 0 : index
    %40 = vector.load %arg8[%c4, %c0_9] : memref<16x1024xf32, #tpu.memory_space<vmem>>, vector<4x1024xf32>
    tpu.vector_store %arg8[%c4, %c0_9], %39 {strides = array<i32>} : memref<16x1024xf32, #tpu.memory_space<vmem>>, vector<4x1024xf32>,
    %c0_10 = arith.constant 0 : index
    %c0_11 = arith.constant 0 : index
    %c0_12 = arith.constant 0 : index
    %41 = vector.load %arg2[%c0_10, %c0_11, %c0_12] : memref<1x64x16xf32, #tpu.memory_space<vmem>>, vector<1x64x16xf32>
    %42 = vector.shape_cast %41 : vector<1x64x16xf32> to vector<64x16xf32>
    %cst_13 = arith.constant dense<0.000000e+00> : vector<64x1024xf32>
    %43 = tpu.matmul %42, %12, %cst_13 {dimension_numbers = #tpu.dot_dimension_numbers<[1], [0], [0], [1], [0, 0, 1, 1], [], []>} : vector<64x16xf32>, vector<16x1024xf32>, vector<64x1024xf32> -> vector<64x1024xf32>
    %44 = arith.mulf %43, %22 : vector<64x1024xf32>
    %cst_14 = arith.constant dense<0.000000e+00> : vector<4x1024xf32>
    %45 = tpu.matmul %31, %44, %cst_14 {dimension_numbers = #tpu.dot_dimension_numbers<[1], [0], [0], [1], [0, 0, 1, 1], [], []>} : vector<4x64xf32>, vector<64x1024xf32>, vector<4x1024xf32> -> vector<4x1024xf32>
    %c8 = arith.constant 8 : index
    %c0_15 = arith.constant 0 : index
    %46 = vector.load %arg8[%c8, %c0_15] : memref<16x1024xf32, #tpu.memory_space<vmem>>, vector<4x1024xf32>
    tpu.vector_store %arg8[%c8, %c0_15], %45 {strides = array<i32>} : memref<16x1024xf32, #tpu.memory_space<vmem>>, vector<4x1024xf32>,
    %c0_16 = arith.constant 0 : index
    %c0_17 = arith.constant 0 : index
    %c0_18 = arith.constant 0 : index
    %47 = vector.load %arg4[%c0_16, %c0_17, %c0_18] : memref<1x4x1024xf32, #tpu.memory_space<vmem>>, vector<1x4x1024xf32>
    %48 = vector.shape_cast %47 : vector<1x4x1024xf32> to vector<4x1024xf32>
    %c12 = arith.constant 12 : index
    %c0_19 = arith.constant 0 : index
    %49 = vector.load %arg8[%c12, %c0_19] : memref<16x1024xf32, #tpu.memory_space<vmem>>, vector<4x1024xf32>
    tpu.vector_store %arg8[%c12, %c0_19], %48 {strides = array<i32>} : memref<16x1024xf32, #tpu.memory_space<vmem>>, vector<4x1024xf32>,
    %c0_20 = arith.constant 0 : index
    %c0_21 = arith.constant 0 : index
    %50 = vector.load %arg8[%c0_20, %c0_21] : memref<16x1024xf32, #tpu.memory_space<vmem>>, vector<16x1024xf32>
    %c33_i32 = arith.constant 33 : i32
    %51 = tpu.dynamic_rotate %50 by %c33_i32 dim 1 : vector<16x1024xf32>, i32 -> vector<16x1024xf32>
    %52 = vector.extract_strided_slice %51 {offsets = [0, 0], sizes = [8, 1024], strides = [1, 1]} : vector<16x1024xf32> to vector<8x1024xf32>
    %53 = vector.extract_strided_slice %51 {offsets = [8, 0], sizes = [8, 1024], strides = [1, 1]} : vector<16x1024xf32> to vector<8x1024xf32>
    %c0_i32 = arith.constant 0 : i32
    %54 = vector.broadcast %c0_i32 : i32 to vector<1x1024xi32>
    %55 = arith.cmpi sgt, %2, %54 : vector<1x1024xi32>
    %c0_i32_22 = arith.constant 0 : i32
    %56 = vector.broadcast %c0_i32_22 : i32 to vector<1x1024xi32>
    %57 = arith.cmpi sgt, %4, %56 : vector<1x1024xi32>
    %58 = arith.andi %55, %57 : vector<1x1024xi1>
    %59 = arith.extui %58 : vector<1x1024xi1> to vector<1x1024xi32>
    %60 = arith.sitofp %59 : vector<1x1024xi32> to vector<1x1024xf32>
    %61 = vector.broadcast %60 : vector<1x1024xf32> to vector<8x1024xf32>
    %62 = arith.mulf %53, %61 : vector<8x1024xf32>
    %63 = arith.mulf %52, %62 : vector<8x1024xf32>
    %64 = arith.truncf %63 : vector<8x1024xf32> to vector<8x1024xbf16>
    %c0_23 = arith.constant 0 : index
    %c0_24 = arith.constant 0 : index
    %65 = vector.load %arg9[%c0_23, %c0_24] : memref<144x1024xbf16, #tpu.memory_space<vmem>>, vector<8x1024xbf16>
    tpu.vector_store %arg9[%c0_23, %c0_24], %64 {strides = array<i32>} : memref<144x1024xbf16, #tpu.memory_space<vmem>>, vector<8x1024xbf16>,
    %66 = arith.truncf %62 : vector<8x1024xf32> to vector<8x1024xbf16>
    %c8_25 = arith.constant 8 : index
    %c0_26 = arith.constant 0 : index
    %67 = vector.load %arg9[%c8_25, %c0_26] : memref<144x1024xbf16, #tpu.memory_space<vmem>>, vector<8x1024xbf16>
    tpu.vector_store %arg9[%c8_25, %c0_26], %66 {strides = array<i32>} : memref<144x1024xbf16, #tpu.memory_space<vmem>>, vector<8x1024xbf16>,
    %c32_i32 = arith.constant 32 : i32
    %68 = tpu.dynamic_rotate %50 by %c32_i32 dim 1 : vector<16x1024xf32>, i32 -> vector<16x1024xf32>
    %69 = vector.extract_strided_slice %68 {offsets = [0, 0], sizes = [8, 1024], strides = [1, 1]} : vector<16x1024xf32> to vector<8x1024xf32>
    %70 = vector.extract_strided_slice %68 {offsets = [8, 0], sizes = [8, 1024], strides = [1, 1]} : vector<16x1024xf32> to vector<8x1024xf32>
    %c0_i32_27 = arith.constant 0 : i32
    %71 = vector.broadcast %c0_i32_27 : i32 to vector<1x1024xi32>
    %72 = arith.cmpi sgt, %4, %71 : vector<1x1024xi32>
    %73 = arith.extui %72 : vector<1x1024xi1> to vector<1x1024xi32>
    %74 = arith.sitofp %73 : vector<1x1024xi32> to vector<1x1024xf32>
    %75 = vector.broadcast %74 : vector<1x1024xf32> to vector<8x1024xf32>
    %76 = arith.mulf %70, %75 : vector<8x1024xf32>
    %77 = arith.mulf %69, %76 : vector<8x1024xf32>
    %78 = arith.truncf %77 : vector<8x1024xf32> to vector<8x1024xbf16>
    %c16 = arith.constant 16 : index
    %c0_28 = arith.constant 0 : index
    %79 = vector.load %arg9[%c16, %c0_28] : memref<144x1024xbf16, #tpu.memory_space<vmem>>, vector<8x1024xbf16>
    tpu.vector_store %arg9[%c16, %c0_28], %78 {strides = array<i32>} : memref<144x1024xbf16, #tpu.memory_space<vmem>>, vector<8x1024xbf16>,
    %80 = arith.truncf %76 : vector<8x1024xf32> to vector<8x1024xbf16>
    %c24 = arith.constant 24 : index
    %c0_29 = arith.constant 0 : index
    %81 = vector.load %arg9[%c24, %c0_29] : memref<144x1024xbf16, #tpu.memory_space<vmem>>, vector<8x1024xbf16>
    tpu.vector_store %arg9[%c24, %c0_29], %80 {strides = array<i32>} : memref<144x1024xbf16, #tpu.memory_space<vmem>>, vector<8x1024xbf16>,
    %c31_i32_30 = arith.constant 31 : i32
    %82 = tpu.dynamic_rotate %50 by %c31_i32_30 dim 1 : vector<16x1024xf32>, i32 -> vector<16x1024xf32>
    %83 = vector.extract_strided_slice %82 {offsets = [0, 0], sizes = [8, 1024], strides = [1, 1]} : vector<16x1024xf32> to vector<8x1024xf32>
    %84 = vector.extract_strided_slice %82 {offsets = [8, 0], sizes = [8, 1024], strides = [1, 1]} : vector<16x1024xf32> to vector<8x1024xf32>
    %c31_i32_31 = arith.constant 31 : i32
    %85 = vector.broadcast %c31_i32_31 : i32 to vector<1x1024xi32>
    %86 = arith.cmpi slt, %2, %85 : vector<1x1024xi32>
    %c0_i32_32 = arith.constant 0 : i32
    %87 = vector.broadcast %c0_i32_32 : i32 to vector<1x1024xi32>
    %88 = arith.cmpi sgt, %4, %87 : vector<1x1024xi32>
    %89 = arith.andi %86, %88 : vector<1x1024xi1>
    %90 = arith.extui %89 : vector<1x1024xi1> to vector<1x1024xi32>
    %91 = arith.sitofp %90 : vector<1x1024xi32> to vector<1x1024xf32>
    %92 = vector.broadcast %91 : vector<1x1024xf32> to vector<8x1024xf32>
    %93 = arith.mulf %84, %92 : vector<8x1024xf32>
    %94 = arith.mulf %83, %93 : vector<8x1024xf32>
    %95 = arith.truncf %94 : vector<8x1024xf32> to vector<8x1024xbf16>
    %c32 = arith.constant 32 : index
    %c0_33 = arith.constant 0 : index
    %96 = vector.load %arg9[%c32, %c0_33] : memref<144x1024xbf16, #tpu.memory_space<vmem>>, vector<8x1024xbf16>
    tpu.vector_store %arg9[%c32, %c0_33], %95 {strides = array<i32>} : memref<144x1024xbf16, #tpu.memory_space<vmem>>, vector<8x1024xbf16>,
    %97 = arith.truncf %93 : vector<8x1024xf32> to vector<8x1024xbf16>
    %c40 = arith.constant 40 : index
    %c0_34 = arith.constant 0 : index
    %98 = vector.load %arg9[%c40, %c0_34] : memref<144x1024xbf16, #tpu.memory_space<vmem>>, vector<8x1024xbf16>
    tpu.vector_store %arg9[%c40, %c0_34], %97 {strides = array<i32>} : memref<144x1024xbf16, #tpu.memory_space<vmem>>, vector<8x1024xbf16>,
    %c1_i32_35 = arith.constant 1 : i32
    %99 = tpu.dynamic_rotate %50 by %c1_i32_35 dim 1 : vector<16x1024xf32>, i32 -> vector<16x1024xf32>
    %100 = vector.extract_strided_slice %99 {offsets = [0, 0], sizes = [8, 1024], strides = [1, 1]} : vector<16x1024xf32> to vector<8x1024xf32>
    %101 = vector.extract_strided_slice %99 {offsets = [8, 0], sizes = [8, 1024], strides = [1, 1]} : vector<16x1024xf32> to vector<8x1024xf32>
    %c0_i32_36 = arith.constant 0 : i32
    %102 = vector.broadcast %c0_i32_36 : i32 to vector<1x1024xi32>
    %103 = arith.cmpi sgt, %2, %102 : vector<1x1024xi32>
    %104 = arith.extui %103 : vector<1x1024xi1> to vector<1x1024xi32>
    %105 = arith.sitofp %104 : vector<1x1024xi32> to vector<1x1024xf32>
    %106 = vector.broadcast %105 : vector<1x1024xf32> to vector<8x1024xf32>
    %107 = arith.mulf %101, %106 : vector<8x1024xf32>
    %108 = arith.mulf %100, %107 : vector<8x1024xf32>
    %109 = arith.truncf %108 : vector<8x1024xf32> to vector<8x1024xbf16>
    %c48 = arith.constant 48 : index
    %c0_37 = arith.constant 0 : index
    %110 = vector.load %arg9[%c48, %c0_37] : memref<144x1024xbf16, #tpu.memory_space<vmem>>, vector<8x1024xbf16>
    tpu.vector_store %arg9[%c48, %c0_37], %109 {strides = array<i32>} : memref<144x1024xbf16, #tpu.memory_space<vmem>>, vector<8x1024xbf16>,
    %111 = arith.truncf %107 : vector<8x1024xf32> to vector<8x1024xbf16>
    %c56 = arith.constant 56 : index
    %c0_38 = arith.constant 0 : index
    %112 = vector.load %arg9[%c56, %c0_38] : memref<144x1024xbf16, #tpu.memory_space<vmem>>, vector<8x1024xbf16>
    tpu.vector_store %arg9[%c56, %c0_38], %111 {strides = array<i32>} : memref<144x1024xbf16, #tpu.memory_space<vmem>>, vector<8x1024xbf16>,
    %113 = vector.extract_strided_slice %50 {offsets = [0, 0], sizes = [8, 1024], strides = [1, 1]} : vector<16x1024xf32> to vector<8x1024xf32>
    %114 = vector.extract_strided_slice %50 {offsets = [8, 0], sizes = [8, 1024], strides = [1, 1]} : vector<16x1024xf32> to vector<8x1024xf32>
    %115 = arith.mulf %113, %114 : vector<8x1024xf32>
    %116 = arith.truncf %115 : vector<8x1024xf32> to vector<8x1024xbf16>
    %c64 = arith.constant 64 : index
    %c0_39 = arith.constant 0 : index
    %117 = vector.load %arg9[%c64, %c0_39] : memref<144x1024xbf16, #tpu.memory_space<vmem>>, vector<8x1024xbf16>
    tpu.vector_store %arg9[%c64, %c0_39], %116 {strides = array<i32>} : memref<144x1024xbf16, #tpu.memory_space<vmem>>, vector<8x1024xbf16>,
    %118 = arith.truncf %114 : vector<8x1024xf32> to vector<8x1024xbf16>
    %c72 = arith.constant 72 : index
    %c0_40 = arith.constant 0 : index
    %119 = vector.load %arg9[%c72, %c0_40] : memref<144x1024xbf16, #tpu.memory_space<vmem>>, vector<8x1024xbf16>
    tpu.vector_store %arg9[%c72, %c0_40], %118 {strides = array<i32>} : memref<144x1024xbf16, #tpu.memory_space<vmem>>, vector<8x1024xbf16>,
    %c1023_i32 = arith.constant 1023 : i32
    %120 = tpu.dynamic_rotate %50 by %c1023_i32 dim 1 : vector<16x1024xf32>, i32 -> vector<16x1024xf32>
    %121 = vector.extract_strided_slice %120 {offsets = [0, 0], sizes = [8, 1024], strides = [1, 1]} : vector<16x1024xf32> to vector<8x1024xf32>
    %122 = vector.extract_strided_slice %120 {offsets = [8, 0], sizes = [8, 1024], strides = [1, 1]} : vector<16x1024xf32> to vector<8x1024xf32>
    %c31_i32_41 = arith.constant 31 : i32
    %123 = vector.broadcast %c31_i32_41 : i32 to vector<1x1024xi32>
    %124 = arith.cmpi slt, %2, %123 : vector<1x1024xi32>
    %125 = arith.extui %124 : vector<1x1024xi1> to vector<1x1024xi32>
    %126 = arith.sitofp %125 : vector<1x1024xi32> to vector<1x1024xf32>
    %127 = vector.broadcast %126 : vector<1x1024xf32> to vector<8x1024xf32>
    %128 = arith.mulf %122, %127 : vector<8x1024xf32>
    %129 = arith.mulf %121, %128 : vector<8x1024xf32>
    %130 = arith.truncf %129 : vector<8x1024xf32> to vector<8x1024xbf16>
    %c80 = arith.constant 80 : index
    %c0_42 = arith.constant 0 : index
    %131 = vector.load %arg9[%c80, %c0_42] : memref<144x1024xbf16, #tpu.memory_space<vmem>>, vector<8x1024xbf16>
    tpu.vector_store %arg9[%c80, %c0_42], %130 {strides = array<i32>} : memref<144x1024xbf16, #tpu.memory_space<vmem>>, vector<8x1024xbf16>,
    %132 = arith.truncf %128 : vector<8x1024xf32> to vector<8x1024xbf16>
    %c88 = arith.constant 88 : index
    %c0_43 = arith.constant 0 : index
    %133 = vector.load %arg9[%c88, %c0_43] : memref<144x1024xbf16, #tpu.memory_space<vmem>>, vector<8x1024xbf16>
    tpu.vector_store %arg9[%c88, %c0_43], %132 {strides = array<i32>} : memref<144x1024xbf16, #tpu.memory_space<vmem>>, vector<8x1024xbf16>,
    %c993_i32 = arith.constant 993 : i32
    %134 = tpu.dynamic_rotate %50 by %c993_i32 dim 1 : vector<16x1024xf32>, i32 -> vector<16x1024xf32>
    %135 = vector.extract_strided_slice %134 {offsets = [0, 0], sizes = [8, 1024], strides = [1, 1]} : vector<16x1024xf32> to vector<8x1024xf32>
    %136 = vector.extract_strided_slice %134 {offsets = [8, 0], sizes = [8, 1024], strides = [1, 1]} : vector<16x1024xf32> to vector<8x1024xf32>
    %c0_i32_44 = arith.constant 0 : i32
    %137 = vector.broadcast %c0_i32_44 : i32 to vector<1x1024xi32>
    %138 = arith.cmpi sgt, %2, %137 : vector<1x1024xi32>
    %c31_i32_45 = arith.constant 31 : i32
    %139 = vector.broadcast %c31_i32_45 : i32 to vector<1x1024xi32>
    %140 = arith.cmpi slt, %4, %139 : vector<1x1024xi32>
    %141 = arith.andi %138, %140 : vector<1x1024xi1>
    %142 = arith.extui %141 : vector<1x1024xi1> to vector<1x1024xi32>
    %143 = arith.sitofp %142 : vector<1x1024xi32> to vector<1x1024xf32>
    %144 = vector.broadcast %143 : vector<1x1024xf32> to vector<8x1024xf32>
    %145 = arith.mulf %136, %144 : vector<8x1024xf32>
    %146 = arith.mulf %135, %145 : vector<8x1024xf32>
    %147 = arith.truncf %146 : vector<8x1024xf32> to vector<8x1024xbf16>
    %c96 = arith.constant 96 : index
    %c0_46 = arith.constant 0 : index
    %148 = vector.load %arg9[%c96, %c0_46] : memref<144x1024xbf16, #tpu.memory_space<vmem>>, vector<8x1024xbf16>
    tpu.vector_store %arg9[%c96, %c0_46], %147 {strides = array<i32>} : memref<144x1024xbf16, #tpu.memory_space<vmem>>, vector<8x1024xbf16>,
    %149 = arith.truncf %145 : vector<8x1024xf32> to vector<8x1024xbf16>
    %c104 = arith.constant 104 : index
    %c0_47 = arith.constant 0 : index
    %150 = vector.load %arg9[%c104, %c0_47] : memref<144x1024xbf16, #tpu.memory_space<vmem>>, vector<8x1024xbf16>
    tpu.vector_store %arg9[%c104, %c0_47], %149 {strides = array<i32>} : memref<144x1024xbf16, #tpu.memory_space<vmem>>, vector<8x1024xbf16>,
    %c992_i32 = arith.constant 992 : i32
    %151 = tpu.dynamic_rotate %50 by %c992_i32 dim 1 : vector<16x1024xf32>, i32 -> vector<16x1024xf32>
    %152 = vector.extract_strided_slice %151 {offsets = [0, 0], sizes = [8, 1024], strides = [1, 1]} : vector<16x1024xf32> to vector<8x1024xf32>
    %153 = vector.extract_strided_slice %151 {offsets = [8, 0], sizes = [8, 1024], strides = [1, 1]} : vector<16x1024xf32> to vector<8x1024xf32>
    %c31_i32_48 = arith.constant 31 : i32
    %154 = vector.broadcast %c31_i32_48 : i32 to vector<1x1024xi32>
    %155 = arith.cmpi slt, %4, %154 : vector<1x1024xi32>
    %156 = arith.extui %155 : vector<1x1024xi1> to vector<1x1024xi32>
    %157 = arith.sitofp %156 : vector<1x1024xi32> to vector<1x1024xf32>
    %158 = vector.broadcast %157 : vector<1x1024xf32> to vector<8x1024xf32>
    %159 = arith.mulf %153, %158 : vector<8x1024xf32>
    %160 = arith.mulf %152, %159 : vector<8x1024xf32>
    %161 = arith.truncf %160 : vector<8x1024xf32> to vector<8x1024xbf16>
    %c112 = arith.constant 112 : index
    %c0_49 = arith.constant 0 : index
    %162 = vector.load %arg9[%c112, %c0_49] : memref<144x1024xbf16, #tpu.memory_space<vmem>>, vector<8x1024xbf16>
    tpu.vector_store %arg9[%c112, %c0_49], %161 {strides = array<i32>} : memref<144x1024xbf16, #tpu.memory_space<vmem>>, vector<8x1024xbf16>,
    %163 = arith.truncf %159 : vector<8x1024xf32> to vector<8x1024xbf16>
    %c120 = arith.constant 120 : index
    %c0_50 = arith.constant 0 : index
    %164 = vector.load %arg9[%c120, %c0_50] : memref<144x1024xbf16, #tpu.memory_space<vmem>>, vector<8x1024xbf16>
    tpu.vector_store %arg9[%c120, %c0_50], %163 {strides = array<i32>} : memref<144x1024xbf16, #tpu.memory_space<vmem>>, vector<8x1024xbf16>,
    %c991_i32 = arith.constant 991 : i32
    %165 = tpu.dynamic_rotate %50 by %c991_i32 dim 1 : vector<16x1024xf32>, i32 -> vector<16x1024xf32>
    %166 = vector.extract_strided_slice %165 {offsets = [0, 0], sizes = [8, 1024], strides = [1, 1]} : vector<16x1024xf32> to vector<8x1024xf32>
    %167 = vector.extract_strided_slice %165 {offsets = [8, 0], sizes = [8, 1024], strides = [1, 1]} : vector<16x1024xf32> to vector<8x1024xf32>
    %c31_i32_51 = arith.constant 31 : i32
    %168 = vector.broadcast %c31_i32_51 : i32 to vector<1x1024xi32>
    %169 = arith.cmpi slt, %2, %168 : vector<1x1024xi32>
    %c31_i32_52 = arith.constant 31 : i32
    %170 = vector.broadcast %c31_i32_52 : i32 to vector<1x1024xi32>
    %171 = arith.cmpi slt, %4, %170 : vector<1x1024xi32>
    %172 = arith.andi %169, %171 : vector<1x1024xi1>
    %173 = arith.extui %172 : vector<1x1024xi1> to vector<1x1024xi32>
    %174 = arith.sitofp %173 : vector<1x1024xi32> to vector<1x1024xf32>
    %175 = vector.broadcast %174 : vector<1x1024xf32> to vector<8x1024xf32>
    %176 = arith.mulf %167, %175 : vector<8x1024xf32>
    %177 = arith.mulf %166, %176 : vector<8x1024xf32>
    %178 = arith.truncf %177 : vector<8x1024xf32> to vector<8x1024xbf16>
    %c128 = arith.constant 128 : index
    %c0_53 = arith.constant 0 : index
    %179 = vector.load %arg9[%c128, %c0_53] : memref<144x1024xbf16, #tpu.memory_space<vmem>>, vector<8x1024xbf16>
    tpu.vector_store %arg9[%c128, %c0_53], %178 {strides = array<i32>} : memref<144x1024xbf16, #tpu.memory_space<vmem>>, vector<8x1024xbf16>,
    %180 = arith.truncf %176 : vector<8x1024xf32> to vector<8x1024xbf16>
    %c136 = arith.constant 136 : index
    %c0_54 = arith.constant 0 : index
    %181 = vector.load %arg9[%c136, %c0_54] : memref<144x1024xbf16, #tpu.memory_space<vmem>>, vector<8x1024xbf16>
    tpu.vector_store %arg9[%c136, %c0_54], %180 {strides = array<i32>} : memref<144x1024xbf16, #tpu.memory_space<vmem>>, vector<8x1024xbf16>,
    %c0_55 = arith.constant 0 : index
    %c0_56 = arith.constant 0 : index
    %182 = vector.load %arg5[%c0_55, %c0_56] : memref<5x144xbf16, #tpu.memory_space<vmem>>, vector<5x144xbf16>
    %c0_57 = arith.constant 0 : index
    %c0_58 = arith.constant 0 : index
    %183 = vector.load %arg9[%c0_57, %c0_58] : memref<144x1024xbf16, #tpu.memory_space<vmem>>, vector<144x1024xbf16>
    %cst_59 = arith.constant dense<0.000000e+00> : vector<5x1024xf32>
    %184 = tpu.matmul %182, %183, %cst_59 {dimension_numbers = #tpu.dot_dimension_numbers<[1], [0], [0], [1], [0, 0, 1, 1], [], []>} : vector<5x144xbf16>, vector<144x1024xbf16>, vector<5x1024xf32> -> vector<5x1024xf32>
    %185 = vector.extract_strided_slice %184 {offsets = [0, 0], sizes = [4, 1024], strides = [1, 1]} : vector<5x1024xf32> to vector<4x1024xf32>
    %186 = vector.extract_strided_slice %184 {offsets = [4, 0], sizes = [1, 1024], strides = [1, 1]} : vector<5x1024xf32> to vector<1x1024xf32>
    %cst_60 = arith.constant 9.99999993E-9 : f32
    %187 = vector.broadcast %cst_60 : f32 to vector<1x1024xf32>
    %188 = arith.addf %186, %187 : vector<1x1024xf32>
    %189 = tpu.reciprocal %188 {approx = true} : vector<1x1024xf32> -> vector<1x1024xf32>
    %190 = arith.mulf %188, %189 : vector<1x1024xf32>
    %cst_61 = arith.constant 2.000000e+00 : f32
    %191 = vector.broadcast %cst_61 : f32 to vector<1x1024xf32>
    %192 = arith.subf %191, %190 : vector<1x1024xf32>
    %193 = arith.mulf %189, %192 : vector<1x1024xf32>
    %cst_62 = arith.constant 0.000000e+00 : f32
    %cst_63 = arith.constant 1.000000e+00 : f32
    %194 = vector.broadcast %cst_62 : f32 to vector<1x1024xf32>
    %195 = arith.maximumf %194, %186 : vector<1x1024xf32>
    %196 = vector.broadcast %cst_63 : f32 to vector<1x1024xf32>
    %197 = arith.minimumf %196, %195 : vector<1x1024xf32>
    %cst_64 = arith.constant 9.000000e+00 : f32
    %198 = vector.broadcast %cst_64 : f32 to vector<1x1024xf32>
    %199 = arith.mulf %198, %193 : vector<1x1024xf32>
    %200 = arith.mulf %199, %197 : vector<1x1024xf32>
    %201 = vector.broadcast %200 : vector<1x1024xf32> to vector<4x1024xf32>
    %202 = arith.mulf %185, %201 : vector<4x1024xf32>
    %cst_65 = arith.constant 0.000000e+00 : f32
    %203 = vector.broadcast %cst_65 : f32 to vector<4x1024xf32>
    %204 = arith.cmpf oge, %202, %203 : vector<4x1024xf32>
    %cst_66 = arith.constant 2.000000e-01 : f32
    %205 = vector.broadcast %cst_66 : f32 to vector<4x1024xf32>
    %206 = arith.mulf %205, %202 : vector<4x1024xf32>
    %207 = arith.select %204, %202, %206 : vector<4x1024xi1>, vector<4x1024xf32>
    %c0_67 = arith.constant 0 : index
    %c0_68 = arith.constant 0 : index
    %c0_69 = arith.constant 0 : index
    %208 = vector.load %arg6[%c0_67, %c0_68, %c0_69] : memref<1x4x1024xf32, #tpu.memory_space<vmem>>, vector<1x4x1024xf32>
    %209 = vector.shape_cast %208 : vector<1x4x1024xf32> to vector<4x1024xf32>
    %210 = vector.shape_cast %207 : vector<4x1024xf32> to vector<1x4x1024xf32>
    tpu.vector_store %arg6[%c0_67, %c0_68, %c0_69], %210 {strides = array<i32>} : memref<1x4x1024xf32, #tpu.memory_space<vmem>>, vector<1x4x1024xf32>,
    %c0_70 = arith.constant 0 : index
    %c0_71 = arith.constant 0 : index
    %c0_72 = arith.constant 0 : index
    %211 = vector.load %arg7[%c0_70, %c0_71, %c0_72] : memref<1x1x1024xf32, #tpu.memory_space<vmem>>, vector<1x1x1024xf32>
    %212 = vector.shape_cast %211 : vector<1x1x1024xf32> to vector<1x1024xf32>
    %213 = vector.shape_cast %197 : vector<1x1024xf32> to vector<1x1x1024xf32>
    tpu.vector_store %arg7[%c0_70, %c0_71, %c0_72], %213 {strides = array<i32>} : memref<1x1x1024xf32, #tpu.memory_space<vmem>>, vector<1x1x1024xf32>,
    return
  }
  func.func @transform_0(%arg0: i32) -> (i32, i32, i32) {
    %c0_i32 = arith.constant 0 : i32
    %c0_i32_0 = arith.constant 0 : i32
    %c0_i32_1 = arith.constant 0 : i32
    return %arg0, %c0_i32, %c0_i32_0 : i32, i32, i32
  }
  func.func @transform_1(%arg0: i32) -> (i32, i32, i32) {
    %c0_i32 = arith.constant 0 : i32
    %c0_i32_0 = arith.constant 0 : i32
    %c0_i32_1 = arith.constant 0 : i32
    return %arg0, %c0_i32, %c0_i32_0 : i32, i32, i32
  }
  func.func @transform_2(%arg0: i32) -> (i32, i32, i32) {
    %c0_i32 = arith.constant 0 : i32
    %c0_i32_0 = arith.constant 0 : i32
    %c0_i32_1 = arith.constant 0 : i32
    return %arg0, %c0_i32, %c0_i32_0 : i32, i32, i32
  }
  func.func @transform_3(%arg0: i32) -> (i32, i32, i32) {
    %c0_i32 = arith.constant 0 : i32
    %c0_i32_0 = arith.constant 0 : i32
    %c0_i32_1 = arith.constant 0 : i32
    return %arg0, %c0_i32, %c0_i32_0 : i32, i32, i32
  }
  func.func @transform_4(%arg0: i32) -> (i32, i32) {
    %c0_i32 = arith.constant 0 : i32
    %c0_i32_0 = arith.constant 0 : i32
    %c0_i32_1 = arith.constant 0 : i32
    return %c0_i32, %c0_i32_0 : i32, i32
  }
  func.func @transform_5(%arg0: i32) -> (i32, i32, i32) {
    %c0_i32 = arith.constant 0 : i32
    %c0_i32_0 = arith.constant 0 : i32
    %c0_i32_1 = arith.constant 0 : i32
    return %arg0, %c0_i32, %c0_i32_0 : i32, i32, i32
  }
  func.func @transform_6(%arg0: i32) -> (i32, i32, i32) {
    %c0_i32 = arith.constant 0 : i32
    %c0_i32_0 = arith.constant 0 : i32
    %c0_i32_1 = arith.constant 0 : i32
    return %arg0, %c0_i32, %c0_i32_0 : i32, i32, i32
  }
}

</mosaic_0001>

<bundles_post_ra>
// kernel: decoding_layer.1
= control target key start
LH: loop header
LB: loop body
LE: loop exit
PB: predicated region body
PF: predicated region fallthrough
CT: control target
= control target key end

     0   :  { %s4507_s21 = smov 0   ;;  %s7410_s0 = inlined_call_operand.vmem [shape: f32[2,64,16], index: 0, kind: input, shape index: {}]   ;;  %s7411_s1 = inlined_call_operand.vmem [shape: f32[2,64,16], index: 1, kind: input, shape index: {}]   ;;  %s7412_s2 = inlined_call_operand.vmem [shape: f32[2,4,1024], index: 2, kind: input, shape index: {}]   ;;  %s7413_s3 = inlined_call_operand.vmem [shape: f32[2,4,1024], index: 3, kind: input, shape index: {}]   ;;  %s7414_s4 = inlined_call_operand.vmem [shape: bf16[5,144], index: 4, kind: input, shape index: {}]   ;;  %s7415_s5 = inlined_call_operand.vmem [shape: f32[2,4,1024], index: 5, kind: output, shape index: {0}]   ;;  %s7416_s6 = inlined_call_operand.vmem [shape: f32[2,1,1024], index: 6, kind: output, shape index: {1}]  }
   0x1 LB: > { %s3704_s22 = sadd.s32 4294967295, %s4460_s21   ;;  %p3708_p0 = scmp.ge.s32.totalorder %s4460_s21, 1  ;;  %s4460_s21 = sphi %s4507_s21, %s17_s21  }
   0x2   : > { %p245_p1 = scmp.lt.s32.totalorder %s4460_s21, 3 }
   0x4   : > { %p246_p2 = pnand %p3708_p0, %p245_p1 }
   0x6   : > { %249 = sbr.rel (%p246_p2) target bundleno = 1114 (0x45a), region = 40 }
   0xb   : > { %v324_v0 = vlaneseq  ;;  %p294_p3 = scmp.lt.s32.totalorder %s3704_s22, 1  ;;  %v7419_v19 = vmov 1.0   ;;  %vm7431_vm3 = vcmask 130048   ;;  %v7600_v26 = vmov 0  ;;  %s4464_s13 = smov 97  }
   0xc   : > { %v7603_v28 = vmov 0  ;;  %v7606_v31 = vmov 0  ;;  %v7618_v58 = vmov 0  ;;  %v7623_v61 = vmov 0  ;;  %s4465_s14 = smov 32   ;;  %s4466_s15 = smov 33  }
   0xd   : > { %v4515_v1 = vand.u32 127, %v324_v0  ;;  %v4517_v2 = vshrl.u32 %v324_v0, 7  ;;  %s8084_s22 = smov (!%p294_p3, %s3704_s22), 1  ;;  %s4467_s16 = smov 95  }
   0xe   : > { %s4339_s23 = sshll.u32 %s8084_s22, 6  ;;  %s4535_s24 = sshll.u32 %s8084_s22, 5 }
   0xf   : > { %v4522_v3 = vand.u32 31, %v4515_v1  ;;  %v4525_v4 = vadd.s32 8, %v4517_v2  ;;  %v4528_v5 = vadd.s32 128, %v4515_v1  ;;  %v4531_v6 = vadd.s32 384, %v4515_v1  ;;  %s308_s27 = scalar_lea.vmem %s7412_s2, %s4535_s24  ;;  %s4556_s30 = scalar_lea.vmem %s7410_s0, %s4339_s23 }
  0x10   : > { %v4542_v7 = vadd.s32 256, %v4515_v1  ;;  %v1223_v11 = vld [vmem:[%s308_s27] sm:$0xff]  ;;  %v1224_v12 = vld [vmem:[%s308_s27 + $0x8] sm:$0xff]  ;;  %v1225_v13 = vld [vmem:[%s308_s27 + $0x10] sm:$0xff]  ;;  %s313_s9 = scalar_lea.vmem %s7413_s3, %s4535_s24  ;;  %v4669_v44 = vadd.s32 640, %v4515_v1  ;;  %v4690_v49 = vadd.s32 512, %v4515_v1  ;;  %s5389_s12 = scalar_lea.vmem %s7411_s1, %s4339_s23 }
  0x11   : > { %7586 = vst [vmem:[#allocation4_spill] sm:$0xff] %v4522_v3  ;;  %v352_v8 = vshra.s32 %v4522_v3, 1  ;;  %v4546_v9 = vand.u32 31, %v4528_v5  ;;  %v4549_v10 = vand.u32 31, %v4531_v6  ;;  %v1226_v18 = vld [vmem:[%s308_s27 + $0x18] sm:$0xff]  ;;  %v4582_v22 = vld [vmem:[%s4556_s30] sm:$0xff]  ;;  %s7392_s28 = scalar_lea.vmem %s7415_s5, %s4535_s24 }
  0x12   : > { %v4559_v14 = vand.u32 31, %v4542_v7  ;;  %1232 = vst [vmem:[#allocation1 + $0x1] ss:$2 sm:$0xff] %v1223_v11  ;;  %v4617_v27 = vld [vmem:[%s4556_s30 + $0x38] sm:$0xff]  ;;  %v1855_v29 = vld [vmem:[%s313_s9] sm:$0xff]  ;;  %v1856_v30 = vld [vmem:[%s313_s9 + $0x8] sm:$0xff] }
  0x13   : > { %7587 = vst [vmem:[#allocation5_spill] sm:$0xff] %v4546_v9  ;;  %vm4562_vm0 = vcmp.eq.s32.totalorder %v4525_v4, %v352_v8  ;;  %vm4567_vm1 = vcmp.eq.s32.totalorder %v4517_v2, %v352_v8  ;;  %v353_v17 = vshra.s32 %v4546_v9, 1  ;;  %v355_v20 = vshra.s32 %v4549_v10, 1  ;;  %v1857_v33 = vld [vmem:[%s313_s9 + $0x10] sm:$0xff]  ;;  %v4650_v34 = vld [vmem:[%s4556_s30 + $0x8] sm:$0xff]  ;;  %v1858_v40 = vld [vmem:[%s313_s9 + $0x18] sm:$0xff] }
  0x14   : > { %7588 = vst [vmem:[#allocation6_spill] sm:$0xff] %v4549_v10  ;;  %3801 = vmatpush.msk.msra.mxu0 %vm4562_vm0, %v7419_v19  ;;  %v354_v24 = vshra.s32 %v4559_v14, 1  ;;  %v4664_v43 = vld [vmem:[%s4556_s30 + $0x10] sm:$0xff]  ;;  %v4678_v45 = vand.u32 31, %v4669_v44  ;;  %v4681_v46 = vld [vmem:[%s4556_s30 + $0x18] sm:$0xff]  ;;  %v4703_v51 = vadd.s32 896, %v4515_v1 }
  0x15   : > { %7589 = vst [vmem:[#allocation7_spill] sm:$0xff] %v4559_v14  ;;  %vm4577_vm2 = vcmp.eq.s32.totalorder %v4525_v4, %v353_v17  ;;  %vm4585_vm4 = vcmp.eq.s32.totalorder %v4517_v2, %v353_v17  ;;  %vm4597_vm5 = vcmp.eq.s32.totalorder %v4525_v4, %v355_v20  ;;  %vm4602_vm6 = vcmp.eq.s32.totalorder %v4517_v2, %v355_v20  ;;  %v630_v56 = vld [vmem:[%s4556_s30 + $0x20] sm:$0xff]  ;;  %v631_v0 = vld [vmem:[%s4556_s30 + $0x28] sm:$0xff]  ;;  %v5522_v25 = vld [vmem:[%s5389_s12 + $0x10] sm:$0xff]  ;;  %s4468_s17 = smov 127   ;;  %s4469_s18 = smov 96  }
  0x16   : > { %1234 = vst [vmem:[#allocation1 + $0x11] ss:$2 sm:$0xff] %v1224_v12  ;;  %3802 = vmatpush.msk.msra.mxu0 %vm4567_vm1, %v7419_v19  ;;  %3811 = vmatpush.msk.msra.mxu1 %vm4577_vm2, %v7419_v19  ;;  %v7601_v26 = vsel %vm4602_vm6, 4294967295, %v7600_v26  ;;  %vm4625_vm7 = vcmp.eq.s32.totalorder %v4525_v4, %v354_v24  ;;  %vm4640_vm8 = vcmp.eq.s32.totalorder %v4517_v2, %v354_v24  ;;  %v357_v47 = vshra.s32 %v4678_v45, 1  ;;  %v632_v12 = vld [vmem:[%s4556_s30 + $0x30] sm:$0xff]  ;;  %s4470_s19 = smov 31  }
  0x17   : > { %1236 = vst [vmem:[#allocation1 + $0x21] ss:$2 sm:$0xff] %v1225_v13  ;;  %4416 = vmatpush.msk.msra.mxu2 %vm4577_vm2, %v7419_v19  ;;  %3831 = vmatpush.msk.msra.mxu3 %vm4597_vm5, %v7419_v19  ;;  %v7604_v28 = vsel %vm4625_vm7, 4294967295, %v7603_v28  ;;  %v7607_v31 = vsel %vm4640_vm8, 4294967295, %v7606_v31  ;;  %v4706_v52 = vand.u32 31, %v4690_v49  ;;  %v4713_v53 = vand.u32 31, %v4703_v51 }
  0x18   : > { %1238 = vst [vmem:[#allocation1 + $0x31] ss:$2 sm:$0xff] %v1226_v18  ;;  %3803 = vmatmul.msk.f32.vlgmr.msra.gmra.mxu0 %vm7431_vm3, %v4582_v22  ;;  %3812 = vmatpush.msk.msra.mxu1 %vm4585_vm4, %v7419_v19  ;;  %vm4685_vm9 = vcmp.eq.s32.totalorder %v4525_v4, %v357_v47  ;;  %vm4698_vm10 = vcmp.eq.s32.totalorder %v4517_v2, %v357_v47  ;;  %v4746_v60 = vadd.s32 768, %v4515_v1  ;;  %v7627_v8 = vmov 0  ;;  %s4471_s20 = smov 1   ;;  %s3719_s24 = sshll.u32 %s8084_s22, 3 }
  0x19   : > { %7602 = vst [vmem:[#allocation8_spill] sm:$0xff] %v7601_v26  ;;  %4417 = vmatpush.msk.msra.mxu2 %vm4585_vm4, %v7419_v19  ;;  %3832 = vmatpush.msk.msra.mxu3 %vm4602_vm6, %v7419_v19  ;;  %v1239_v32 = vld.sshfl [vmem:[#allocation1] sm:$0xff pattern:$0x75316420]  ;;  %v356_v54 = vshra.s32 %v4706_v52, 1  ;;  %v359_v55 = vshra.s32 %v4713_v53, 1  ;;  %s322_s7 = scalar_lea.vmem %s7416_s6, %s3719_s24 }
  0x1a   : > { %7605 = vst [vmem:[#allocation9_spill] sm:$0xff] %v7604_v28  ;;  %3813 = vmatmul.msk.f32.vlgmr.msra.gmra.mxu1 %vm7431_vm3, %v4582_v22  ;;  %3820 = vmatmul.msk.f32.vlgmr.msra.gmra.mxu2 %vm7431_vm3, %v4617_v27  ;;  %v1240_v35 = vld.sshfl [vmem:[#allocation1 + $0x8] sm:$0xff pattern:$0x75316420]  ;;  %v4763_v62 = vand.u32 31, %v4746_v60  ;;  %v7630_v11 = vmov 0 }
  0x1b   : > { %7608 = vst [vmem:[#allocation10_spill] sm:$0xff] %v7607_v31  ;;  %3833 = vmatmul.msk.f32.vlgmr.msra.gmra.mxu3 %vm7431_vm3, %v4582_v22  ;;  %3821 = vmatpush.msk.msrb.mxu2 %vm4625_vm7, %v7419_v19  ;;  %vm4724_vm11 = vcmp.eq.s32.totalorder %v4525_v4, %v356_v54  ;;  %vm4729_vm12 = vcmp.eq.s32.totalorder %v4525_v4, %v359_v55  ;;  %v413_v13 = vadd.s32 56, %v4517_v2  ;;  %v4849_v17 = vshra.s32 %v4528_v5, 5 }
  0x1c   : > { %1864 = vst [vmem:[#allocation1 + $0x1] ss:$2 sm:$0xff] %v1855_v29  ;;  %3851 = vmatpush.msk.msrb.mxu1 %vm4685_vm9, %v7419_v19  ;;  %v7619_v58 = vsel %vm4729_vm12, 4294967295, %v7618_v58  ;;  %3841 = vmatpush.msk.msrb.mxu0 %vm4724_vm11, %v7419_v19  ;;  %vm4737_vm13 = vcmp.eq.s32.totalorder %v4517_v2, %v356_v54  ;;  %vm4749_vm14 = vcmp.eq.s32.totalorder %v4517_v2, %v359_v55  ;;  %v358_v63 = vshra.s32 %v4763_v62, 1 }
  0x1d   : > { %v1241_v36 = vld.sshfl [vmem:[#allocation1 + $0x10] sm:$0xff pattern:$0x75316420]  ;;  %v1242_v37 = vld.sshfl [vmem:[#allocation1 + $0x18] sm:$0xff pattern:$0x75316420]  ;;  %3822 = vmatpush.msk.msrb.mxu2 %vm4640_vm8, %v7419_v19  ;;  %3871 = vmatpush.msk.msrb.mxu3 %vm4729_vm12, %v7419_v19 }
  0x1e   : > { %v1243_v38 = vld.sshfl [vmem:[#allocation1 + $0x20] sm:$0xff pattern:$0x75316420]  ;;  %v1244_v39 = vld.sshfl [vmem:[#allocation1 + $0x28] sm:$0xff pattern:$0x75316420]  ;;  %3852 = vmatpush.msk.msrb.mxu1 %vm4698_vm10, %v7419_v19  ;;  %3842 = vmatpush.msk.msrb.mxu0 %vm4737_vm13, %v7419_v19  ;;  %vm4769_vm15 = vcmp.eq.s32.totalorder %v4525_v4, %v358_v63  ;;  %vm4778_vm8 = vcmp.eq.s32.totalorder %v4517_v2, %v358_v63 }
  0x1f   : > { %v1245_v41 = vld.sshfl [vmem:[#allocation1 + $0x30] sm:$0xff pattern:$0x75316420]  ;;  %1866 = vst [vmem:[#allocation1 + $0x11] ss:$2 sm:$0xff] %v1856_v30  ;;  %v7624_v61 = vsel %vm4749_vm14, 4294967295, %v7623_v61  ;;  %3872 = vmatpush.msk.msrb.mxu3 %vm4749_vm14, %v7419_v19  ;;  %3861 = vmatpush.msk.msra.mxu2 %vm4769_vm15, %v7419_v19 }
  0x20   : > { %v1246_v42 = vld.sshfl [vmem:[#allocation1 + $0x38] sm:$0xff pattern:$0x75316420]  ;;  %1868 = vst [vmem:[#allocation1 + $0x21] ss:$2 sm:$0xff] %v1857_v33  ;;  %3804 = vmatmul.msk.f32.gmra.mxu0 %vm7431_vm3, %v4650_v34  ;;  %v7628_v8 = vsel %vm4769_vm15, 4294967295, %v7627_v8 }
  0x21   : > { %1870 = vst [vmem:[#allocation1 + $0x31] ss:$2 sm:$0xff] %v1858_v40  ;;  %v7631_v11 = vsel %vm4778_vm8, 4294967295, %v7630_v11  ;;  %3862 = vmatpush.msk.msra.mxu2 %vm4778_vm8, %v7419_v19  ;;  %v4854_v18 = vand.u32 15, %v413_v13  ;;  %v7421_v5 = vmov 0.0   ;;  %v412_v55 = vadd.s32 48, %v4517_v2 }
  0x22   : > { %1255 = vst [vmem:[#allocation2 + $0x30] sm:$0xf0] %v1239_v32  ;;  %3814 = vmatmul.msk.f32.gmra.mxu1 %vm7431_vm3, %v4650_v34  ;;  %3823 = vmatmul.msk.f32.vlgmr.msrb.gmra.mxu2 %vm7431_vm3, %v4582_v22  ;;  %v409_v19 = vadd.s32 24, %v4517_v2 }
  0x23   : > { %1256 = vst [vmem:[#allocation2] sm:$0xf0] %v1240_v35  ;;  %3834 = vmatmul.msk.f32.gmra.mxu3 %vm7431_vm3, %v4650_v34 }
  0x24   : > { %1257 = vst [vmem:[#allocation2 + $0x58] sm:$0xf0] %v1241_v36 }
  0x25   : > { %1258 = vst [vmem:[#allocation2 + $0x18] sm:$0xf0] %v1242_v37 }
  0x26   : > { %1259 = vst [vmem:[#allocation2 + $0x50] sm:$0xf0] %v1243_v38 }
  0x27   : > { %1260 = vst [vmem:[#allocation2 + $0x68] sm:$0xf0] %v1244_v39 }
  0x28   : > { %1261 = vst [vmem:[#allocation2 + $0x8] sm:$0xf0] %v1245_v41  ;;  %3805 = vmatmul.msk.f32.gmra.mxu0 %vm7431_vm3, %v4664_v43 }
  0x29   : > { %1262 = vst [vmem:[#allocation2 + $0x48] sm:$0xf0] %v1246_v42 }
  0x2a   : > { %3815 = vmatmul.msk.f32.gmra.mxu1 %vm7431_vm3, %v4664_v43  ;;  %3824 = vmatmul.msk.f32.gmra.mxu2 %vm7431_vm3, %v4650_v34  ;;  %7609 = vst [vmem:[#allocation11_spill] sm:$0xff] %v4678_v45 }
  0x2b   : > { %3835 = vmatmul.msk.f32.gmra.mxu3 %vm7431_vm3, %v4664_v43  ;;  %7614 = vst [vmem:[#allocation12_spill] sm:$0xff] %v4706_v52  ;;  %v4919_v52 = vand.u32 15, %v409_v19  ;;  %v4938_v19 = vand.u32 15, %v4525_v4 }
  0x2c   : > { %7615 = vst [vmem:[#allocation13_spill] sm:$0xff] %v4713_v53  ;;  %v4912_v53 = vshra.s32 %v4515_v1, 5 }
  0x2d   : > { %7620 = vst [vmem:[#allocation14_spill] sm:$0xff] %v7619_v58 }
  0x2e   : > { %7625 = vst [vmem:[#allocation15_spill] sm:$0xff] %v7624_v61  ;;  %v4929_v14 = vshra.s32 %v4912_v53, 1 }
  0x2f   : > { %7626 = vst [vmem:[#allocation16_spill] sm:$0xff] %v4763_v62  ;;  %v408_v62 = vadd.s32 16, %v4517_v2 }
  0x30   : > { %3806 = vmatmul.msk.f32.gmra.mxu0 %vm7431_vm3, %v4681_v46  ;;  %7629 = vst [vmem:[#allocation17_spill] sm:$0xff] %v7628_v8  ;;  %vm486_vm14 = vcmp.eq.s32.totalorder %v4854_v18, %v4929_v14  ;;  %v4960_v8 = vshra.s32 %v4531_v6, 5 }
  0x31   : > { %7632 = vst [vmem:[#allocation18_spill] sm:$0xff] %v7631_v11  ;;  %v4931_v9 = vand.u32 15, %v408_v62 }
  0x32   : > { %3816 = vmatmul.msk.f32.gmra.mxu1 %vm7431_vm3, %v4681_v46  ;;  %3825 = vmatmul.msk.f32.gmra.mxu2 %vm7431_vm3, %v4664_v43  ;;  %7633 = vst [vmem:[#allocation19_spill] sm:$0xff] %v4849_v17  ;;  %v4990_v58 = vshra.s32 %v4960_v8, 1 }
  0x33   : > { %3836 = vmatmul.msk.f32.gmra.mxu3 %vm7431_vm3, %v4681_v46  ;;  %7635 = vst [vmem:[#allocation21_spill] sm:$0xff] %v4912_v53  ;;  %v4951_v53 = vand.u32 15, %v4517_v2 }
  0x34   : > { %7640 = vst [vmem:[#allocation25_spill] sm:$0xff] %v4960_v8 }
  0x38   : > { %3807 = vmatmul.msk.f32.gmra.mxu0 %vm7431_vm3, %v630_v56 }
  0x3a   : > { %3817 = vmatmul.msk.f32.gmra.mxu1 %vm7431_vm3, %v630_v56  ;;  %3826 = vmatmul.msk.f32.gmra.mxu2 %vm7431_vm3, %v4681_v46 }
  0x3b   : > { %3837 = vmatmul.msk.f32.gmra.mxu3 %vm7431_vm3, %v630_v56 }
  0x40   : > { %3808 = vmatmul.msk.f32.gmra.mxu0 %vm7431_vm3, %v631_v0 }
  0x42   : > { %3818 = vmatmul.msk.f32.gmra.mxu1 %vm7431_vm3, %v631_v0  ;;  %3827 = vmatmul.msk.f32.gmra.mxu2 %vm7431_vm3, %v630_v56 }
  0x43   : > { %3838 = vmatmul.msk.f32.gmra.mxu3 %vm7431_vm3, %v631_v0 }
  0x48   : > { %3809 = vmatmul.msk.f32.gmra.mxu0 %vm7431_vm3, %v632_v12 }
  0x4a   : > { %3819 = vmatmul.msk.f32.gmra.mxu1 %vm7431_vm3, %v632_v12  ;;  %3828 = vmatmul.msk.f32.gmra.mxu2 %vm7431_vm3, %v631_v0 }
  0x4b   : > { %3839 = vmatmul.msk.f32.gmra.mxu3 %vm7431_vm3, %v632_v12 }
  0x50   : > { %3810 = vmatmul.msk.f32.gmra.mxu0 %vm7431_vm3, %v4617_v27 }
  0x52   : > { %3829 = vmatmul.msk.f32.gmra.mxu2 %vm7431_vm3, %v632_v12  ;;  %3853 = vmatmul.msk.f32.vlgmr.msrb.gmra.mxu1 %vm7431_vm3, %v4582_v22 }
  0x53   : > { %3840 = vmatmul.msk.f32.gmra.mxu3 %vm7431_vm3, %v4617_v27 }
  0x58   : > { %3843 = vmatmul.msk.f32.vlgmr.msrb.gmra.mxu0 %vm7431_vm3, %v4582_v22 }
  0x5a   : > { %3830 = vmatmul.msk.f32.gmra.mxu2 %vm7431_vm3, %v4617_v27  ;;  %3854 = vmatmul.msk.f32.gmra.mxu1 %vm7431_vm3, %v4650_v34 }
  0x5b   : > { %3873 = vmatmul.msk.f32.vlgmr.msrb.gmra.mxu3 %vm7431_vm3, %v4582_v22 }
  0x60   : > { %3844 = vmatmul.msk.f32.gmra.mxu0 %vm7431_vm3, %v4650_v34 }
  0x62   : > { %3855 = vmatmul.msk.f32.gmra.mxu1 %vm7431_vm3, %v4664_v43  ;;  %3863 = vmatmul.msk.f32.vlgmr.msra.gmra.mxu2 %vm7431_vm3, %v4582_v22  ;;  %v4859_v22 = vshra.s32 %v4849_v17, 1 }
  0x63   : > { %3874 = vmatmul.msk.f32.gmra.mxu3 %vm7431_vm3, %v4650_v34 }
  0x64   : > { %vm487_vm8 = vcmp.eq.s32.totalorder %v4854_v18, %v4859_v22  ;;  %vm431_vm6 = vcmp.eq.s32.totalorder %v4951_v53, %v4859_v22 }
  0x65   : > { %v4868_v29 = vsel %vm487_vm8, 1.0, %v7421_v5 }
  0x66   : > { %7634 = vst [vmem:[#allocation20_spill] sm:$0xff] %v4868_v29 }
  0x68   : > { %3845 = vmatmul.msk.f32.gmra.mxu0 %vm7431_vm3, %v4664_v43 }
  0x6a   : > { %3856 = vmatmul.msk.f32.gmra.mxu1 %vm7431_vm3, %v4681_v46  ;;  %3864 = vmatmul.msk.f32.gmra.mxu2 %vm7431_vm3, %v4650_v34 }
  0x6b   : > { %3875 = vmatmul.msk.f32.gmra.mxu3 %vm7431_vm3, %v4664_v43 }
  0x70   : > { %3846 = vmatmul.msk.f32.gmra.mxu0 %vm7431_vm3, %v4681_v46 }
  0x72   : > { %3857 = vmatmul.msk.f32.gmra.mxu1 %vm7431_vm3, %v630_v56  ;;  %3865 = vmatmul.msk.f32.gmra.mxu2 %vm7431_vm3, %v4664_v43 }
  0x73   : > { %3876 = vmatmul.msk.f32.gmra.mxu3 %vm7431_vm3, %v4681_v46 }
  0x78   : > { %3847 = vmatmul.msk.f32.gmra.mxu0 %vm7431_vm3, %v630_v56 }
  0x7a   : > { %3858 = vmatmul.msk.f32.gmra.mxu1 %vm7431_vm3, %v631_v0  ;;  %3866 = vmatmul.msk.f32.gmra.mxu2 %vm7431_vm3, %v4681_v46 }
  0x7b   : > { %3877 = vmatmul.msk.f32.gmra.mxu3 %vm7431_vm3, %v630_v56 }
  0x80   : > { %3848 = vmatmul.msk.f32.gmra.mxu0 %vm7431_vm3, %v631_v0 }
  0x82   : > { %3859 = vmatmul.msk.f32.gmra.mxu1 %vm7431_vm3, %v632_v12  ;;  %3867 = vmatmul.msk.f32.gmra.mxu2 %vm7431_vm3, %v630_v56  ;;  %v411_v56 = vadd.s32 40, %v4517_v2 }
  0x83   : > { %3878 = vmatmul.msk.f32.gmra.mxu3 %vm7431_vm3, %v631_v0 }
  0x84   : > { %v4909_v5 = vand.u32 15, %v411_v56  ;;  %v7636_v56 = vmov 0.0  }
  0x85   : > { %v4969_v31 = vsel %vm486_vm14, 1.0, %v7636_v56  ;;  %vm454_vm14 = vcmp.eq.s32.totalorder %v4919_v52, %v4929_v14 }
  0x86   : > { %vm470_vm12 = vcmp.eq.s32.totalorder %v4909_v5, %v4929_v14 }
  0x88   : > { %3849 = vmatmul.msk.f32.gmra.mxu0 %vm7431_vm3, %v632_v12 }
  0x8a   : > { %3860 = vmatmul.msk.f32.gmra.mxu1 %vm7431_vm3, %v4617_v27  ;;  %3868 = vmatmul.msk.f32.gmra.mxu2 %vm7431_vm3, %v631_v0 }
  0x8b   : > { %3879 = vmatmul.msk.f32.gmra.mxu3 %vm7431_vm3, %v632_v12 }
  0x90   : > { %3850 = vmatmul.msk.f32.gmra.mxu0 %vm7431_vm3, %v4617_v27 }
  0x92   : > { %3869 = vmatmul.msk.f32.gmra.mxu2 %vm7431_vm3, %v632_v12  ;;  %v410_v12 = vadd.s32 32, %v4517_v2 }
  0x93   : > { %3880 = vmatmul.msk.f32.gmra.mxu3 %vm7431_vm3, %v4617_v27 }
  0x94   : > { %v4915_v45 = vand.u32 15, %v410_v12 }
  0x95   : > { %v4856_v20 = vpop.f32.mrf.mxu0 }
  0x96   : > { %vm463_vm15 = vcmp.eq.s32.totalorder %v4915_v45, %v4859_v22 }
  0x97   : > { %v4861_v24 = vpop.f32.mrf.mxu1  ;;  %v4954_v4 = vsel %vm463_vm15, 1.0, %v7636_v56  ;;  %vm439_vm15 = vcmp.eq.s32.totalorder %v4938_v19, %v4859_v22 }
  0x98   : > { %7639 = vst [vmem:[#allocation24_spill] sm:$0xff] %v4954_v4  ;;  %v4996_v26 = vsel %vm439_vm15, 1.0, %v7636_v56 }
  0x99   : > { %7642 = vst [vmem:[#allocation27_spill] sm:$0xff] %v4996_v26 }
  0x9a   : > { %3870 = vmatmul.msk.f32.gmra.mxu2 %vm7431_vm3, %v4617_v27  ;;  %vm471_vm3 = vcmp.eq.s32.totalorder %v4909_v5, %v4859_v22 }
  0x9b   : > { %v4941_v17 = vsel %vm471_vm3, 1.0, %v7636_v56  ;;  %vm447_vm3 = vcmp.eq.s32.totalorder %v4931_v9, %v4859_v22 }
  0x9c   : > { %7638 = vst [vmem:[#allocation23_spill] sm:$0xff] %v4941_v17  ;;  %v4979_v6 = vsel %vm447_vm3, 1.0, %v7636_v56  ;;  %vm438_vm3 = vcmp.eq.s32.totalorder %v4938_v19, %v4929_v14 }
  0x9d   : > { %v4870_v30 = vpop.f32.mrf.mxu0  ;;  %v738_v32 = vpop.f32.mrf.mxu2 }
  0x9e   : > { %v1044_v33 = vmul.f32 %v4868_v29, %v738_v32  ;;  %v4873_v34 = vpop.f32.mrf.mxu3  ;;  %v4906_v32 = vand.u32 15, %v412_v55 }
  0x9f   : > { %v4875_v35 = vpop.f32.mrf.mxu1 }
  0xa0   : > { %1083 = vmatpush.msra.mxu1 %v1044_v33  ;;  %vm479_vm8 = vcmp.eq.s32.totalorder %v4906_v32, %v4859_v22  ;;  %vm478_vm7 = vcmp.eq.s32.totalorder %v4906_v32, %v4929_v14  ;;  %v996_v8 = vmul.f32 %v4996_v26, %v4875_v35  ;;  %vm481_vm15 = vcmp.eq.s32.totalorder %v4906_v32, %v4990_v58 }
  0xa1   : > { %v4926_v10 = vsel %vm479_vm8, 1.0, %v7636_v56  ;;  %vm455_vm8 = vcmp.eq.s32.totalorder %v4919_v52, %v4859_v22 }
  0xa2   : > { %7637 = vst [vmem:[#allocation22_spill] sm:$0xff] %v4926_v10 }
  0xa5   : > { %v4877_v36 = vpop.f32.mrf.mxu0  ;;  %v4879_v37 = vpop.f32.mrf.mxu2 }
  0xa6   : > { %v4881_v38 = vpop.f32.mrf.mxu3 }
  0xa7   : > { %v4883_v27 = vpop.f32.mrf.mxu1 }
  0xad   : > { %v4885_v39 = vpop.f32.mrf.mxu0  ;;  %v4887_v40 = vpop.f32.mrf.mxu2 }
  0xae   : > { %v4889_v41 = vpop.f32.mrf.mxu3 }
  0xaf   : > { %v726_v42 = vpop.f32.mrf.mxu1 }
  0xb5   : > { %v4891_v43 = vpop.f32.mrf.mxu0  ;;  %v4893_v46 = vpop.f32.mrf.mxu2 }
  0xb6   : > { %v4895_v47 = vpop.f32.mrf.mxu3 }
  0xb7   : > { %v729_v54 = vpop.f32.mrf.mxu1 }
  0xb8   : > { %v1020_v28 = vmul.f32 %v4954_v4, %v729_v54 }
  0xbd   : > { %v4899_v63 = vpop.f32.mrf.mxu0  ;;  %v4901_v0 = vpop.f32.mrf.mxu2 }
  0xbe   : > { %v4904_v13 = vpop.f32.mrf.mxu3 }
  0xbf   : > { %v732_v33 = vpop.f32.mrf.mxu1 }
  0xc0   : > { %v1028_v11 = vmul.f32 %v4941_v17, %v732_v33  ;;  %v622_v17 = vshra.s32 %v4515_v1, 4 }
  0xc5   : > { %v694_v55 = vpop.f32.mrf.mxu0  ;;  %v4923_v3 = vpop.f32.mrf.mxu2 }
  0xc6   : > { %v4935_v12 = vpop.f32.mrf.mxu3 }
  0xc7   : > { %v735_v29 = vpop.f32.mrf.mxu1 }
  0xc8   : > { %v1036_v62 = vmul.f32 %v4926_v10, %v735_v29  ;;  %v4963_v29 = vsel %vm455_vm8, 1.0, %v7636_v56  ;;  %v4966_v10 = vsel %vm478_vm7, 1.0, %v7636_v56  ;;  %vm462_vm7 = vcmp.eq.s32.totalorder %v4915_v45, %v4929_v14 }
  0xc9   : > { %7641 = vst [vmem:[#allocation26_spill] sm:$0xff] %v4963_v29  ;;  %v1012_v61 = vmul.f32 %v4963_v29, %v726_v42  ;;  %v1035_v54 = vmul.f32 %v4966_v10, %v694_v55  ;;  %v4999_v42 = vsel %vm470_vm12, 1.0, %v7636_v56  ;;  %v5004_v55 = vsel %vm431_vm6, 1.0, %v7636_v56 }
  0xca   : > { %1084 = vmatpush.msra.mxu1 %v1036_v62  ;;  %7643 = vst [vmem:[#allocation28_spill] sm:$0xff] %v4999_v42  ;;  %v5011_v22 = vsel %vm462_vm7, 1.0, %v7636_v56  ;;  %vm489_vm12 = vcmp.eq.s32.totalorder %v4854_v18, %v4990_v58  ;;  %vm623_vm8 = vcmp.eq.s32.totalorder %v4517_v2, %v622_v17  ;;  %vm446_vm6 = vcmp.eq.s32.totalorder %v4931_v9, %v4929_v14 }
  0xcb   : > { %7644 = vst [vmem:[#allocation29_spill] sm:$0xff] %v5004_v55  ;;  %v5030_v2 = vsel %vm454_vm14, 1.0, %v7636_v56  ;;  %v5037_v17 = vsel %vm489_vm12, 1.0, %v7636_v56  ;;  %v5040_v35 = vsel %vm623_vm8, 1.0, %v7636_v56  ;;  %vm7491_vm7 = vcmask 523264  }
  0xcc   : > { %1085 = vmatpush.msra.mxu1 %v1028_v11  ;;  %7645 = vst [vmem:[#allocation30_spill] sm:$0xff] %v5011_v22  ;;  %vm473_vm14 = vcmp.eq.s32.totalorder %v4909_v5, %v4990_v58  ;;  %vm430_vm12 = vcmp.eq.s32.totalorder %v4951_v53, %v4929_v14  ;;  %vm465_vm8 = vcmp.eq.s32.totalorder %v4915_v45, %v4990_v58 }
  0xcd   : > { %v697_v33 = vpop.f32.mrf.mxu0  ;;  %v4981_v62 = vpop.f32.mrf.mxu2  ;;  %7647 = vst [vmem:[#allocation32_spill] sm:$0xff] %v5030_v2  ;;  %v5078_v14 = vsel %vm473_vm14, 1.0, %v7636_v56  ;;  %vm449_vm14 = vcmp.eq.s32.totalorder %v4931_v9, %v4990_v58 }
  0xce   : > { %v1043_v11 = vmul.f32 %v4969_v31, %v697_v33  ;;  %v817_v4 = vpop.f32.mrf.mxu3  ;;  %1086 = vmatpush.msra.mxu1 %v1020_v28  ;;  %v1004_v28 = vmul.f32 %v4979_v6, %v4883_v27  ;;  %v5017_v33 = vshra.s32 %v4542_v7, 5  ;;  %v988_v27 = vmul.f32 %v5004_v55, %v4861_v24  ;;  %7648 = vst [vmem:[#allocation33_spill] sm:$0xff] %v5037_v17 }
  0xcf   : > { %v5001_v29 = vpop.f32.mrf.mxu1  ;;  %v1019_v7 = vmul.f32 %v5011_v22, %v4891_v43  ;;  %v5043_v24 = vsel %vm446_vm6, 1.0, %v7636_v56  ;;  %7652 = vst [vmem:[#allocation37_spill] sm:$0xff] %v5078_v14 }
  0xd0   : > { %1063 = vmatpush.msra.mxu0 %v1043_v11  ;;  %1087 = vmatpush.msra.mxu1 %v1012_v61  ;;  %7646 = vst [vmem:[#allocation31_spill] sm:$0xff] %v5017_v33  ;;  %v1027_v61 = vmul.f32 %v4999_v42, %v4899_v63  ;;  %v5050_v43 = vshra.s32 %v5017_v33, 1  ;;  %v5057_v11 = vsel %vm481_vm15, 1.0, %v7636_v56 }
  0xd1   : > { %7649 = vst [vmem:[#allocation34_spill] sm:$0xff] %v5043_v24 }
  0xd2   : > { %1064 = vmatpush.msra.mxu0 %v1035_v54  ;;  %1088 = vmatpush.msra.mxu1 %v1004_v28  ;;  %7650 = vst [vmem:[#allocation35_spill] sm:$0xff] %v5057_v11  ;;  %vm488_vm6 = vcmp.eq.s32.totalorder %v4854_v18, %v5050_v43  ;;  %vm480_vm15 = vcmp.eq.s32.totalorder %v4906_v32, %v5050_v43 }
  0xd4   : > { %1065 = vmatpush.msra.mxu0 %v1027_v61  ;;  %1089 = vmatpush.msra.mxu1 %v996_v8  ;;  %v1011_v8 = vmul.f32 %v5030_v2, %v4885_v39  ;;  %v5063_v61 = vsel %vm438_vm3, 1.0, %v7636_v56  ;;  %v1003_v39 = vmul.f32 %v5043_v24, %v4877_v36  ;;  %vm457_vm3 = vcmp.eq.s32.totalorder %v4919_v52, %v4990_v58 }
  0xd5   : > { %v776_v63 = vpop.f32.mrf.mxu2  ;;  %v5047_v54 = vpop.f32.mrf.mxu0  ;;  %7651 = vst [vmem:[#allocation36_spill] sm:$0xff] %v5063_v61  ;;  %v995_v36 = vmul.f32 %v5063_v61, %v4870_v30  ;;  %v5251_v61 = vshra.s32 %v4703_v51, 5 }
  0xd6   : > { %v820_v28 = vpop.f32.mrf.mxu3  ;;  %1066 = vmatpush.msra.mxu0 %v1019_v7  ;;  %1090 = vmatpush.msra.mxu1 %v988_v27  ;;  %v5083_v27 = vsel %vm430_vm12, 1.0, %v7636_v56  ;;  %v1038_v7 = vmul.f32 %v5057_v11, %v817_v4  ;;  %v5100_v4 = vsel %vm488_vm6, 1.0, %v7636_v56  ;;  %vm472_vm12 = vcmp.eq.s32.totalorder %v4909_v5, %v5050_v43 }
  0xd7   : > { %v1046_v33 = vmul.f32 %v5037_v17, %v820_v28  ;;  %v5068_v55 = vpop.f32.mrf.mxu1  ;;  %3882 = vmatmul.msk.f32.vlgmr.msra.gmra.mxu1 %vm7491_vm7, %v5040_v35  ;;  %7653 = vst [vmem:[#allocation38_spill] sm:$0xff] %v5083_v27  ;;  %v5091_v28 = vsel %vm465_vm8, 1.0, %v7636_v56  ;;  %v987_v30 = vmul.f32 %v5083_v27, %v4856_v20  ;;  %vm441_vm8 = vcmp.eq.s32.totalorder %v4938_v19, %v4990_v58 }
  0xd8   : > { %1067 = vmatpush.msra.mxu0 %v1011_v8  ;;  %7654 = vst [vmem:[#allocation39_spill] sm:$0xff] %v5091_v28  ;;  %v1030_v8 = vmul.f32 %v5078_v14, %v4935_v12  ;;  %v1022_v12 = vmul.f32 %v5091_v28, %v4904_v13  ;;  %v5119_v20 = vsel %vm449_vm14, 1.0, %v7636_v56  ;;  %vm464_vm6 = vcmp.eq.s32.totalorder %v4915_v45, %v5050_v43 }
  0xd9   : > { %1123 = vmatpush.msra.mxu3 %v1046_v33  ;;  %7655 = vst [vmem:[#allocation40_spill] sm:$0xff] %v5100_v4  ;;  %v5105_v33 = vsel %vm457_vm3, 1.0, %v7636_v56  ;;  %vm433_vm3 = vcmp.eq.s32.totalorder %v4951_v53, %v4990_v58  ;;  %vm448_vm14 = vcmp.eq.s32.totalorder %v4931_v9, %v5050_v43 }
  0xda   : > { %1068 = vmatpush.msra.mxu0 %v1003_v39  ;;  %7656 = vst [vmem:[#allocation41_spill] sm:$0xff] %v5105_v33  ;;  %v5114_v39 = vsel %vm480_vm15, 1.0, %v7636_v56  ;;  %v1014_v13 = vmul.f32 %v5105_v33, %v4895_v47  ;;  %vm456_vm15 = vcmp.eq.s32.totalorder %v4919_v52, %v5050_v43  ;;  %v5152_v33 = vsel %vm433_vm3, 1.0, %v7636_v56 }
  0xdb   : > { %1124 = vmatpush.msra.mxu3 %v1038_v7  ;;  %7657 = vst [vmem:[#allocation42_spill] sm:$0xff] %v5114_v39  ;;  %v1037_v47 = vmul.f32 %v5114_v39, %v776_v63 }
  0xdc   : > { %1069 = vmatpush.msra.mxu0 %v995_v36  ;;  %7658 = vst [vmem:[#allocation43_spill] sm:$0xff] %v5119_v20 }
  0xdd   : > { %1125 = vmatpush.msra.mxu3 %v1030_v8  ;;  %v779_v7 = vpop.f32.mrf.mxu2  ;;  %v5116_v14 = vpop.f32.mrf.mxu0  ;;  %v5131_v8 = vsel %vm472_vm12, 1.0, %v7636_v56  ;;  %7662 = vst [vmem:[#allocation47_spill] sm:$0xff] %v5152_v33  ;;  %vm440_vm12 = vcmp.eq.s32.totalorder %v4938_v19, %v5050_v43 }
  0xde   : > { %v1045_v36 = vmul.f32 %v5100_v4, %v779_v7  ;;  %v5124_v11 = vpop.f32.mrf.mxu3  ;;  %1070 = vmatpush.msra.mxu0 %v987_v30  ;;  %7659 = vst [vmem:[#allocation44_spill] sm:$0xff] %v5131_v8  ;;  %v5141_v30 = vsel %vm441_vm8, 1.0, %v7636_v56  ;;  %v5149_v7 = vsel %vm464_vm6, 1.0, %v7636_v56  ;;  %v1029_v58 = vmul.f32 %v5131_v8, %v4981_v62 }
  0xdf   : > { %1126 = vmatpush.msra.mxu3 %v1022_v12  ;;  %v5133_v28 = vpop.f32.mrf.mxu1  ;;  %3881 = vmatmul.msk.f32.vlgmr.msra.gmra.mxu0 %vm7491_vm7, %v5040_v35  ;;  %7660 = vst [vmem:[#allocation45_spill] sm:$0xff] %v5141_v30  ;;  %v1006_v12 = vmul.f32 %v5119_v20, %v4889_v41  ;;  %v998_v63 = vmul.f32 %v5141_v30, %v4881_v38  ;;  %v5170_v62 = vsel %vm448_vm14, 1.0, %v7636_v56 }
  0xe0   : > { %1103 = vmatpush.msrb.mxu2 %v1045_v36  ;;  %7661 = vst [vmem:[#allocation46_spill] sm:$0xff] %v5149_v7  ;;  %v5161_v36 = vsel %vm456_vm15, 1.0, %v7636_v56  ;;  %v1021_v41 = vmul.f32 %v5149_v7, %v4923_v3  ;;  %vm432_vm8 = vcmp.eq.s32.totalorder %v4951_v53, %v5050_v43  ;;  %v5183_v3 = vsel %vm440_vm12, 1.0, %v7636_v56 }
  0xe1   : > { %1127 = vmatpush.msra.mxu3 %v1014_v13  ;;  %7663 = vst [vmem:[#allocation48_spill] sm:$0xff] %v5161_v36  ;;  %v990_v13 = vmul.f32 %v5152_v33, %v4873_v34  ;;  %v5192_v43 = vsel %vm432_vm8, 1.0, %v7636_v56  ;;  %v5221_v7 = vshra.s32 %v4690_v49, 5 }
  0xe2   : > { %1104 = vmatpush.msrb.mxu2 %v1037_v47  ;;  %7664 = vst [vmem:[#allocation49_spill] sm:$0xff] %v5170_v62 }
  0xe3   : > { %1128 = vmatpush.msra.mxu3 %v1006_v12  ;;  %v1013_v12 = vmul.f32 %v5161_v36, %v4901_v0  ;;  %7665 = vst [vmem:[#allocation50_spill] sm:$0xff] %v5183_v3  ;;  %v997_v0 = vmul.f32 %v5183_v3, %v4887_v40  ;;  %v5231_v39 = vshra.s32 %v5221_v7, 1 }
  0xe4   : > { %1105 = vmatpush.msrb.mxu2 %v1029_v58  ;;  %v1005_v58 = vmul.f32 %v5170_v62, %v4893_v46  ;;  %7666 = vst [vmem:[#allocation51_spill] sm:$0xff] %v5192_v43 }
  0xe5   : > { %1129 = vmatpush.msra.mxu3 %v998_v63  ;;  %v5172_v47 = vpop.f32.mrf.mxu0  ;;  %v5174_v38 = vpop.f32.mrf.mxu2  ;;  %v989_v63 = vmul.f32 %v5192_v43, %v4879_v37  ;;  %v5213_v37 = vshra.s32 %v4669_v44, 5  ;;  %7668 = vst [vmem:[#allocation53_spill] sm:$0xff] %v5221_v7  ;;  %vm482_vm12 = vcmp.eq.s32.totalorder %v4906_v32, %v5231_v39  ;;  %vm490_vm8 = vcmp.eq.s32.totalorder %v4854_v18, %v5231_v39 }
  0xe6   : > { %v5180_v30 = vpop.f32.mrf.mxu3  ;;  %1106 = vmatpush.msrb.mxu2 %v1021_v41  ;;  %7672 = vst [vmem:[#allocation57_spill] sm:$0xff] %v5251_v61  ;;  %v5257_v2 = vsel %vm482_vm12, 1.0, %v7636_v56 }
  0xe7   : > { %1130 = vmatpush.msra.mxu3 %v990_v13  ;;  %v5185_v34 = vpop.f32.mrf.mxu1  ;;  %7667 = vst [vmem:[#allocation52_spill] sm:$0xff] %v5213_v37  ;;  %v427_v33 = vshra.s32 %v5213_v37, 1 }
  0xe8   : > { %1107 = vmatpush.msrb.mxu2 %v1013_v12  ;;  %3884 = vmatmul.msk.f32.vlgmr.msra.gmra.mxu3 %vm7491_vm7, %v5040_v35 }
  0xe9   : > { %vm491_vm6 = vcmp.eq.s32.totalorder %v4854_v18, %v427_v33  ;;  %vm483_vm3 = vcmp.eq.s32.totalorder %v4906_v32, %v427_v33  ;;  %vm475_vm15 = vcmp.eq.s32.totalorder %v4909_v5, %v427_v33  ;;  %vm467_vm14 = vcmp.eq.s32.totalorder %v4915_v45, %v427_v33 }
  0xea   : > { %1108 = vmatpush.msrb.mxu2 %v1005_v58  ;;  %v5228_v44 = vsel %vm491_vm6, 1.0, %v7636_v56  ;;  %v5237_v49 = vsel %vm483_vm3, 1.0, %v7636_v56  ;;  %v5246_v7 = vsel %vm475_vm15, 1.0, %v7636_v56  ;;  %vm459_vm6 = vcmp.eq.s32.totalorder %v4919_v52, %v427_v33 }
  0xeb   : > { %7669 = vst [vmem:[#allocation54_spill] sm:$0xff] %v5228_v44  ;;  %v5254_v24 = vsel %vm467_vm14, 1.0, %v7636_v56  ;;  %vm451_vm3 = vcmp.eq.s32.totalorder %v4931_v9, %v427_v33  ;;  %vm474_vm15 = vcmp.eq.s32.totalorder %v4909_v5, %v5231_v39  ;;  %v5268_v51 = vsel %vm459_vm6, 1.0, %v7636_v56 }
  0xec   : > { %1109 = vmatpush.msrb.mxu2 %v997_v0  ;;  %7670 = vst [vmem:[#allocation55_spill] sm:$0xff] %v5237_v49  ;;  %vm466_vm14 = vcmp.eq.s32.totalorder %v4915_v45, %v5231_v39  ;;  %v5281_v26 = vsel %vm451_vm3, 1.0, %v7636_v56  ;;  %v5284_v42 = vsel %vm474_vm15, 1.0, %v7636_v56  ;;  %vm435_vm12 = vcmp.eq.s32.totalorder %v4951_v53, %v427_v33 }
  0xed   : > { %v5198_v41 = vpop.f32.mrf.mxu0  ;;  %v5200_v13 = vpop.f32.mrf.mxu2  ;;  %7671 = vst [vmem:[#allocation56_spill] sm:$0xff] %v5246_v7  ;;  %vm450_vm3 = vcmp.eq.s32.totalorder %v4931_v9, %v5231_v39  ;;  %vm442_vm15 = vcmp.eq.s32.totalorder %v4938_v19, %v5231_v39 }
  0xee   : > { %v5202_v46 = vpop.f32.mrf.mxu3  ;;  %1110 = vmatpush.msrb.mxu2 %v989_v63 }
  0xef   : > { %v893_v12 = vpop.f32.mrf.mxu1  ;;  %3883 = vmatmul.msk.f32.vlgmr.msrb.gmra.mxu2 %vm7491_vm7, %v5040_v35  ;;  %vm443_vm7 = vcmp.eq.s32.totalorder %v4938_v19, %v427_v33  ;;  %v5310_v33 = vsel %vm435_vm12, 1.0, %v7636_v56  ;;  %vm434_vm12 = vcmp.eq.s32.totalorder %v4951_v53, %v5231_v39 }
  0xf5   : > { %v5206_v62 = vpop.f32.mrf.mxu0  ;;  %v5208_v36 = vpop.f32.mrf.mxu2 }
  0xf6   : > { %v5210_v40 = vpop.f32.mrf.mxu3 }
  0xf7   : > { %v896_v58 = vpop.f32.mrf.mxu1 }
  0xfd   : > { %v855_v0 = vpop.f32.mrf.mxu0  ;;  %v5215_v43 = vpop.f32.mrf.mxu2 }
  0xfe   : > { %v5217_v3 = vpop.f32.mrf.mxu3 }
  0xff   : > { %v899_v63 = vpop.f32.mrf.mxu1 }
 0x100   : > { %v1040_v27 = vmul.f32 %v5237_v49, %v899_v63  ;;  %v1024_v49 = vmul.f32 %v5254_v24, %v893_v12  ;;  %v1016_v12 = vmul.f32 %v5268_v51, %v5185_v34  ;;  %v1008_v34 = vmul.f32 %v5281_v26, %v5133_v28 }
 0x105   : > { %v858_v8 = vpop.f32.mrf.mxu0  ;;  %v5225_v20 = vpop.f32.mrf.mxu2 }
 0x106   : > { %v5234_v4 = vpop.f32.mrf.mxu3  ;;  %v1039_v22 = vmul.f32 %v5257_v2, %v858_v8  ;;  %v5292_v8 = vshra.s32 %v4746_v60, 5  ;;  %v1031_v60 = vmul.f32 %v5284_v42, %v855_v0 }
 0x107   : > { %v902_v37 = vpop.f32.mrf.mxu1 }
 0x108   : > { %v1048_v17 = vmul.f32 %v5228_v44, %v902_v37  ;;  %v5260_v37 = vsel %vm490_vm8, 1.0, %v7636_v56  ;;  %v1032_v44 = vmul.f32 %v5246_v7, %v896_v58  ;;  %vm458_vm8 = vcmp.eq.s32.totalorder %v4919_v52, %v5231_v39  ;;  %7673 = vst [vmem:[#allocation58_spill] sm:$0xff] %v5292_v8 }
 0x109   : > { %v5327_v0 = vshra.s32 %v5292_v8, 1  ;;  %v5347_v8 = vsel %vm442_vm15, 1.0, %v7636_v56  ;;  %v5360_v39 = vsel %vm434_vm12, 1.0, %v7636_v56 }
 0x10a   : > { %1163 = vmatpush.msrb.mxu1 %v1048_v17  ;;  %v991_v21 = vmul.f32 %v5360_v39, %v5047_v54 }
 0x10b   : > { %vm484_vm15 = vcmp.eq.s32.totalorder %v4906_v32, %v5327_v0 }
 0x10c   : > { %1164 = vmatpush.msrb.mxu1 %v1040_v27  ;;  %v5278_v27 = vshra.s32 %v5251_v61, 1  ;;  %v992_v61 = vmul.f32 %v5310_v33, %v5001_v29 }
 0x10d   : > { %v861_v17 = vpop.f32.mrf.mxu0  ;;  %v5270_v63 = vpop.f32.mrf.mxu2 }
 0x10e   : > { %v1047_v58 = vmul.f32 %v5260_v37, %v861_v17  ;;  %v981_v7 = vpop.f32.mrf.mxu3  ;;  %1165 = vmatpush.msrb.mxu1 %v1032_v44  ;;  %v5297_v44 = vsel %vm443_vm7, 1.0, %v7636_v56  ;;  %v5300_v17 = vsel %vm466_vm14, 1.0, %v7636_v56  ;;  %vm493_vm6 = vcmp.eq.s32.totalorder %v4854_v18, %v5278_v27 }
 0x10f   : > { %vm485_vm7 = vcmp.eq.s32.totalorder %v4906_v32, %v5278_v27  ;;  %v1023_v28 = vmul.f32 %v5300_v17, %v5206_v62  ;;  %vm477_vm14 = vcmp.eq.s32.totalorder %v4909_v5, %v5278_v27  ;;  %vm445_vm12 = vcmp.eq.s32.totalorder %v4938_v19, %v5278_v27 }
 0x110   : > { %1143 = vmatpush.msrb.mxu0 %v1047_v58  ;;  %1166 = vmatpush.msrb.mxu1 %v1024_v49  ;;  %v5313_v49 = vsel %vm458_vm8, 1.0, %v7636_v56  ;;  %v1000_v58 = vmul.f32 %v5297_v44, %v5068_v55  ;;  %vm469_vm8 = vcmp.eq.s32.totalorder %v4915_v45, %v5278_v27 }
 0x111   : > { %7674 = vst [vmem:[#allocation59_spill] sm:$0xff] %v5313_v49  ;;  %v1015_v62 = vmul.f32 %v5313_v49, %v5198_v41  ;;  %v5355_v49 = vsel %vm477_vm14, 1.0, %v7636_v56  ;;  %vm453_vm14 = vcmp.eq.s32.totalorder %v4931_v9, %v5278_v27 }
 0x112   : > { %1144 = vmatpush.msrb.mxu0 %v1039_v22  ;;  %1167 = vmatpush.msrb.mxu1 %v1016_v12  ;;  %v5324_v22 = vsel %vm493_vm6, 1.0, %v7636_v56  ;;  %v5330_v12 = vsel %vm450_vm3, 1.0, %v7636_v56  ;;  %vm492_vm6 = vcmp.eq.s32.totalorder %v4854_v18, %v5327_v0  ;;  %vm461_vm3 = vcmp.eq.s32.totalorder %v4919_v52, %v5278_v27 }
 0x113   : > { %v1007_v41 = vmul.f32 %v5330_v12, %v5172_v47  ;;  %v999_v47 = vmul.f32 %v5347_v8, %v5116_v14  ;;  %v7676_v18 = vmov 1.0   ;;  %v5382_v14 = vsel %vm492_vm6, 1.0, %v7636_v56 }
 0x114   : > { %1145 = vmatpush.msrb.mxu0 %v1031_v60  ;;  %1168 = vmatpush.msrb.mxu1 %v1008_v34  ;;  %v5341_v34 = vsel %vm485_vm7, 1.0, %v7636_v56  ;;  %vm7675_vm7 = vcmask 523264   ;;  %7677 = vst [vmem:[#allocation60_spill] sm:$0xff] %v5382_v14  ;;  %v5394_v32 = vsel %vm461_vm3, 1.0, %v7636_v56  ;;  %v5415_v23 = vsel %vm453_vm14, 1.0, %v7636_v56 }
 0x115   : > { %v940_v55 = vpop.f32.mrf.mxu2  ;;  %7678 = vst [vmem:[#allocation61_spill] sm:$0xff] %v5394_v32  ;;  %v1018_v48 = vmul.f32 %v5394_v32, %v5210_v40  ;;  %vm460_vm6 = vcmp.eq.s32.totalorder %v4919_v52, %v5327_v0  ;;  %vm7684_vm3 = vcmask 130048   ;;  %v7782_v32 = vld [vmem:[#allocation24_spill] sm:$0xff] }
 0x116   : > { %v984_v60 = vpop.f32.mrf.mxu3  ;;  %1146 = vmatpush.msrb.mxu0 %v1023_v28  ;;  %1169 = vmatpush.msrb.mxu1 %v1000_v58  ;;  %v1042_v58 = vmul.f32 %v5341_v34, %v981_v7  ;;  %v1034_v7 = vmul.f32 %v5355_v49, %v5234_v4  ;;  %v5406_v28 = vsel %vm484_vm15, 1.0, %v7636_v56  ;;  %7679 = vst [vmem:[#allocation62_spill] sm:$0xff] %v5415_v23 }
 0x117   : > { %v1050_v29 = vmul.f32 %v5324_v22, %v984_v60  ;;  %v1041_v40 = vmul.f32 %v5406_v28, %v940_v55  ;;  %v7709_v55 = vld [vmem:[#allocation18_spill] sm:$0xff] }
 0x118   : > { %1147 = vmatpush.msrb.mxu0 %v1015_v62  ;;  %1170 = vmatpush.msrb.mxu1 %v992_v61  ;;  %v5370_v61 = vsel %vm469_vm8, 1.0, %v7636_v56  ;;  %v5421_v62 = vld [vmem:[%s5389_s12] sm:$0xff]  ;;  %vm437_vm8 = vcmp.eq.s32.totalorder %v4951_v53, %v5278_v27 }
 0x119   : > { %1203 = vmatpush.msrb.mxu3 %v1050_v29  ;;  %3886 = vmatmul.msk.f32.vlgmr.msrb.gmra.mxu1 %vm7675_vm7, %v5040_v35  ;;  %v1026_v4 = vmul.f32 %v5370_v61, %v5217_v3  ;;  %v5455_v27 = vsel %vm437_vm8, 1.0, %v7636_v56 }
 0x11a   : > { %1148 = vmatpush.msrb.mxu0 %v1007_v41  ;;  %3899 = vmatpush.msk.msra.mxu1 %vm4577_vm2, %v7676_v18  ;;  %vm476_vm2 = vcmp.eq.s32.totalorder %v4909_v5, %v5327_v0  ;;  %v1010_v5 = vmul.f32 %v5415_v23, %v5202_v46  ;;  %7685 = vst [vmem:[#allocation66_spill] sm:$0xff] %v5455_v27  ;;  %v5467_v46 = vsel %vm460_vm6, 1.0, %v7636_v56  ;;  %v5548_v41 = vld [vmem:[%s5389_s12 + $0x18] sm:$0xff] }
 0x11b   : > { %1204 = vmatpush.msrb.mxu3 %v1042_v58  ;;  %v5431_v60 = vsel %vm476_vm2, 1.0, %v7636_v56  ;;  %7686 = vst [vmem:[#allocation67_spill] sm:$0xff] %v5467_v46  ;;  %v994_v16 = vmul.f32 %v5455_v27, %v5124_v11  ;;  %v1017_v50 = vmul.f32 %v5467_v46, %v5215_v43  ;;  %v7695_v43 = vld [vmem:[#allocation14_spill] sm:$0xff]  ;;  %v5559_v58 = vld [vmem:[%s5389_s12 + $0x20] sm:$0xff] }
 0x11c   : > { %1149 = vmatpush.msrb.mxu0 %v999_v47  ;;  %3900 = vmatpush.msk.msra.mxu1 %vm4585_vm4, %v7676_v18  ;;  %vm468_vm4 = vcmp.eq.s32.totalorder %v4915_v45, %v5327_v0  ;;  %7680 = vst [vmem:[#allocation63_spill] sm:$0xff] %v5431_v60  ;;  %v5439_v45 = vsel %vm445_vm12, 1.0, %v7636_v56  ;;  %v1033_v15 = vmul.f32 %v5431_v60, %v5270_v63  ;;  %vm7696_vm14 = vnez %v7695_v43  ;;  %vm7700_vm12 = vmmov %vm7684_vm3  ;;  %v7705_v63 = vld [vmem:[#allocation10_spill] sm:$0xff]  ;;  %v5570_v47 = vld [vmem:[%s5389_s12 + $0x28] sm:$0xff] }
 0x11d   : > { %1205 = vmatpush.msrb.mxu3 %v1034_v7  ;;  %v943_v54 = vpop.f32.mrf.mxu2  ;;  %7682 = vst [vmem:[#allocation64_spill] sm:$0xff] %v5439_v45  ;;  %v5450_v29 = vsel %vm468_vm4, 1.0, %v7636_v56  ;;  %v1002_v52 = vmul.f32 %v5439_v45, %v5180_v30  ;;  %vm7701_vm4 = vmmov %vm7684_vm3  ;;  %vm7706_vm6 = vnez %v7705_v63  ;;  %v7781_v45 = vld [vmem:[#allocation23_spill] sm:$0xff] }
 0x11e   : > { %3939 = vmatpush.msk.msrb.mxu1 %vm4685_vm9, %v7676_v18  ;;  %v1049_v3 = vmul.f32 %v5382_v14, %v943_v54  ;;  %1150 = vmatpush.msrb.mxu0 %v991_v21  ;;  %vm7681_vm9 = vmmov %vm7675_vm7  ;;  %7683 = vst [vmem:[#allocation65_spill] sm:$0xff] %v5450_v29  ;;  %vm452_vm7 = vcmp.eq.s32.totalorder %v4931_v9, %v5327_v0  ;;  %v5592_v21 = vld [vmem:[%s5389_s12 + $0x38] sm:$0xff] }
 0x11f   : > { %1206 = vmatpush.msrb.mxu3 %v1026_v4  ;;  %3885 = vmatmul.msk.f32.vlgmr.msrb.gmra.mxu0 %vm7681_vm9, %v5040_v35  ;;  %v1025_v9 = vmul.f32 %v5450_v29, %v5225_v20  ;;  %v5482_v30 = vsel %vm452_vm7, 1.0, %v7636_v56  ;;  %v7693_v20 = vld [vmem:[#allocation8_spill] sm:$0xff]  ;;  %vm7699_vm2 = vmmov %vm7681_vm9  ;;  %vm7710_vm7 = vnez %v7709_v55 }
 0x120   : > { %1183 = vmatpush.msra.mxu2 %v1049_v3  ;;  %3889 = vmatpush.msk.msra.mxu0 %vm4562_vm0, %v7676_v18  ;;  %vm444_vm0 = vcmp.eq.s32.totalorder %v4938_v19, %v5327_v0  ;;  %7687 = vst [vmem:[#allocation68_spill] sm:$0xff] %v5482_v30  ;;  %v5489_v19 = vld [vmem:[%s5389_s12 + $0x8] sm:$0xff]  ;;  %vm7694_vm15 = vnez %v7693_v20 }
 0x121   : > { %1207 = vmatpush.msrb.mxu3 %v1018_v48  ;;  %3901 = vmatmul.msk.f32.vlgmr.msra.gmra.mxu1 %vm7684_vm3, %v5421_v62  ;;  %v5495_v57 = vsel %vm444_vm0, 1.0, %v7636_v56  ;;  %vm7711_vm0 = vmmov %vm7701_vm4 }
 0x122   : > { %1184 = vmatpush.msra.mxu2 %v1041_v40  ;;  %3890 = vmatpush.msk.msra.mxu0 %vm4567_vm1, %v7676_v18  ;;  %vm436_vm1 = vcmp.eq.s32.totalorder %v4951_v53, %v5327_v0  ;;  %7688 = vst [vmem:[#allocation69_spill] sm:$0xff] %v5495_v57  ;;  %v1009_v53 = vmul.f32 %v5482_v30, %v5208_v36  ;;  %v7707_v0 = vld [vmem:[#allocation17_spill] sm:$0xff]  ;;  %v7780_v30 = vld [vmem:[#allocation22_spill] sm:$0xff] }
 0x123   : > { %1208 = vmatpush.msrb.mxu3 %v1010_v5  ;;  %3940 = vmatpush.msk.msrb.mxu1 %vm4698_vm10, %v7676_v18  ;;  %vm7689_vm10 = vmmov %vm7684_vm3  ;;  %v5504_v11 = vsel %vm436_vm1, 1.0, %v7636_v56  ;;  %v1001_v59 = vmul.f32 %v5495_v57, %v5200_v13  ;;  %v7697_v13 = vld [vmem:[#allocation15_spill] sm:$0xff] }
 0x124   : > { %1185 = vmatpush.msra.mxu2 %v1033_v15  ;;  %3929 = vmatpush.msk.msrb.mxu0 %vm4724_vm11, %v7676_v18  ;;  %vm7690_vm11 = vmmov %vm7681_vm9  ;;  %7691 = vst [vmem:[#allocation70_spill] sm:$0xff] %v5504_v11  ;;  %v993_v36 = vmul.f32 %v5504_v11, %v5174_v38  ;;  %v7702_v38 = vld [vmem:[#allocation9_spill] sm:$0xff] }
 0x125   : > { %1209 = vmatpush.msrb.mxu3 %v1002_v52  ;;  %vm7703_vm8 = vnez %v7702_v38  ;;  %vm7704_vm9 = vmmov %vm7684_vm3 }
 0x126   : > { %1186 = vmatpush.msra.mxu2 %v1025_v9  ;;  %3930 = vmatpush.msk.msrb.mxu0 %vm4737_vm13, %v7676_v18  ;;  %vm7692_vm13 = vmmov %vm7684_vm3  ;;  %vm7708_vm3 = vnez %v7707_v0 }
 0x127   : > { %1210 = vmatpush.msrb.mxu3 %v994_v16  ;;  %3891 = vmatmul.msk.f32.vlgmr.msra.gmra.mxu0 %vm7689_vm10, %v5421_v62  ;;  %vm7712_vm1 = vmmov %vm7711_vm0 }
 0x128   : > { %3888 = vmatmul.msk.f32.vlgmr.msrb.gmra.mxu3 %vm7690_vm11, %v5040_v35  ;;  %1187 = vmatpush.msra.mxu2 %v1017_v50  ;;  %vm7713_vm10 = vmmov %vm7711_vm0 }
 0x129   : > { %3902 = vmatmul.msk.f32.gmra.mxu1 %vm7692_vm13, %v5489_v19  ;;  %3919 = vmatpush.msk.msra.mxu3 %vm4597_vm5, %v7676_v18  ;;  %vm7698_vm5 = vnez %v7697_v13  ;;  %vm7714_vm11 = vmmov %vm7711_vm0 }
 0x12a   : > { %1188 = vmatpush.msra.mxu2 %v1009_v53  ;;  %vm7715_vm13 = vmmov %vm7711_vm0 }
 0x12b   : > { %3920 = vmatpush.msk.msra.mxu3 %vm7694_vm15, %v7676_v18  ;;  %vm7716_vm15 = vmmov %vm7711_vm0 }
 0x12c   : > { %1189 = vmatpush.msra.mxu2 %v1001_v59 }
 0x12d   : > { %3959 = vmatpush.msk.msrb.mxu3 %vm7696_vm14, %v7676_v18  ;;  %vm7717_vm14 = vmmov %vm7711_vm0 }
 0x12e   : > { %1190 = vmatpush.msra.mxu2 %v993_v36 }
 0x12f   : > { %3960 = vmatpush.msk.msrb.mxu3 %vm7698_vm5, %v7676_v18  ;;  %3887 = vmatmul.msk.f32.vlgmr.msra.gmra.mxu2 %vm7699_vm2, %v5040_v35  ;;  %vm7718_vm5 = vmmov %vm7711_vm0 }
 0x130   : > { %3892 = vmatmul.msk.f32.gmra.mxu0 %vm7700_vm12, %v5489_v19  ;;  %3921 = vmatmul.msk.f32.vlgmr.msra.gmra.mxu3 %vm7701_vm4, %v5421_v62  ;;  %vm7719_vm2 = vmmov %vm7711_vm0 }
 0x131   : > { %3909 = vmatpush.msk.msrb.mxu2 %vm7703_vm8, %v7676_v18  ;;  %3903 = vmatmul.msk.f32.gmra.mxu1 %vm7704_vm9, %v5522_v25  ;;  %vm7720_vm12 = vmmov %vm7711_vm0 }
 0x132   : > { %vm7721_vm4 = vmmov %vm7711_vm0 }
 0x133   : > { %3910 = vmatpush.msk.msrb.mxu2 %vm7706_vm6, %v7676_v18  ;;  %vm7722_vm8 = vmmov %vm7711_vm0 }
 0x134   : > { %vm7723_vm9 = vmmov %vm7711_vm0 }
 0x135   : > { %3949 = vmatpush.msk.msra.mxu2 %vm7708_vm3, %v7676_v18  ;;  %vm7724_vm6 = vmmov %vm7711_vm0 }
 0x136   : > { %vm7725_vm3 = vmmov %vm7711_vm0 }
 0x137   : > { %3950 = vmatpush.msk.msra.mxu2 %vm7710_vm7, %v7676_v18  ;;  %v5581_v18 = vld [vmem:[%s5389_s12 + $0x30] sm:$0xff]  ;;  %vm7726_vm7 = vmmov %vm7711_vm0 }
 0x138   : > { %3893 = vmatmul.msk.f32.gmra.mxu0 %vm7711_vm0, %v5522_v25  ;;  %3911 = vmatmul.msk.f32.vlgmr.msrb.gmra.mxu2 %vm7712_vm1, %v5421_v62  ;;  %vm7727_vm1 = vmmov %vm7711_vm0 }
 0x139   : > { %3922 = vmatmul.msk.f32.gmra.mxu3 %vm7713_vm10, %v5489_v19  ;;  %3904 = vmatmul.msk.f32.gmra.mxu1 %vm7714_vm11, %v5548_v41  ;;  %vm7728_vm10 = vmmov %vm7711_vm0 }
 0x13a   : > { %vm7729_vm11 = vmmov %vm7711_vm0 }
 0x140   : > { %3894 = vmatmul.msk.f32.gmra.mxu0 %vm7715_vm13, %v5548_v41  ;;  %3912 = vmatmul.msk.f32.gmra.mxu2 %vm7716_vm15, %v5489_v19  ;;  %vm7731_vm13 = vmmov %vm7711_vm0 }
 0x141   : > { %3923 = vmatmul.msk.f32.gmra.mxu3 %vm7717_vm14, %v5522_v25  ;;  %3905 = vmatmul.msk.f32.gmra.mxu1 %vm7718_vm5, %v5559_v58  ;;  %vm7732_vm15 = vmmov %vm7711_vm0 }
 0x142   : > { %vm7733_vm14 = vmmov %vm7711_vm0 }
 0x143   : > { %vm7734_vm5 = vmmov %vm7711_vm0 }
 0x148   : > { %3895 = vmatmul.msk.f32.gmra.mxu0 %vm7719_vm2, %v5559_v58  ;;  %3913 = vmatmul.msk.f32.gmra.mxu2 %vm7720_vm12, %v5522_v25  ;;  %vm7735_vm2 = vmmov %vm7711_vm0 }
 0x149   : > { %3924 = vmatmul.msk.f32.gmra.mxu3 %vm7721_vm4, %v5548_v41  ;;  %3906 = vmatmul.msk.f32.gmra.mxu1 %vm7722_vm8, %v5570_v47  ;;  %vm7736_vm12 = vmmov %vm7711_vm0 }
 0x14a   : > { %vm7737_vm4 = vmmov %vm7711_vm0 }
 0x14b   : > { %vm7738_vm8 = vmmov %vm7711_vm0 }
 0x150   : > { %3896 = vmatmul.msk.f32.gmra.mxu0 %vm7723_vm9, %v5570_v47  ;;  %3914 = vmatmul.msk.f32.gmra.mxu2 %vm7724_vm6, %v5548_v41  ;;  %vm7740_vm9 = vmmov %vm7711_vm0 }
 0x151   : > { %3925 = vmatmul.msk.f32.gmra.mxu3 %vm7725_vm3, %v5559_v58  ;;  %3907 = vmatmul.msk.f32.gmra.mxu1 %vm7726_vm7, %v5581_v18  ;;  %vm7741_vm6 = vmmov %vm7711_vm0 }
 0x152   : > { %vm7742_vm3 = vmmov %vm7711_vm0 }
 0x153   : > { %vm7743_vm7 = vmmov %vm7711_vm0 }
 0x154   : > { %v1092_v7 = vpop.f32.mrf.mxu1 }
 0x155   : > { %1216 = vst [vmem:[#allocation2] sm:$0xf] %v1092_v7 }
 0x158   : > { %3897 = vmatmul.msk.f32.gmra.mxu0 %vm7711_vm0, %v5581_v18  ;;  %3915 = vmatmul.msk.f32.gmra.mxu2 %vm7727_vm1, %v5559_v58  ;;  %vm7744_vm1 = vmmov %vm7711_vm0 }
 0x159   : > { %3926 = vmatmul.msk.f32.gmra.mxu3 %vm7728_vm10, %v5570_v47  ;;  %3908 = vmatmul.msk.f32.gmra.mxu1 %vm7729_vm11, %v5592_v21  ;;  %vm7745_vm10 = vmmov %vm7711_vm0 }
 0x15a   : > { %vm7746_vm11 = vmmov %vm7711_vm0 }
 0x15c   : > { %v5602_v4 = vld [vmem:[#allocation2] sm:$0xff]  ;;  %v1072_v54 = vpop.f32.mrf.mxu0 }
 0x15d   : > { %7730 = vst [vmem:[#allocation8_spill] sm:$0xff] %v5602_v4  ;;  %2464 = vrot.lane.b32.xlu2 %v5602_v4, %s4464_s13  ;;  %2036 = vrot.lane.b32.xlu0 %v5602_v4, %s4465_s14 }
 0x15e   : > { %1215 = vst [vmem:[#allocation2 + $0x30] sm:$0xf] %v1072_v54  ;;  %1915 = vrot.lane.b32.xlu1 %v5602_v4, %s4466_s15 }
 0x160   : > { %3898 = vmatmul.msk.f32.gmra.mxu0 %vm7731_vm13, %v5592_v21  ;;  %3916 = vmatmul.msk.f32.gmra.mxu2 %vm7732_vm15, %v5570_v47  ;;  %vm7748_vm13 = vmmov %vm7711_vm0 }
 0x161   : > { %3927 = vmatmul.msk.f32.gmra.mxu3 %vm7733_vm14, %v5581_v18  ;;  %3941 = vmatmul.msk.f32.vlgmr.msrb.gmra.mxu1 %vm7734_vm5, %v5421_v62  ;;  %vm7749_vm15 = vmmov %vm7711_vm0 }
 0x162   : > { %vm7750_vm14 = vmmov %vm7711_vm0 }
 0x163   : > { %vm7751_vm5 = vmmov %vm7711_vm0 }
 0x165   : > { %2674 = vrot.lane.b32.xlu2 %v5602_v4, %s4467_s16  ;;  %2367 = vrot.lane.b32.xlu0 %v5602_v4, %s4468_s17  ;;  %v5632_v3 = vld [vmem:[#allocation2 + $0x30] sm:$0xff] }
 0x166   : > { %2577 = vrot.lane.b32.xlu1 %v5602_v4, %s4469_s18  ;;  %7739 = vst [vmem:[#allocation14_spill] sm:$0xff] %v5632_v3 }
 0x168   : > { %3917 = vmatmul.msk.f32.gmra.mxu2 %vm7735_vm2, %v5581_v18  ;;  %3931 = vmatmul.msk.f32.vlgmr.msrb.gmra.mxu0 %vm7736_vm12, %v5421_v62  ;;  %vm7753_vm2 = vmmov %vm7711_vm0 }
 0x169   : > { %3928 = vmatmul.msk.f32.gmra.mxu3 %vm7737_vm4, %v5592_v21  ;;  %3942 = vmatmul.msk.f32.gmra.mxu1 %vm7738_vm8, %v5489_v19  ;;  %vm7754_vm12 = vmmov %vm7711_vm0 }
 0x16a   : > { %vm7755_vm4 = vmmov %vm7711_vm0 }
 0x16b   : > { %v1132_v48 = vpop.f32.mrf.mxu3  ;;  %vm7756_vm8 = vmmov %vm7711_vm0 }
 0x16c   : > { %1218 = vst [vmem:[#allocation2 + $0x18] sm:$0xf] %v1132_v48 }
 0x16d   : > { %2133 = vrot.lane.b32.xlu2 %v5602_v4, %s4470_s19  ;;  %1911 = vrot.lane.b32.xlu0 %v5632_v3, %s4466_s15 }
 0x16e   : > { %2246 = vrot.lane.b32.xlu1 %v5602_v4, %s4471_s20  ;;  %v7776_v4 = vld [vmem:[#allocation20_spill] sm:$0xff] }
 0x170   : > { %3918 = vmatmul.msk.f32.gmra.mxu2 %vm7740_vm9, %v5592_v21  ;;  %3932 = vmatmul.msk.f32.gmra.mxu0 %vm7741_vm6, %v5489_v19  ;;  %vm7757_vm9 = vmmov %vm7711_vm0 }
 0x171   : > { %3961 = vmatmul.msk.f32.vlgmr.msrb.gmra.mxu3 %vm7742_vm3, %v5421_v62  ;;  %3943 = vmatmul.msk.f32.gmra.mxu1 %vm7743_vm7, %v5522_v25  ;;  %vm7758_vm6 = vmmov %vm7711_vm0 }
 0x172   : > { %v1112_v40 = vpop.f32.mrf.mxu2  ;;  %vm7759_vm3 = vmmov %vm7711_vm0 }
 0x173   : > { %1217 = vst [vmem:[#allocation2 + $0x58] sm:$0xf] %v1112_v40  ;;  %v5662_v5 = vld [vmem:[#allocation2 + $0x18] sm:$0xff]  ;;  %vm7760_vm7 = vmmov %vm7711_vm0 }
 0x174   : > { %7747 = vst [vmem:[#allocation15_spill] sm:$0xff] %v5662_v5 }
 0x175   : > { %2363 = vrot.lane.b32.xlu2 %v5632_v3, %s4468_s17  ;;  %2573 = vrot.lane.b32.xlu0 %v5632_v3, %s4469_s18 }
 0x176   : > { %2032 = vrot.lane.b32.xlu1 %v5632_v3, %s4465_s14 }
 0x178   : > { %3933 = vmatmul.msk.f32.gmra.mxu0 %vm7711_vm0, %v5522_v25  ;;  %3951 = vmatmul.msk.f32.vlgmr.msra.gmra.mxu2 %vm7744_vm1, %v5421_v62  ;;  %vm7761_vm1 = vmmov %vm7711_vm0 }
 0x179   : > { %3962 = vmatmul.msk.f32.gmra.mxu3 %vm7745_vm10, %v5489_v19  ;;  %3944 = vmatmul.msk.f32.gmra.mxu1 %vm7746_vm11, %v5548_v41  ;;  %vm7762_vm10 = vmmov %vm7711_vm0 }
 0x17a   : > { %v5678_v62 = vld [vmem:[#allocation2 + $0x58] sm:$0xff]  ;;  %vm7763_vm11 = vmmov %vm7711_vm0 }
 0x17b   : > { %7752 = vst [vmem:[#allocation9_spill] sm:$0xff] %v5678_v62 }
 0x17d   : > { %2375 = vrot.lane.b32.xlu2 %v5662_v5, %s4468_s17  ;;  %2242 = vrot.lane.b32.xlu0 %v5632_v3, %s4471_s20 }
 0x17e   : > { %2460 = vrot.lane.b32.xlu1 %v5632_v3, %s4464_s13 }
 0x180   : > { %3934 = vmatmul.msk.f32.gmra.mxu0 %vm7748_vm13, %v5548_v41  ;;  %3952 = vmatmul.msk.f32.gmra.mxu2 %vm7749_vm15, %v5489_v19  ;;  %vm7764_vm13 = vmmov %vm7711_vm0 }
 0x181   : > { %3963 = vmatmul.msk.f32.gmra.mxu3 %vm7750_vm14, %v5522_v25  ;;  %3945 = vmatmul.msk.f32.gmra.mxu1 %vm7751_vm5, %v5559_v58  ;;  %vm7765_vm15 = vmmov %vm7711_vm0 }
 0x182   : > { %vm7766_vm14 = vmmov %vm7711_vm0 }
 0x183   : > { %vm7768_vm5 = vmmov %vm7711_vm0 }
 0x185   : > { %1919 = vrot.lane.b32.xlu2 %v5678_v62, %s4466_s15  ;;  %1923 = vrot.lane.b32.xlu0 %v5662_v5, %s4466_s15 }
 0x186   : > { %2670 = vrot.lane.b32.xlu1 %v5632_v3, %s4467_s16 }
 0x188   : > { %3935 = vmatmul.msk.f32.gmra.mxu0 %vm7753_vm2, %v5559_v58  ;;  %3953 = vmatmul.msk.f32.gmra.mxu2 %vm7754_vm12, %v5522_v25  ;;  %vm7769_vm2 = vmmov %vm7711_vm0 }
 0x189   : > { %3964 = vmatmul.msk.f32.gmra.mxu3 %vm7755_vm4, %v5548_v41  ;;  %3946 = vmatmul.msk.f32.gmra.mxu1 %vm7756_vm8, %v5570_v47  ;;  %vm7770_vm12 = vmmov %vm7711_vm0  ;;  %vm1943_vm4 = vcmp.lt.s32.totalorder %v4515_v1, 33  ;;  %vm7565_vm8 = vcmp.lt.s32.totalorder %v4515_v1, 32 }
 0x18d   : > { %2040 = vrot.lane.b32.xlu2 %v5678_v62, %s4465_s14  ;;  %2585 = vrot.lane.b32.xlu0 %v5662_v5, %s4469_s18 }
 0x18e   : > { %2129 = vrot.lane.b32.xlu1 %v5632_v3, %s4470_s19 }
 0x190   : > { %3936 = vmatmul.msk.f32.gmra.mxu0 %vm7757_vm9, %v5570_v47  ;;  %3954 = vmatmul.msk.f32.gmra.mxu2 %vm7758_vm6, %v5548_v41  ;;  %vm7796_vm9 = vcmask 523264   ;;  %vm7578_vm6 = vcmp.lt.s32.totalorder %v4515_v1, 96 }
 0x191   : > { %3965 = vmatmul.msk.f32.gmra.mxu3 %vm7759_vm3, %v5559_v58  ;;  %3947 = vmatmul.msk.f32.gmra.mxu1 %vm7760_vm7, %v5581_v18  ;;  %vm7801_vm3 = vmmov %vm7796_vm9  ;;  %vm7582_vm7 = vcmp.lt.s32.totalorder %v4515_v1, 1 }
 0x195   : > { %2581 = vrot.lane.b32.xlu2 %v5678_v62, %s4469_s18  ;;  %2254 = vrot.lane.b32.xlu0 %v5662_v5, %s4471_s20 }
 0x196   : > { %2044 = vrot.lane.b32.xlu1 %v5662_v5, %s4465_s14  ;;  %v1172_v15 = vpop.f32.mrf.mxu1 }
 0x197   : > { %1220 = vst [vmem:[#allocation2 + $0x68] sm:$0xf] %v1172_v15 }
 0x198   : > { %3937 = vmatmul.msk.f32.gmra.mxu0 %vm7711_vm0, %v5581_v18  ;;  %3955 = vmatmul.msk.f32.gmra.mxu2 %vm7761_vm1, %v5559_v58  ;;  %vm7822_vm0 = vmmov %vm7801_vm3 }
 0x199   : > { %3966 = vmatmul.msk.f32.gmra.mxu3 %vm7762_vm10, %v5570_v47  ;;  %3948 = vmatmul.msk.f32.gmra.mxu1 %vm7763_vm11, %v5592_v21  ;;  %vm7828_vm1 = vmmov %vm7822_vm0  ;;  %vm7574_vm10 = vcmp.lt.s32.totalorder %v4515_v1, 97  ;;  %vm7583_vm11 = vcmp.lt.s32.totalorder %v4515_v1, 95 }
 0x19c   : > { %v1152_v52 = vpop.f32.mrf.mxu0 }
 0x19d   : > { %1219 = vst [vmem:[#allocation2 + $0x50] sm:$0xf] %v1152_v52  ;;  %2250 = vrot.lane.b32.xlu2 %v5678_v62, %s4471_s20  ;;  %2682 = vrot.lane.b32.xlu0 %v5662_v5, %s4467_s16 }
 0x19e   : > { %2472 = vrot.lane.b32.xlu1 %v5662_v5, %s4464_s13  ;;  %v5728_v9 = vpop.f32.mrf.mxu1  ;;  %v5738_v50 = vld [vmem:[#allocation2 + $0x68] sm:$0xff] }
 0x19f   : > { %7767 = vst [vmem:[#allocation10_spill] sm:$0xff] %v5738_v50 }
 0x1a0   : > { %3938 = vmatmul.msk.f32.gmra.mxu0 %vm7764_vm13, %v5592_v21  ;;  %3956 = vmatmul.msk.f32.gmra.mxu2 %vm7765_vm15, %v5570_v47  ;;  %vm7839_vm13 = vmmov %vm7822_vm0 }
 0x1a1   : > { %3967 = vmatmul.msk.f32.gmra.mxu3 %vm7766_vm14, %v5581_v18  ;;  %vm7840_vm15 = vmmov %vm7822_vm0 }
 0x1a2   : > { %vm7853_vm14 = vmmov %vm7822_vm0 }
 0x1a4   : > { %v5736_v16 = vpop.f32.mrf.mxu0  ;;  %v5782_v41 = vld [vmem:[#allocation2 + $0x50] sm:$0xff] }
 0x1a5   : > { %2052 = vrot.lane.b32.xlu2 %v5738_v50, %s4465_s14  ;;  %2468 = vrot.lane.b32.xlu0 %v5678_v62, %s4464_s13 }
 0x1a6   : > { %2141 = vrot.lane.b32.xlu1 %v5662_v5, %s4470_s19  ;;  %v5746_v19 = vpop.f32.mrf.mxu1 }
 0x1a8   : > { %3957 = vmatmul.msk.f32.gmra.mxu2 %vm7768_vm5, %v5581_v18  ;;  %vm7858_vm5 = vmmov %vm7822_vm0 }
 0x1a9   : > { %3968 = vmatmul.msk.f32.gmra.mxu3 %vm7769_vm2, %v5592_v21 }
 0x1ab   : > { %v1212_v53 = vpop.f32.mrf.mxu3 }
 0x1ac   : > { %1222 = vst [vmem:[#allocation2 + $0x48] sm:$0xf] %v1212_v53 }
 0x1ad   : > { %v5752_v59 = vpop.f32.mrf.mxu0  ;;  %2383 = vrot.lane.b32.xlu2 %v5738_v50, %s4468_s17  ;;  %2678 = vrot.lane.b32.xlu0 %v5678_v62, %s4467_s16 }
 0x1ae   : > { %2371 = vrot.lane.b32.xlu1 %v5678_v62, %s4468_s17  ;;  %v5760_v20 = vpop.f32.mrf.mxu1 }
 0x1b0   : > { %3958 = vmatmul.msk.f32.gmra.mxu2 %vm7770_vm12, %v5592_v21 }
 0x1b2   : > { %v1192_v36 = vpop.f32.mrf.mxu2 }
 0x1b3   : > { %1221 = vst [vmem:[#allocation2 + $0x8] sm:$0xf] %v1192_v36  ;;  %v5764_v43 = vpop.f32.mrf.mxu3  ;;  %v5808_v53 = vld [vmem:[#allocation2 + $0x48] sm:$0xff] }
 0x1b5   : > { %v5766_v25 = vpop.f32.mrf.mxu0  ;;  %2262 = vrot.lane.b32.xlu2 %v5738_v50, %s4471_s20  ;;  %2137 = vrot.lane.b32.xlu0 %v5678_v62, %s4470_s19 }
 0x1b6   : > { %1931 = vrot.lane.b32.xlu1 %v5738_v50, %s4466_s15  ;;  %v1362_v13 = vpop.f32.mrf.mxu1 }
 0x1b7   : > { %v5774_v38 = vpop.permute.xlu2 %2464 }
 0x1b8   : > { %7771 = vst [vmem:[#allocation17_spill] sm:$0xff] %v5774_v38 }
 0x1bb   : > { %v5776_v63 = vpop.f32.mrf.mxu2 }
 0x1bc   : > { %v5778_v0 = vpop.f32.mrf.mxu3 }
 0x1bd   : > { %v5780_v55 = vpop.f32.mrf.mxu0  ;;  %2593 = vrot.lane.b32.xlu0 %v5738_v50, %s4469_s18  ;;  %1927 = vrot.lane.b32.xlu2 %v5782_v41, %s4466_s15 }
 0x1be   : > { %2480 = vrot.lane.b32.xlu1 %v5738_v50, %s4464_s13  ;;  %v1365_v58 = vpop.f32.mrf.mxu1 }
 0x1bf   : > { %v5790_v47 = vpop.permute.xlu2 %2674  ;;  %v1656_v14 = vmul.f32 %v7782_v32, %v1365_v58  ;;  %v7783_v32 = vld [vmem:[#allocation26_spill] sm:$0xff] }
 0x1c0   : > { %7772 = vst [vmem:[#allocation18_spill] sm:$0xff] %v5790_v47 }
 0x1c3   : > { %v5792_v18 = vpop.f32.mrf.mxu2 }
 0x1c4   : > { %v5794_v7 = vpop.f32.mrf.mxu3 }
 0x1c5   : > { %v1324_v21 = vpop.f32.mrf.mxu0  ;;  %2048 = vrot.lane.b32.xlu0 %v5782_v41, %s4465_s14  ;;  %2476 = vrot.lane.b32.xlu2 %v5782_v41, %s4464_s13 }
 0x1c6   : > { %2690 = vrot.lane.b32.xlu1 %v5738_v50, %s4467_s16  ;;  %v1368_v54 = vpop.f32.mrf.mxu1 }
 0x1c7   : > { %v5802_v48 = vpop.permute.xlu2 %2133  ;;  %v1664_v29 = vmul.f32 %v7781_v45, %v1368_v54 }
 0x1c8   : > { %7773 = vst [vmem:[#allocation71_spill] sm:$0xff] %v5802_v48 }
 0x1cb   : > { %v5804_v40 = vpop.f32.mrf.mxu2 }
 0x1cc   : > { %v5806_v15 = vpop.f32.mrf.mxu3 }
 0x1cd   : > { %v1327_v52 = vpop.f32.mrf.mxu0  ;;  %2379 = vrot.lane.b32.xlu0 %v5782_v41, %s4468_s17  ;;  %1939 = vrot.lane.b32.xlu2 %v5808_v53, %s4466_s15 }
 0x1ce   : > { %2589 = vrot.lane.b32.xlu1 %v5782_v41, %s4469_s18  ;;  %v1371_v36 = vpop.f32.mrf.mxu1 }
 0x1cf   : > { %v5816_v38 = vpop.permute.xlu0 %2036  ;;  %v5818_v47 = vpop.permute.xlu2 %2363  ;;  %v1672_v27 = vmul.f32 %v7780_v30, %v1371_v36  ;;  %v5850_v30 = vld [vmem:[#allocation2 + $0x8] sm:$0xff]  ;;  %v7789_v36 = vld [vmem:[#allocation30_spill] sm:$0xff] }
 0x1d0   : > { %7774 = vst [vmem:[#allocation72_spill] sm:$0xff] %v5818_v47  ;;  %v5820_v48 = vpop.permute.xlu1 %1915 }
 0x1d1   : > { %7775 = vst [vmem:[#allocation73_spill] sm:$0xff] %v5820_v48 }
 0x1d3   : > { %v5822_v56 = vpop.f32.mrf.mxu2 }
 0x1d4   : > { %v5824_v50 = vpop.f32.mrf.mxu3 }
 0x1d5   : > { %v1330_v5 = vpop.f32.mrf.mxu0  ;;  %2060 = vrot.lane.b32.xlu0 %v5808_v53, %s4465_s14  ;;  %2157 = vrot.lane.b32.xlu2 %v5808_v53, %s4470_s19 }
 0x1d6   : > { %2686 = vrot.lane.b32.xlu1 %v5782_v41, %s4467_s16  ;;  %v1374_v62 = vpop.f32.mrf.mxu1 }
 0x1d7   : > { %v1680_v3 = vmul.f32 %v7776_v4, %v1374_v62  ;;  %v5833_v47 = vpop.permute.xlu0 %2367  ;;  %v5835_v11 = vpop.permute.xlu2 %2375  ;;  %v1671_v4 = vmul.f32 %v4966_v10, %v1330_v5  ;;  %v1648_v10 = vmul.f32 %v7783_v32, %v1362_v13  ;;  %v7787_v5 = vld [vmem:[#allocation28_spill] sm:$0xff]  ;;  %v7788_v13 = vld [vmem:[#allocation27_spill] sm:$0xff] }
 0x1d8   : > { %7777 = vst [vmem:[#allocation20_spill] sm:$0xff] %v5833_v47  ;;  %v5837_v57 = vpop.permute.xlu1 %2577  ;;  %v1663_v58 = vmul.f32 %v7787_v5, %v1327_v52  ;;  %v1632_v54 = vmul.f32 %v7788_v13, %v5746_v19  ;;  %v7790_v47 = vld [vmem:[#allocation29_spill] sm:$0xff] }
 0x1d9   : > { %7778 = vst [vmem:[#allocation74_spill] sm:$0xff] %v5835_v11  ;;  %1715 = vmatpush.msra.mxu1 %v1680_v3  ;;  %v1640_v3 = vmul.f32 %v4979_v6, %v5760_v20  ;;  %v7791_v6 = vld [vmem:[#allocation32_spill] sm:$0xff]  ;;  %v7799_v13 = vld [vmem:[#allocation33_spill] sm:$0xff] }
 0x1da   : > { %7779 = vst [vmem:[#allocation75_spill] sm:$0xff] %v5837_v57  ;;  %v1647_v20 = vmul.f32 %v7791_v6, %v5780_v55 }
 0x1db   : > { %v5840_v46 = vpop.f32.mrf.mxu2  ;;  %1716 = vmatpush.msra.mxu1 %v1672_v27 }
 0x1dc   : > { %v5843_v23 = vpop.f32.mrf.mxu3 }
 0x1dd   : > { %v1333_v60 = vpop.f32.mrf.mxu0  ;;  %1717 = vmatpush.msra.mxu1 %v1664_v29  ;;  %2601 = vrot.lane.b32.xlu0 %v5808_v53, %s4469_s18 }
 0x1de   : > { %v1679_v62 = vmul.f32 %v4969_v31, %v1333_v60  ;;  %2258 = vrot.lane.b32.xlu1 %v5782_v41, %s4471_s20  ;;  %2484 = vrot.lane.b32.xlu2 %v5850_v30, %s4464_s13  ;;  %v5857_v45 = vpop.f32.mrf.mxu1 }
 0x1df   : > { %1718 = vmatpush.msra.mxu1 %v1656_v14  ;;  %v5860_v31 = vpop.permute.xlu2 %1919  ;;  %v5862_v60 = vpop.permute.xlu0 %1911 }
 0x1e0   : > { %7784 = vst [vmem:[#allocation22_spill] sm:$0xff] %v5862_v60  ;;  %1695 = vmatpush.msra.mxu0 %v1679_v62  ;;  %v5864_v29 = vpop.permute.xlu1 %2246  ;;  %v5870_v27 = vsel %vm1943_vm4, %v5820_v48, %v5860_v31  ;;  %v1655_v62 = vmul.f32 %v7789_v36, %v1324_v21  ;;  %v7792_v21 = vld [vmem:[#allocation34_spill] sm:$0xff] }
 0x1e1   : > { %7785 = vst [vmem:[#allocation23_spill] sm:$0xff] %v5864_v29  ;;  %1719 = vmatpush.msra.mxu1 %v1648_v10  ;;  %v1639_v52 = vmul.f32 %v7792_v21, %v5766_v25  ;;  %v7797_v10 = vld [vmem:[#allocation36_spill] sm:$0xff]  ;;  %v7804_v21 = vld [vmem:[#allocation37_spill] sm:$0xff] }
 0x1e2   : > { %7786 = vst [vmem:[#allocation24_spill] sm:$0xff] %v5870_v27  ;;  %1696 = vmatpush.msra.mxu0 %v1671_v4  ;;  %v1624_v27 = vmul.f32 %v7790_v47, %v5728_v9  ;;  %v1631_v25 = vmul.f32 %v7797_v10, %v5752_v59 }
 0x1e3   : > { %v1409_v14 = vpop.f32.mrf.mxu2  ;;  %1720 = vmatpush.msra.mxu1 %v1640_v3  ;;  %v7798_v3 = vld [vmem:[#allocation38_spill] sm:$0xff] }
 0x1e4   : > { %v1453_v32 = vpop.f32.mrf.mxu3  ;;  %1697 = vmatpush.msra.mxu0 %v1663_v58  ;;  %v1623_v5 = vmul.f32 %v7798_v3, %v5736_v16 }
 0x1e5   : > { %v5878_v11 = vpop.f32.mrf.mxu0  ;;  %1721 = vmatpush.msra.mxu1 %v1632_v54  ;;  %1935 = vrot.lane.b32.xlu0 %v5850_v30, %s4466_s15 }
 0x1e6   : > { %1698 = vmatpush.msra.mxu0 %v1655_v62  ;;  %2270 = vrot.lane.b32.xlu1 %v5808_v53, %s4471_s20  ;;  %v5889_v19 = vpop.f32.mrf.mxu1  ;;  %v7800_v62 = vld [vmem:[#allocation35_spill] sm:$0xff] }
 0x1e7   : > { %1722 = vmatpush.msra.mxu1 %v1624_v27  ;;  %v5893_v9 = vpop.permute.xlu2 %2040  ;;  %v5895_v47 = vpop.permute.xlu0 %2573  ;;  %v1674_v6 = vmul.f32 %v7800_v62, %v1453_v32 }
 0x1e8   : > { %7793 = vst [vmem:[#allocation26_spill] sm:$0xff] %v5895_v47  ;;  %1699 = vmatpush.msra.mxu0 %v1647_v20  ;;  %v5901_v55 = vsel %vm7565_vm8, %v5816_v38, %v5893_v9  ;;  %v5903_v4 = vpop.permute.xlu1 %2032  ;;  %3970 = vmatmul.msk.f32.vlgmr.msra.gmra.mxu1 %vm7796_vm9, %v5040_v35  ;;  %v7836_v47 = vld [vmem:[#allocation55_spill] sm:$0xff] }
 0x1e9   : > { %7794 = vst [vmem:[#allocation28_spill] sm:$0xff] %v5901_v55 }
 0x1ea   : > { %7795 = vst [vmem:[#allocation27_spill] sm:$0xff] %v5903_v4  ;;  %1700 = vmatpush.msra.mxu0 %v1639_v52  ;;  %v1666_v52 = vmul.f32 %v7804_v21, %v5843_v23  ;;  %v7809_v23 = vld [vmem:[#allocation41_spill] sm:$0xff]  ;;  %v7810_v21 = vld [vmem:[#allocation42_spill] sm:$0xff] }
 0x1eb   : > { %v1412_v27 = vpop.f32.mrf.mxu2  ;;  %v1650_v62 = vmul.f32 %v7809_v23, %v5806_v15 }
 0x1ec   : > { %v1456_v58 = vpop.f32.mrf.mxu3  ;;  %1701 = vmatpush.msra.mxu0 %v1631_v25  ;;  %v7807_v25 = vld [vmem:[#allocation39_spill] sm:$0xff] }
 0x1ed   : > { %v1682_v54 = vmul.f32 %v7799_v13, %v1456_v58  ;;  %v5912_v36 = vpop.f32.mrf.mxu0  ;;  %2387 = vrot.lane.b32.xlu0 %v5850_v30, %s4468_s17  ;;  %v1658_v3 = vmul.f32 %v7807_v25, %v5824_v50  ;;  %v7808_v58 = vld [vmem:[#allocation40_spill] sm:$0xff] }
 0x1ee   : > { %1702 = vmatpush.msra.mxu0 %v1623_v5  ;;  %2056 = vrot.lane.b32.xlu1 %v5850_v30, %s4465_s14  ;;  %v5918_v59 = vpop.f32.mrf.mxu1  ;;  %v7812_v25 = vld [vmem:[#allocation44_spill] sm:$0xff] }
 0x1ef   : > { %1755 = vmatpush.msra.mxu3 %v1682_v54  ;;  %3969 = vmatmul.msk.f32.vlgmr.msra.gmra.mxu0 %vm7801_vm3, %v5040_v35  ;;  %v5924_v16 = vpop.permute.xlu2 %2581  ;;  %v5926_v20 = vpop.permute.xlu0 %2242 }
 0x1f0   : > { %7802 = vst [vmem:[#allocation30_spill] sm:$0xff] %v5924_v16  ;;  %v5934_v32 = vsel %vm7578_vm6, %v5837_v57, %v5924_v16  ;;  %v5936_v10 = vpop.permute.xlu1 %2460  ;;  %v1673_v16 = vmul.f32 %v7810_v21, %v1412_v27  ;;  %v7814_v27 = vld [vmem:[#allocation45_spill] sm:$0xff]  ;;  %v7820_v21 = vld [vmem:[#allocation48_spill] sm:$0xff] }
 0x1f1   : > { %7803 = vst [vmem:[#allocation29_spill] sm:$0xff] %v5926_v20  ;;  %1756 = vmatpush.msra.mxu3 %v1674_v6 }
 0x1f2   : > { %7805 = vst [vmem:[#allocation32_spill] sm:$0xff] %v5934_v32 }
 0x1f3   : > { %7806 = vst [vmem:[#allocation34_spill] sm:$0xff] %v5936_v10  ;;  %1757 = vmatpush.msra.mxu3 %v1666_v52  ;;  %v1415_v5 = vpop.f32.mrf.mxu2  ;;  %v7811_v10 = vld [vmem:[#allocation43_spill] sm:$0xff] }
 0x1f4   : > { %v1681_v13 = vmul.f32 %v7808_v58, %v1415_v5  ;;  %v5941_v54 = vpop.f32.mrf.mxu3  ;;  %v1642_v50 = vmul.f32 %v7811_v10, %v5794_v7  ;;  %v1665_v5 = vmul.f32 %v7812_v25, %v1409_v14  ;;  %v1634_v58 = vmul.f32 %v7814_v27, %v5778_v0  ;;  %v7819_v0 = vld [vmem:[#allocation47_spill] sm:$0xff] }
 0x1f5   : > { %1758 = vmatpush.msra.mxu3 %v1658_v3  ;;  %v5945_v6 = vpop.f32.mrf.mxu0  ;;  %v1626_v23 = vmul.f32 %v7819_v0, %v5764_v43  ;;  %v7823_v43 = vld [vmem:[#allocation50_spill] sm:$0xff] }
 0x1f6   : > { %1735 = vmatpush.msrb.mxu2 %v1681_v13  ;;  %2597 = vrot.lane.b32.xlu1 %v5850_v30, %s4469_s18  ;;  %v5953_v52 = vpop.f32.mrf.mxu1 }
 0x1f7   : > { %1759 = vmatpush.msra.mxu3 %v1650_v62  ;;  %v5956_v15 = vpop.permute.xlu2 %2250  ;;  %v1924_v3 = vpop.permute.xlu0 %1923 }
 0x1f8   : > { %1736 = vmatpush.msrb.mxu2 %v1673_v16  ;;  %7813 = vst [vmem:[#allocation36_spill] sm:$0xff] %v5956_v15  ;;  %v5964_v7 = vsel %vm7582_vm7, %v5864_v29, %v5956_v15  ;;  %v5966_v10 = vpop.permute.xlu1 %2670  ;;  %v5971_v14 = vsel %vm1943_vm4, %v5860_v31, %v1924_v3  ;;  %v7818_v16 = vld [vmem:[#allocation46_spill] sm:$0xff]  ;;  %v7821_v31 = vld [vmem:[#allocation49_spill] sm:$0xff] }
 0x1f9   : > { %1760 = vmatpush.msra.mxu3 %v1642_v50  ;;  %7815 = vst [vmem:[#allocation38_spill] sm:$0xff] %v5964_v7  ;;  %v1657_v13 = vmul.f32 %v7818_v16, %v5840_v46  ;;  %v1649_v50 = vmul.f32 %v7820_v21, %v5822_v56  ;;  %v1641_v7 = vmul.f32 %v7821_v31, %v5804_v40 }
 0x1fa   : > { %7816 = vst [vmem:[#allocation33_spill] sm:$0xff] %v5966_v10  ;;  %1737 = vmatpush.msrb.mxu2 %v1665_v5  ;;  %v1633_v5 = vmul.f32 %v7823_v43, %v5792_v18 }
 0x1fb   : > { %7817 = vst [vmem:[#allocation35_spill] sm:$0xff] %v5971_v14  ;;  %1761 = vmatpush.msra.mxu3 %v1634_v58  ;;  %v5977_v62 = vpop.f32.mrf.mxu2 }
 0x1fc   : > { %v5981_v25 = vpop.f32.mrf.mxu3  ;;  %1738 = vmatpush.msrb.mxu2 %v1657_v13  ;;  %v7827_v13 = vld [vmem:[#allocation51_spill] sm:$0xff] }
 0x1fd   : > { %1762 = vmatpush.msra.mxu3 %v1626_v23  ;;  %v5983_v27 = vpop.f32.mrf.mxu0  ;;  %v1625_v0 = vmul.f32 %v7827_v13, %v5776_v63 }
 0x1fe   : > { %3972 = vmatmul.msk.f32.vlgmr.msra.gmra.mxu3 %vm7822_vm0, %v5040_v35  ;;  %1739 = vmatpush.msrb.mxu2 %v1649_v50  ;;  %v1529_v46 = vpop.f32.mrf.mxu1 }
 0x1ff   : > { %v5991_v58 = vpop.permute.xlu2 %2052  ;;  %v5993_v56 = vpop.permute.xlu0 %2585 }
 0x200   : > { %1740 = vmatpush.msrb.mxu2 %v1641_v7  ;;  %7824 = vst [vmem:[#allocation37_spill] sm:$0xff] %v5991_v58  ;;  %v5995_v16 = vpop.permute.xlu1 %2129 }
 0x201   : > { %7825 = vst [vmem:[#allocation39_spill] sm:$0xff] %v5993_v56 }
 0x202   : > { %7826 = vst [vmem:[#allocation40_spill] sm:$0xff] %v5995_v16  ;;  %1741 = vmatpush.msrb.mxu2 %v1633_v5 }
 0x203   : > { %v5999_v40 = vpop.f32.mrf.mxu2 }
 0x204   : > { %v6001_v23 = vpop.f32.mrf.mxu3  ;;  %1742 = vmatpush.msrb.mxu2 %v1625_v0 }
 0x205   : > { %v1488_v21 = vpop.f32.mrf.mxu0  ;;  %3971 = vmatmul.msk.f32.vlgmr.msrb.gmra.mxu2 %vm7828_vm1, %v5040_v35  ;;  %vm7566_vm1 = vcmp.lt.s32.totalorder %v4515_v1, 31 }
 0x206   : > { %v1532_v18 = vpop.f32.mrf.mxu1 }
 0x207   : > { %v6005_v7 = vpop.permute.xlu2 %2383  ;;  %v6007_v50 = vpop.permute.xlu0 %2254 }
 0x208   : > { %7829 = vst [vmem:[#allocation41_spill] sm:$0xff] %v6005_v7  ;;  %v6009_v31 = vpop.permute.xlu1 %2044 }
 0x209   : > { %7830 = vst [vmem:[#allocation42_spill] sm:$0xff] %v6007_v50  ;;  %v6015_v63 = vsel %vm7565_vm8, %v5893_v9, %v6009_v31  ;;  %v7833_v9 = vld [vmem:[#allocation54_spill] sm:$0xff] }
 0x20a   : > { %7831 = vst [vmem:[#allocation43_spill] sm:$0xff] %v6015_v63 }
 0x20b   : > { %v6017_v43 = vpop.f32.mrf.mxu2 }
 0x20c   : > { %v6019_v5 = vpop.f32.mrf.mxu3 }
 0x20d   : > { %v1491_v13 = vpop.f32.mrf.mxu0 }
 0x20e   : > { %v1535_v0 = vpop.f32.mrf.mxu1 }
 0x20f   : > { %v6021_v58 = vpop.permute.xlu2 %2262  ;;  %v6023_v56 = vpop.permute.xlu0 %2682  ;;  %v1676_v57 = vmul.f32 %v7836_v47, %v1535_v0  ;;  %v1667_v47 = vmul.f32 %v5284_v42, %v1491_v13  ;;  %v1644_v42 = vmul.f32 %v5281_v26, %v5918_v59  ;;  %v1643_v26 = vmul.f32 %v5330_v12, %v5945_v6  ;;  %v7846_v13 = vld [vmem:[#allocation62_spill] sm:$0xff] }
 0x210   : > { %7832 = vst [vmem:[#allocation44_spill] sm:$0xff] %v6021_v58  ;;  %v2473_v7 = vpop.permute.xlu1 %2472  ;;  %v1627_v12 = vmul.f32 %v5360_v39, %v5878_v11  ;;  %v7843_v11 = vld [vmem:[#allocation60_spill] sm:$0xff]  ;;  %v1646_v0 = vmul.f32 %v7846_v13, %v6001_v23  ;;  %v7850_v23 = vld [vmem:[#allocation67_spill] sm:$0xff] }
 0x213   : > { %v6025_v15 = vpop.f32.mrf.mxu2 }
 0x214   : > { %v6027_v50 = vpop.f32.mrf.mxu3 }
 0x215   : > { %v1494_v10 = vpop.f32.mrf.mxu0 }
 0x216   : > { %v1538_v14 = vpop.f32.mrf.mxu1  ;;  %v1675_v4 = vmul.f32 %v5257_v2, %v1494_v10  ;;  %v7838_v10 = vld [vmem:[#allocation59_spill] sm:$0xff] }
 0x217   : > { %v1684_v32 = vmul.f32 %v7833_v9, %v1538_v14  ;;  %v6031_v63 = vpop.permute.xlu0 %2468  ;;  %v1928_v55 = vpop.permute.xlu2 %1927  ;;  %v7837_v14 = vld [vmem:[#allocation56_spill] sm:$0xff] }
 0x218   : > { %v6033_v20 = vpop.permute.xlu1 %2141  ;;  %v6038_v58 = vsel %vm7574_vm10, %v6031_v63, %v2473_v7  ;;  %v6042_v29 = vsel %vm1943_vm4, %v1924_v3, %v1928_v55  ;;  %v1668_v9 = vmul.f32 %v7837_v14, %v1532_v18  ;;  %v1652_v3 = vmul.f32 %v5268_v51, %v5953_v52  ;;  %v7847_v14 = vld [vmem:[#allocation65_spill] sm:$0xff] }
 0x219   : > { %7834 = vst [vmem:[#allocation45_spill] sm:$0xff] %v6033_v20  ;;  %1795 = vmatpush.msrb.mxu1 %v1684_v32  ;;  %v1660_v20 = vmul.f32 %v5254_v24, %v1529_v46  ;;  %v1636_v51 = vmul.f32 %v5297_v44, %v5889_v19  ;;  %v1628_v52 = vmul.f32 %v5310_v33, %v5857_v45 }
 0x21a   : > { %7835 = vst [vmem:[#allocation46_spill] sm:$0xff] %v6038_v58  ;;  %v1651_v46 = vmul.f32 %v7838_v10, %v5983_v27  ;;  %v1871_v10 = vld.sshfl [vmem:[#allocation1] sm:$0xff pattern:$0x75316420] }
 0x21b   : > { %v6045_v16 = vpop.f32.mrf.mxu2  ;;  %1796 = vmatpush.msrb.mxu1 %v1676_v57  ;;  %1887 = vst [vmem:[#allocation2 + $0x40] sm:$0xf0] %v1871_v10 }
 0x21c   : > { %v1614_v60 = vpop.f32.mrf.mxu3 }
 0x21d   : > { %v1497_v48 = vpop.f32.mrf.mxu0  ;;  %1797 = vmatpush.msrb.mxu1 %v1668_v9  ;;  %v1670_v27 = vmul.f32 %v5355_v49, %v1614_v60 }
 0x21e   : > { %v1683_v58 = vmul.f32 %v5260_v37, %v1497_v48  ;;  %v1659_v48 = vmul.f32 %v5300_v17, %v1488_v21  ;;  %v1635_v17 = vmul.f32 %v5347_v8, %v5912_v36  ;;  %v7844_v36 = vld [vmem:[#allocation61_spill] sm:$0xff]  ;;  %v7845_v21 = vld [vmem:[#allocation63_spill] sm:$0xff] }
 0x21f   : > { %1798 = vmatpush.msrb.mxu1 %v1660_v20  ;;  %v6055_v32 = vpop.permute.xlu0 %2678  ;;  %v2477_v57 = vpop.permute.xlu2 %2476 }
 0x220   : > { %1775 = vmatpush.msrb.mxu0 %v1683_v58  ;;  %v6057_v18 = vpop.permute.xlu1 %2371  ;;  %v6063_v2 = vsel %vm7583_vm11, %v6055_v32, %v6023_v56  ;;  %v6067_v24 = vsel %vm7574_vm10, %v2473_v7, %v2477_v57  ;;  %v1654_v58 = vmul.f32 %v7844_v36, %v6019_v5  ;;  %v7868_v36 = vld [vmem:[#allocation8_spill] sm:$0xff] }
 0x221   : > { %1799 = vmatpush.msrb.mxu1 %v1652_v3 }
 0x222   : > { %1776 = vmatpush.msrb.mxu0 %v1675_v4 }
 0x223   : > { %v1573_v37 = vpop.f32.mrf.mxu2  ;;  %1800 = vmatpush.msrb.mxu1 %v1644_v42 }
 0x224   : > { %v1617_v20 = vpop.f32.mrf.mxu3  ;;  %1777 = vmatpush.msrb.mxu0 %v1667_v47  ;;  %v1669_v7 = vmul.f32 %v7845_v21, %v1573_v37  ;;  %v1653_v47 = vmul.f32 %v7850_v23, %v6025_v15  ;;  %v7869_v23 = vld [vmem:[#allocation9_spill] sm:$0xff] }
 0x225   : > { %1801 = vmatpush.msrb.mxu1 %v1636_v51  ;;  %v1678_v59 = vmul.f32 %v5341_v34, %v1617_v20  ;;  %v1872_v20 = vld.sshfl [vmem:[#allocation1 + $0x8] sm:$0xff pattern:$0x75316420] }
 0x226   : > { %1778 = vmatpush.msrb.mxu0 %v1659_v48  ;;  %1888 = vst [vmem:[#allocation2 + $0x20] sm:$0xf0] %v1872_v20 }
 0x227   : > { %1802 = vmatpush.msrb.mxu1 %v1628_v52  ;;  %v6080_v4 = vpop.permute.xlu0 %2137 }
 0x228   : > { %1779 = vmatpush.msrb.mxu0 %v1651_v46  ;;  %v6082_v44 = vpop.permute.xlu1 %1931  ;;  %3974 = vmatmul.msk.f32.vlgmr.msrb.gmra.mxu1 %vm7839_vm13, %v5040_v35 }
 0x229   : > { %v6091_v33 = vsel %vm1943_vm4, %v1928_v55, %v6082_v44 }
 0x22a   : > { %1780 = vmatpush.msrb.mxu0 %v1643_v26 }
 0x22b   : > { %v1576_v45 = vpop.f32.mrf.mxu2 }
 0x22c   : > { %v1620_v19 = vpop.f32.mrf.mxu3  ;;  %1781 = vmatpush.msrb.mxu0 %v1635_v17  ;;  %v1677_v49 = vmul.f32 %v5406_v28, %v1576_v45  ;;  %v7848_v28 = vld [vmem:[#allocation64_spill] sm:$0xff]  ;;  %v6170_v17 = vpop.permute.xlu2 %1939 }
 0x22d   : > { %v1686_v6 = vmul.f32 %v5324_v22, %v1620_v19  ;;  %v1662_v22 = vmul.f32 %v5370_v61, %v6027_v50  ;;  %v1661_v61 = vmul.f32 %v7847_v14, %v6045_v16  ;;  %v1638_v9 = vmul.f32 %v7848_v28, %v5981_v25  ;;  %v7851_v16 = vld [vmem:[#allocation66_spill] sm:$0xff]  ;;  %v7852_v25 = vld [vmem:[#allocation68_spill] sm:$0xff]  ;;  %v1875_v28 = vld.sshfl [vmem:[#allocation1 + $0x20] sm:$0xff pattern:$0x75316420] }
 0x22e   : > { %1782 = vmatpush.msrb.mxu0 %v1627_v12  ;;  %v1645_v42 = vmul.f32 %v7852_v25, %v6017_v43  ;;  %v1876_v14 = vld.sshfl [vmem:[#allocation1 + $0x28] sm:$0xff pattern:$0x75316420]  ;;  %1891 = vst [vmem:[#allocation2 + $0x60] sm:$0xf0] %v1875_v28 }
 0x22f   : > { %1835 = vmatpush.msrb.mxu3 %v1686_v6  ;;  %3973 = vmatmul.msk.f32.vlgmr.msrb.gmra.mxu0 %vm7840_vm15, %v5040_v35  ;;  %v6100_v8 = vpop.permute.xlu0 %2593  ;;  %v1874_v6 = vld.sshfl [vmem:[#allocation1 + $0x18] sm:$0xff pattern:$0x75316420]  ;;  %1892 = vst [vmem:[#allocation2 + $0x70] sm:$0xf0] %v1876_v14 }
 0x230   : > { %7841 = vst [vmem:[#allocation47_spill] sm:$0xff] %v6100_v8  ;;  %v6102_v55 = vpop.permute.xlu1 %2480 }
 0x231   : > { %1836 = vmatpush.msrb.mxu3 %v1678_v59  ;;  %7842 = vst [vmem:[#allocation48_spill] sm:$0xff] %v6102_v55  ;;  %v6107_v39 = vsel %vm7574_vm10, %v2477_v57, %v6102_v55  ;;  %v1630_v57 = vmul.f32 %v7851_v16, %v5941_v54  ;;  %v7856_v54 = vld [vmem:[#allocation70_spill] sm:$0xff]  ;;  %v7870_v16 = vld [vmem:[#allocation15_spill] sm:$0xff] }
 0x232   : > { %v1629_v48 = vmul.f32 %v7856_v54, %v5977_v62  ;;  %1890 = vst [vmem:[#allocation2 + $0x38] sm:$0xf0] %v1874_v6  ;;  %v1877_v54 = vld.sshfl [vmem:[#allocation1 + $0x30] sm:$0xff pattern:$0x75316420]  ;;  %v7871_v6 = vld [vmem:[#allocation10_spill] sm:$0xff] }
 0x233   : > { %1837 = vmatpush.msrb.mxu3 %v1670_v27  ;;  %v1579_v34 = vpop.f32.mrf.mxu2  ;;  %1893 = vst [vmem:[#allocation2 + $0x78] sm:$0xf0] %v1877_v54 }
 0x234   : > { %v1685_v60 = vmul.f32 %v7843_v11, %v1579_v34  ;;  %v7867_v11 = vld [vmem:[#allocation14_spill] sm:$0xff] }
 0x235   : > { %1838 = vmatpush.msrb.mxu3 %v1662_v22  ;;  %v1873_v22 = vld.sshfl [vmem:[#allocation1 + $0x10] sm:$0xff pattern:$0x75316420] }
 0x236   : > { %1815 = vmatpush.msra.mxu2 %v1685_v60  ;;  %1889 = vst [vmem:[#allocation2 + $0x10] sm:$0xf0] %v1873_v22 }
 0x237   : > { %1839 = vmatpush.msrb.mxu3 %v1654_v58  ;;  %v6120_v50 = vpop.permute.xlu0 %2048 }
 0x238   : > { %1816 = vmatpush.msra.mxu2 %v1677_v49  ;;  %v6124_v3 = vpop.permute.xlu1 %2690  ;;  %v6130_v5 = vsel %vm7565_vm8, %v6009_v31, %v6120_v50  ;;  %v7854_v31 = vld [vmem:[#allocation69_spill] sm:$0xff] }
 0x239   : > { %1840 = vmatpush.msrb.mxu3 %v1646_v0  ;;  %7849 = vst [vmem:[#allocation49_spill] sm:$0xff] %v6124_v3  ;;  %v1637_v37 = vmul.f32 %v7854_v31, %v5999_v40  ;;  %v1878_v31 = vld.sshfl [vmem:[#allocation1 + $0x38] sm:$0xff pattern:$0x75316420] }
 0x23a   : > { %1817 = vmatpush.msra.mxu2 %v1669_v7  ;;  %1894 = vst [vmem:[#allocation2 + $0x28] sm:$0xf0] %v1878_v31  ;;  %v7888_v3 = vld [vmem:[#allocation22_spill] sm:$0xff] }
 0x23b   : > { %1841 = vmatpush.msrb.mxu3 %v1638_v9 }
 0x23c   : > { %1818 = vmatpush.msra.mxu2 %v1661_v61 }
 0x23d   : > { %1842 = vmatpush.msrb.mxu3 %v1630_v57 }
 0x23e   : > { %3976 = vmatmul.msk.f32.vlgmr.msrb.gmra.mxu3 %vm7853_vm14, %v5040_v35  ;;  %1819 = vmatpush.msra.mxu2 %v1653_v47 }
 0x23f   : > { %v6142_v51 = vpop.permute.xlu0 %2379 }
 0x240   : > { %1820 = vmatpush.msra.mxu2 %v1645_v42  ;;  %7855 = vst [vmem:[#allocation50_spill] sm:$0xff] %v6142_v51  ;;  %v6144_v15 = vpop.permute.xlu1 %2589  ;;  %v7911_v51 = vld [vmem:[#allocation43_spill] sm:$0xff] }
 0x241   : > { %v6152_v43 = vsel %vm7578_vm6, %v6144_v15, %v6100_v8 }
 0x242   : > { %7857 = vst [vmem:[#allocation51_spill] sm:$0xff] %v6152_v43  ;;  %1821 = vmatpush.msra.mxu2 %v1637_v37 }
 0x244   : > { %1822 = vmatpush.msra.mxu2 %v1629_v48 }
 0x245   : > { %3975 = vmatmul.msk.f32.vlgmr.msra.gmra.mxu2 %vm7858_vm5, %v5040_v35 }
 0x247   : > { %v6156_v40 = vpop.permute.xlu0 %2060 }
 0x248   : > { %7859 = vst [vmem:[#allocation54_spill] sm:$0xff] %v6156_v40  ;;  %v6158_v52 = vpop.permute.xlu1 %2686 }
 0x249   : > { %7860 = vst [vmem:[#allocation55_spill] sm:$0xff] %v6158_v52  ;;  %v6164_v62 = vsel %vm7583_vm11, %v6023_v56, %v6158_v52  ;;  %v7887_v52 = vld [vmem:[#allocation73_spill] sm:$0xff] }
 0x24a   : > { %v1956_v55 = vsel %vm1943_vm4, %v7888_v3, %v7887_v52 }
 0x24f   : > { %v6166_v46 = vpop.permute.xlu0 %2601 }
 0x250   : > { %7861 = vst [vmem:[#allocation56_spill] sm:$0xff] %v6166_v46  ;;  %v6168_v26 = vpop.permute.xlu1 %2258  ;;  %v7906_v46 = vld [vmem:[#allocation6_spill] sm:$0xff] }
 0x257   : > { %v1936_v45 = vpop.permute.xlu0 %1935 }
 0x258   : > { %v6172_v35 = vpop.permute.xlu1 %2270  ;;  %v6177_v12 = vsel %vm1943_vm4, %v1936_v45, %v6170_v17  ;;  %v6182_v56 = vsel %vm1943_vm4, %v6082_v44, %v1936_v45 }
 0x259   : > { %7862 = vst [vmem:[#allocation59_spill] sm:$0xff] %v6172_v35 }
 0x25a   : > { %7863 = vst [vmem:[#allocation60_spill] sm:$0xff] %v6177_v12 }
 0x25b   : > { %7864 = vst [vmem:[#allocation61_spill] sm:$0xff] %v6182_v56  ;;  %v7898_v56 = vld [vmem:[#allocation26_spill] sm:$0xff] }
 0x25f   : > { %v6276_v28 = vpop.permute.xlu0 %2387 }
 0x260   : > { %v6184_v19 = vpop.permute.xlu1 %2056  ;;  %7874 = vst [vmem:[#allocation67_spill] sm:$0xff] %v6276_v28  ;;  %v7890_v28 = vld [vmem:[#allocation71_spill] sm:$0xff] }
 0x261   : > { %7865 = vst [vmem:[#allocation63_spill] sm:$0xff] %v6184_v19  ;;  %v6190_v59 = vsel %vm7565_vm8, %v6184_v19, %v6156_v40  ;;  %v7908_v40 = vld [vmem:[#allocation29_spill] sm:$0xff] }
 0x262   : > { %7866 = vst [vmem:[#allocation62_spill] sm:$0xff] %v6190_v59  ;;  %v7894_v59 = vld [vmem:[#allocation21_spill] sm:$0xff] }
 0x263   : > { %vm2509_vm13 = vcmp.lt.s32.totalorder %v7894_v59, 31 }
 0x265   : > { %v1724_v27 = vpop.f32.mrf.mxu1 }
 0x266   : > { %1848 = vst [vmem:[#allocation2 + $0x20] sm:$0xf] %v1724_v27 }
 0x26c   : > { %v1704_v34 = vpop.f32.mrf.mxu0 }
 0x26d   : > { %1847 = vst [vmem:[#allocation2 + $0x40] sm:$0xf] %v1704_v34  ;;  %v1904_v49 = vld [vmem:[#allocation2 + $0x20] sm:$0xff] }
 0x26e   : > { %1917 = vrot.lane.b32.xlu1 %v1904_v49, %s4466_s15  ;;  %2466 = vrot.lane.b32.xlu0 %v1904_v49, %s4464_s13  ;;  %v2340_v58 = vmul.f32 %v1904_v49, %v7868_v36 }
 0x26f   : > { %2579 = vrot.lane.b32.xlu2 %v1904_v49, %s4469_s18 }
 0x274   : > { %v1903_v44 = vld [vmem:[#allocation2 + $0x40] sm:$0xff] }
 0x275   : > { %v2339_v60 = vmul.f32 %v1903_v44, %v7867_v11  ;;  %v2355_v21 = vpack.c.bf16 %v1904_v49, %v1903_v44 }
 0x276   : > { %2038 = vrot.lane.b32.xlu1 %v1904_v49, %s4465_s14  ;;  %2135 = vrot.lane.b32.xlu0 %v1904_v49, %s4470_s19 }
 0x277   : > { %2676 = vrot.lane.b32.xlu2 %v1904_v49, %s4467_s16  ;;  %v2347_v7 = vpack.c.bf16 %v2340_v58, %v2339_v60  ;;  %2359 = vst [vmem:[#allocation3 + $0x120] sm:$0xff] %v2355_v21 }
 0x279   : > { %2351 = vst [vmem:[#allocation3 + $0x100] sm:$0xff] %v2347_v7 }
 0x27e   : > { %2369 = vrot.lane.b32.xlu1 %v1904_v49, %s4468_s17  ;;  %1913 = vrot.lane.b32.xlu0 %v1903_v44, %s4466_s15 }
 0x27f   : > { %2248 = vrot.lane.b32.xlu2 %v1904_v49, %s4471_s20  ;;  %v6236_v49 = vpop.permute.xlu2 %2157 }
 0x280   : > { %7872 = vst [vmem:[#allocation65_spill] sm:$0xff] %v6236_v49 }
 0x281   : > { %v1764_v13 = vpop.f32.mrf.mxu3 }
 0x282   : > { %1850 = vst [vmem:[#allocation2 + $0x38] sm:$0xf] %v1764_v13 }
 0x286   : > { %2575 = vrot.lane.b32.xlu1 %v1903_v44, %s4469_s18  ;;  %2365 = vrot.lane.b32.xlu0 %v1903_v44, %s4468_s17 }
 0x287   : > { %2034 = vrot.lane.b32.xlu2 %v1903_v44, %s4465_s14  ;;  %v6243_v11 = vpop.permute.xlu2 %2484 }
 0x288   : > { %v1744_v0 = vpop.f32.mrf.mxu2  ;;  %7873 = vst [vmem:[#allocation64_spill] sm:$0xff] %v6243_v11 }
 0x289   : > { %1849 = vst [vmem:[#allocation2 + $0x10] sm:$0xf] %v1744_v0  ;;  %v1906_v61 = vld [vmem:[#allocation2 + $0x38] sm:$0xff] }
 0x28a   : > { %v2342_v57 = vmul.f32 %v1906_v61, %v7870_v16 }
 0x28e   : > { %2672 = vrot.lane.b32.xlu1 %v1903_v44, %s4467_s16  ;;  %2377 = vrot.lane.b32.xlu0 %v1906_v61, %s4468_s17 }
 0x28f   : > { %2462 = vrot.lane.b32.xlu2 %v1903_v44, %s4464_s13 }
 0x290   : > { %v1905_v9 = vld [vmem:[#allocation2 + $0x10] sm:$0xff] }
 0x291   : > { %v2341_v47 = vmul.f32 %v1905_v9, %v7869_v23  ;;  %v2356_v25 = vpack.c.bf16 %v1906_v61, %v1905_v9 }
 0x293   : > { %v2348_v42 = vpack.c.bf16 %v2342_v57, %v2341_v47  ;;  %2360 = vst [vmem:[#allocation3 + $0x128] sm:$0xff] %v2356_v25  ;;  %v7877_v25 = vld [vmem:[#allocation19_spill] sm:$0xff] }
 0x294   : > { %vm1969_vm2 = vcmp.gt.s32.totalorder %v7877_v25, 0 }
 0x295   : > { %2352 = vst [vmem:[#allocation3 + $0x108] sm:$0xff] %v2348_v42  ;;  %v7878_v42 = vmov 0.0  }
 0x296   : > { %2244 = vrot.lane.b32.xlu1 %v1903_v44, %s4471_s20  ;;  %2042 = vrot.lane.b32.xlu0 %v1905_v9, %s4465_s14  ;;  %v3986_v31 = vsel %vm1969_vm2, 1.0, %v7878_v42  ;;  %v4025_v52 = vsel %vm2509_vm13, 1.0, %v7878_v42 }
 0x297   : > { %2131 = vrot.lane.b32.xlu2 %v1903_v44, %s4470_s19 }
 0x29e   : > { %1925 = vrot.lane.b32.xlu1 %v1906_v61, %s4466_s15  ;;  %2583 = vrot.lane.b32.xlu0 %v1905_v9, %s4469_s18 }
 0x29f   : > { %2046 = vrot.lane.b32.xlu2 %v1906_v61, %s4465_s14 }
 0x2a5   : > { %v1804_v37 = vpop.f32.mrf.mxu1 }
 0x2a6   : > { %1852 = vst [vmem:[#allocation2 + $0x70] sm:$0xf] %v1804_v37  ;;  %2587 = vrot.lane.b32.xlu1 %v1906_v61, %s4469_s18  ;;  %2680 = vrot.lane.b32.xlu0 %v1905_v9, %s4467_s16 }
 0x2a7   : > { %2474 = vrot.lane.b32.xlu2 %v1906_v61, %s4464_s13 }
 0x2ac   : > { %v1784_v48 = vpop.f32.mrf.mxu0 }
 0x2ad   : > { %1851 = vst [vmem:[#allocation2 + $0x60] sm:$0xf] %v1784_v48  ;;  %v6223_v20 = vld [vmem:[#allocation2 + $0x70] sm:$0xff] }
 0x2ae   : > { %2256 = vrot.lane.b32.xlu1 %v1906_v61, %s4471_s20  ;;  %2252 = vrot.lane.b32.xlu0 %v1905_v9, %s4471_s20  ;;  %v2344_v27 = vmul.f32 %v6223_v20, %v7871_v6 }
 0x2af   : > { %2143 = vrot.lane.b32.xlu2 %v1906_v61, %s4470_s19 }
 0x2b4   : > { %v6225_v10 = vld [vmem:[#allocation2 + $0x60] sm:$0xff] }
 0x2b5   : > { %v2343_v45 = vmul.f32 %v6225_v10, %v5782_v41  ;;  %v2357_v22 = vpack.c.bf16 %v6223_v20, %v6225_v10 }
 0x2b6   : > { %2684 = vrot.lane.b32.xlu1 %v1906_v61, %s4467_s16  ;;  %2054 = vrot.lane.b32.xlu0 %v6223_v20, %s4465_s14 }
 0x2b7   : > { %v2349_v34 = vpack.c.bf16 %v2344_v27, %v2343_v45  ;;  %2361 = vst [vmem:[#allocation3 + $0x130] sm:$0xff] %v2357_v22  ;;  %1921 = vrot.lane.b32.xlu2 %v1905_v9, %s4466_s15  ;;  %v7880_v27 = vld [vmem:[#allocation5_spill] sm:$0xff] }
 0x2b8   : > { %vm1961_vm12 = vcmp.gt.s32.totalorder %v7880_v27, 0  ;;  %vm2179_vm9 = vcmp.lt.s32.totalorder %v7880_v27, 31 }
 0x2b9   : > { %2353 = vst [vmem:[#allocation3 + $0x110] sm:$0xff] %v2349_v34  ;;  %v7882_v34 = vld [vmem:[#allocation27_spill] sm:$0xff]  ;;  %vm1977_vm3 = vmand %vm1961_vm12, %vm1969_vm2 }
 0x2ba   : > { %vm2187_vm0 = vmand %vm2179_vm9, %vm1969_vm2  ;;  %vm7573_vm2 = vcmp.gt.s32.totalorder %v7906_v46, 0 }
 0x2be   : > { %2470 = vrot.lane.b32.xlu1 %v1905_v9, %s4464_s13  ;;  %2385 = vrot.lane.b32.xlu0 %v6223_v20, %s4468_s17 }
 0x2bf   : > { %2373 = vrot.lane.b32.xlu2 %v1905_v9, %s4468_s17 }
 0x2c1   : > { %v1844_v44 = vpop.f32.mrf.mxu3 }
 0x2c2   : > { %1854 = vst [vmem:[#allocation2 + $0x28] sm:$0xf] %v1844_v44  ;;  %v2077_v44 = vsel %vm7565_vm8, %v7882_v34, %v5816_v38  ;;  %v3978_v38 = vsel %vm1977_vm3, 1.0, %v7878_v42  ;;  %vm2510_vm3 = vcmp.lt.s32.totalorder %v7877_v25, 31 }
 0x2c6   : > { %2139 = vrot.lane.b32.xlu1 %v1905_v9, %s4470_s19  ;;  %2264 = vrot.lane.b32.xlu0 %v6223_v20, %s4471_s20  ;;  %v6278_v9 = vpop.permute.xlu1 %2597 }
 0x2c7   : > { %1933 = vrot.lane.b32.xlu2 %v6223_v20, %s4466_s15  ;;  %7875 = vst [vmem:[#allocation66_spill] sm:$0xff] %v6278_v9 }
 0x2c8   : > { %v1824_v60 = vpop.f32.mrf.mxu2 }
 0x2c9   : > { %1853 = vst [vmem:[#allocation2 + $0x78] sm:$0xf] %v1824_v60  ;;  %v6250_v36 = vpop.permute.xlu2 %2579  ;;  %v6252_v58 = vld [vmem:[#allocation2 + $0x28] sm:$0xff] }
 0x2ca   : > { %v2346_v13 = vmul.f32 %v6252_v58, %v5808_v53 }
 0x2ce   : > { %2595 = vrot.lane.b32.xlu1 %v6223_v20, %s4469_s18  ;;  %1929 = vrot.lane.b32.xlu0 %v6225_v10, %s4466_s15 }
 0x2cf   : > { %2482 = vrot.lane.b32.xlu2 %v6223_v20, %s4464_s13 }
 0x2d0   : > { %v6260_v21 = vld [vmem:[#allocation2 + $0x78] sm:$0xff] }
 0x2d1   : > { %v2345_v7 = vmul.f32 %v6260_v21, %v5850_v30  ;;  %v2358_v0 = vpack.c.bf16 %v6252_v58, %v6260_v21  ;;  %v6268_v14 = vpop.permute.xlu2 %2676 }
 0x2d3   : > { %v2350_v61 = vpack.c.bf16 %v2346_v13, %v2345_v7  ;;  %2362 = vst [vmem:[#allocation3 + $0x138] sm:$0xff] %v2358_v0  ;;  %v3994_v0 = vsel %vm2187_vm0, 1.0, %v7878_v42 }
 0x2d5   : > { %2354 = vst [vmem:[#allocation3 + $0x118] sm:$0xff] %v2350_v61 }
 0x2d6   : > { %2050 = vrot.lane.b32.xlu1 %v6225_v10, %s4465_s14  ;;  %2478 = vrot.lane.b32.xlu0 %v6225_v10, %s4464_s13 }
 0x2d7   : > { %2692 = vrot.lane.b32.xlu2 %v6223_v20, %s4467_s16 }
 0x2d9   : > { %v6280_v23 = vpop.permute.xlu2 %2248 }
 0x2de   : > { %2381 = vrot.lane.b32.xlu1 %v6225_v10, %s4468_s17  ;;  %1941 = vrot.lane.b32.xlu0 %v6252_v58, %s4466_s15 }
 0x2df   : > { %2591 = vrot.lane.b32.xlu2 %v6225_v10, %s4469_s18 }
 0x2e0   : > { %v6288_v47 = vpop.permute.xlu1 %1917  ;;  %v6290_v16 = vpop.permute.xlu0 %2466 }
 0x2e1   : > { %v6292_v57 = vpop.permute.xlu2 %2034 }
 0x2e2   : > { %7876 = vst [vmem:[#allocation68_spill] sm:$0xff] %v6292_v57 }
 0x2e6   : > { %2603 = vrot.lane.b32.xlu1 %v6252_v58, %s4469_s18  ;;  %2159 = vrot.lane.b32.xlu0 %v6252_v58, %s4470_s19 }
 0x2e7   : > { %2688 = vrot.lane.b32.xlu2 %v6225_v10, %s4467_s16 }
 0x2e8   : > { %v2039_v37 = vpop.permute.xlu1 %2038  ;;  %v6304_v54 = vpop.permute.xlu0 %2135 }
 0x2e9   : > { %v2078_v48 = vsel %vm7565_vm8, %v6292_v57, %v2039_v37  ;;  %v6309_v45 = vpop.permute.xlu2 %2462 }
 0x2ea   : > { %7879 = vst [vmem:[#allocation69_spill] sm:$0xff] %v6309_v45  ;;  %v6312_v22 = vmul.f32 %v3986_v31, %v2078_v48 }
 0x2ec   : > { %7881 = vst [vmem:[#allocation70_spill] sm:$0xff] %v6312_v22  ;;  %v6320_v60 = vmul.f32 %v6312_v22, %v2077_v44 }
 0x2ee   : > { %7883 = vst [vmem:[#allocation14_spill] sm:$0xff] %v6320_v60  ;;  %1937 = vrot.lane.b32.xlu1 %v6260_v21, %s4466_s15  ;;  %2062 = vrot.lane.b32.xlu0 %v6252_v58, %s4465_s14  ;;  %v7891_v60 = vld [vmem:[#allocation40_spill] sm:$0xff] }
 0x2ef   : > { %2260 = vrot.lane.b32.xlu2 %v6225_v10, %s4471_s20  ;;  %v2174_v22 = vsel %vm7566_vm1, %v7891_v60, %v7890_v28 }
 0x2f0   : > { %v6337_v7 = vpop.permute.xlu1 %2369  ;;  %v6339_v13 = vpop.permute.xlu0 %1913 }
 0x2f1   : > { %7884 = vst [vmem:[#allocation8_spill] sm:$0xff] %v6339_v13  ;;  %v1957_v61 = vsel %vm1943_vm4, %v6339_v13, %v6288_v47  ;;  %v6347_v31 = vpop.permute.xlu2 %2131 }
 0x2f2   : > { %7885 = vst [vmem:[#allocation9_spill] sm:$0xff] %v6347_v31  ;;  %v6349_v48 = vmul.f32 %v3978_v38, %v1957_v61  ;;  %v2175_v44 = vsel %vm7566_vm1, %v6347_v31, %v6304_v54 }
 0x2f3   : > { %v6359_v11 = vmul.f32 %v3994_v0, %v2175_v44 }
 0x2f4   : > { %7886 = vst [vmem:[#allocation15_spill] sm:$0xff] %v6349_v48  ;;  %v6366_v38 = vmul.f32 %v6349_v48, %v1956_v55 }
 0x2f5   : > { %7889 = vst [vmem:[#allocation10_spill] sm:$0xff] %v6359_v11  ;;  %v6369_v61 = vmul.f32 %v6359_v11, %v2174_v22 }
 0x2f6   : > { %7892 = vst [vmem:[#allocation19_spill] sm:$0xff] %v6366_v38  ;;  %2389 = vrot.lane.b32.xlu1 %v6260_v21, %s4468_s17  ;;  %2147 = vrot.lane.b32.xlu0 %v6225_v10, %s4470_s19  ;;  %v7897_v10 = vld [vmem:[#allocation75_spill] sm:$0xff] }
 0x2f7   : > { %7893 = vst [vmem:[#allocation5_spill] sm:$0xff] %v6369_v61  ;;  %2272 = vrot.lane.b32.xlu2 %v6252_v58, %s4471_s20  ;;  %v2618_v57 = vsel %vm7578_vm6, %v7898_v56, %v7897_v10  ;;  %v7901_v10 = vld [vmem:[#allocation25_spill] sm:$0xff]  ;;  %v7904_v38 = vld [vmem:[#allocation7_spill] sm:$0xff] }
 0x2f8   : > { %v6381_v55 = vpop.permute.xlu1 %2575  ;;  %v6383_v0 = vpop.permute.xlu0 %2365  ;;  %vm7567_vm14 = vcmp.gt.s32.totalorder %v7901_v10, 0  ;;  %vm1962_vm5 = vcmp.gt.s32.totalorder %v7904_v38, 0  ;;  %v7907_v56 = vld [vmem:[#allocation23_spill] sm:$0xff] }
 0x2f9   : > { %7895 = vst [vmem:[#allocation73_spill] sm:$0xff] %v6381_v55  ;;  %v2619_v22 = vsel %vm7578_vm6, %v6381_v55, %v6250_v36  ;;  %v6389_v44 = vpop.permute.xlu2 %2046  ;;  %v7900_v55 = vld [vmem:[#allocation31_spill] sm:$0xff]  ;;  %v3988_v11 = vsel %vm7567_vm14, 1.0, %v7878_v42 }
 0x2fa   : > { %7896 = vst [vmem:[#allocation22_spill] sm:$0xff] %v6383_v0  ;;  %v6391_v12 = vmul.f32 %v4025_v52, %v2619_v22  ;;  %vm1970_vm15 = vcmp.gt.s32.totalorder %v7900_v55, 0 }
 0x2fb   : > { %vm1978_vm0 = vmand %vm1962_vm5, %vm1970_vm15 }
 0x2fc   : > { %v6398_v43 = vmul.f32 %v6391_v12, %v2618_v57  ;;  %v3987_v57 = vsel %vm1970_vm15, 1.0, %v7878_v42 }
 0x2fe   : > { %2151 = vrot.lane.b32.xlu1 %v6223_v20, %s4470_s19  ;;  %2486 = vrot.lane.b32.xlu0 %v6260_v21, %s4464_s13  ;;  %v4002_v20 = vsel %vm1961_vm12, 1.0, %v7878_v42 }
 0x2ff   : > { %2058 = vrot.lane.b32.xlu2 %v6260_v21, %s4465_s14 }
 0x300   : > { %v6406_v61 = vpop.permute.xlu1 %2672  ;;  %v6408_v52 = vpop.permute.xlu0 %2377 }
 0x301   : > { %7899 = vst [vmem:[#allocation71_spill] sm:$0xff] %v6406_v61  ;;  %v6410_v22 = vpop.permute.xlu2 %2474 }
 0x306   : > { %2149 = vrot.lane.b32.xlu1 %v7871_v6, %s4470_s19  ;;  %2145 = vrot.lane.b32.xlu0 %v5782_v41, %s4470_s19 }
 0x307   : > { %2599 = vrot.lane.b32.xlu2 %v6260_v21, %s4469_s18 }
 0x308   : > { %v6429_v31 = vpop.permute.xlu1 %2244  ;;  %v2043_v6 = vpop.permute.xlu0 %2042 }
 0x309   : > { %7902 = vst [vmem:[#allocation40_spill] sm:$0xff] %v6429_v31  ;;  %v2288_v41 = vsel %vm7582_vm7, %v6429_v31, %v6280_v23  ;;  %v2074_v8 = vsel %vm7565_vm8, %v2043_v6, %v6389_v44  ;;  %v2076_v9 = vsel %vm7565_vm8, %v2039_v37, %v2043_v6  ;;  %v6440_v19 = vpop.permute.xlu2 %2143  ;;  %v2287_v31 = vsel %vm7582_vm7, %v7908_v40, %v7907_v56  ;;  %v7910_v37 = vld [vmem:[#allocation28_spill] sm:$0xff]  ;;  %vm1979_vm8 = vmand %vm7573_vm2, %vm7567_vm14 }
 0x30a   : > { %7903 = vst [vmem:[#allocation21_spill] sm:$0xff] %v6440_v19  ;;  %v6443_v48 = vmul.f32 %v4002_v20, %v2288_v41  ;;  %v2099_v35 = vmul.f32 %v3987_v57, %v2076_v9  ;;  %v2100_v13 = vmul.f32 %v3988_v11, %v2074_v8  ;;  %v3979_v11 = vsel %vm1978_vm0, 1.0, %v7878_v42  ;;  %vm2720_vm0 = vmand %vm2179_vm9, %vm2510_vm3 }
 0x30c   : > { %7905 = vst [vmem:[#allocation75_spill] sm:$0xff] %v6443_v48  ;;  %v6452_v34 = vmul.f32 %v6443_v48, %v2287_v31  ;;  %v2107_v6 = vmul.f32 %v2099_v35, %v7910_v37  ;;  %v2108_v49 = vmul.f32 %v2100_v13, %v7911_v51  ;;  %v2122_v20 = vpack.c.bf16 %v2100_v13, %v2099_v35  ;;  %v7912_v35 = vld [vmem:[#allocation4_spill] sm:$0xff] }
 0x30d   : > { %v4026_v51 = vsel %vm2510_vm3, 1.0, %v7878_v42  ;;  %vm7571_vm1 = vcmp.lt.s32.totalorder %v7912_v35, 31 }
 0x30e   : > { %7909 = vst [vmem:[#allocation31_spill] sm:$0xff] %v6452_v34  ;;  %v2114_v8 = vpack.c.bf16 %v2108_v49, %v2107_v6  ;;  %2391 = vrot.lane.b32.xlu1 %v5808_v53, %s4468_s17  ;;  %2696 = vrot.lane.b32.xlu0 %v6260_v21, %s4467_s16  ;;  %v3980_v53 = vsel %vm1979_vm8, 1.0, %v7878_v42  ;;  %vm2719_vm14 = vmand %vm7571_vm1, %vm2509_vm13  ;;  %vm2395_vm8 = vcmp.lt.s32.totalorder %v4515_v1, 127 }
 0x30f   : > { %2126 = vst [vmem:[#allocation3 + $0x68] sm:$0xff] %v2122_v20  ;;  %2694 = vrot.lane.b32.xlu2 %v5850_v30, %s4467_s16  ;;  %v4033_v20 = vsel %vm2719_vm14, 1.0, %v7878_v42 }
 0x310   : > { %2118 = vst [vmem:[#allocation3 + $0x48] sm:$0xff] %v2114_v8  ;;  %v6474_v56 = vpop.permute.xlu1 %1925  ;;  %v6476_v49 = vpop.permute.xlu0 %2583  ;;  %v7913_v8 = vld [vmem:[#allocation32_spill] sm:$0xff] }
 0x311   : > { %v2617_v9 = vsel %vm7578_vm6, %v6250_v36, %v6476_v49  ;;  %v1922_v13 = vpop.permute.xlu2 %1921 }
 0x312   : > { %v2639_v31 = vmul.f32 %v4026_v51, %v2617_v9  ;;  %v1953_v57 = vsel %vm1943_vm4, %v1922_v13, %v6474_v56  ;;  %v1955_v41 = vsel %vm1943_vm4, %v6288_v47, %v1922_v13  ;;  %v2716_v47 = vsel %vm7583_vm11, %v6406_v61, %v6268_v14  ;;  %v7914_v51 = vld [vmem:[#allocation24_spill] sm:$0xff] }
 0x313   : > { %v2002_v37 = vmul.f32 %v3979_v11, %v1955_v41  ;;  %v2003_v6 = vmul.f32 %v3980_v53, %v1953_v57  ;;  %v7915_v53 = vld [vmem:[#allocation35_spill] sm:$0xff]  ;;  %v4009_v57 = vsel %vm7571_vm1, 1.0, %v7878_v42 }
 0x314   : > { %v2647_v48 = vmul.f32 %v2639_v31, %v7913_v8  ;;  %v2662_v36 = vpack.c.bf16 %v2639_v31, %v6391_v12  ;;  %v2409_v12 = vsel %vm2395_vm8, %v6383_v0, %v6337_v7 }
 0x315   : > { %v2010_v11 = vmul.f32 %v2002_v37, %v7914_v51  ;;  %v2011_v9 = vmul.f32 %v2003_v6, %v7915_v53  ;;  %v2025_v13 = vpack.c.bf16 %v2003_v6, %v2002_v37  ;;  %v4034_v37 = vsel %vm2720_vm0, 1.0, %v7878_v42  ;;  %vm2518_vm0 = vmand %vm1961_vm12, %vm2510_vm3 }
 0x316   : > { %v2654_v31 = vpack.c.bf16 %v2647_v48, %v6398_v43  ;;  %2666 = vst [vmem:[#allocation3 + $0x1e0] sm:$0xff] %v2662_v36  ;;  %2155 = vrot.lane.b32.xlu1 %v6260_v21, %s4470_s19  ;;  %2393 = vrot.lane.b32.xlu0 %v6252_v58, %s4468_s17  ;;  %v2743_v6 = vmul.f32 %v4033_v20, %v2716_v47  ;;  %v4010_v43 = vsel %vm2179_vm9, 1.0, %v7878_v42  ;;  %v7916_v47 = vld [vmem:[#allocation20_spill] sm:$0xff]  ;;  %vm7572_vm9 = vcmp.gt.s32.totalorder %v7912_v35, 0 }
 0x317   : > { %v2017_v41 = vpack.c.bf16 %v2011_v9, %v2010_v11  ;;  %2029 = vst [vmem:[#allocation3 + $0x28] sm:$0xff] %v2025_v13  ;;  %2490 = vrot.lane.b32.xlu2 %v6252_v58, %s4464_s13  ;;  %v2428_v48 = vmul.f32 %v4009_v57, %v2409_v12  ;;  %v7917_v9 = vld [vmem:[#allocation72_spill] sm:$0xff]  ;;  %v7918_v57 = vld [vmem:[#allocation18_spill] sm:$0xff]  ;;  %v7919_v12 = vld [vmem:[#allocation33_spill] sm:$0xff]  ;;  %vm7575_vm12 = vcmp.lt.s32.totalorder %v7906_v46, 31  ;;  %vm2180_vm3 = vcmp.lt.s32.totalorder %v7904_v38, 31 }
 0x318   : > { %2658 = vst [vmem:[#allocation3 + $0x1c0] sm:$0xff] %v2654_v31  ;;  %v6523_v8 = vpop.permute.xlu1 %2587  ;;  %v6525_v51 = vpop.permute.xlu0 %2680  ;;  %v2408_v13 = vsel %vm2395_vm8, %v7917_v9, %v7916_v47  ;;  %v2715_v31 = vsel %vm7583_vm11, %v7919_v12, %v7918_v57  ;;  %v4452_v12 = vld [vmem:[#allocation2 + $0x48] sm:$0xff]  ;;  %vm2517_vm14 = vmand %vm7572_vm9, %vm2509_vm13  ;;  %vm2511_vm13 = vcmp.lt.s32.totalorder %v7900_v55, 31 }
 0x319   : > { %2021 = vst [vmem:[#allocation3 + $0x8] sm:$0xff] %v2017_v41  ;;  %v2714_v36 = vsel %vm7583_vm11, %v6268_v14, %v6525_v51  ;;  %v6534_v11 = vpop.permute.xlu2 %2373  ;;  %v2713_v14 = vsel %vm7583_vm11, %v7918_v57, %v6055_v32  ;;  %v2436_v9 = vmul.f32 %v2428_v48, %v2408_v13  ;;  %v4003_v32 = vsel %vm1962_vm5, 1.0, %v7878_v42 }
 0x31a   : > { %v2744_v53 = vmul.f32 %v4034_v37, %v2714_v36  ;;  %v2407_v20 = vsel %vm2395_vm8, %v6337_v7, %v6534_v11  ;;  %v2406_v7 = vsel %vm2395_vm8, %v7916_v47, %v6057_v18  ;;  %v2751_v37 = vmul.f32 %v2743_v6, %v2715_v31 }
 0x31b   : > { %v2429_v41 = vmul.f32 %v4010_v43, %v2407_v20 }
 0x31c   : > { %v2752_v36 = vmul.f32 %v2744_v53, %v2713_v14  ;;  %v2767_v61 = vpack.c.bf16 %v2744_v53, %v2743_v6  ;;  %v7921_v14 = vld [vmem:[#allocation36_spill] sm:$0xff] }
 0x31d   : > { %v2437_v0 = vmul.f32 %v2429_v41, %v2406_v7  ;;  %v2452_v34 = vpack.c.bf16 %v2429_v41, %v2428_v48  ;;  %v4404_v43 = vld [vmem:[#allocation3 + $0x1dc] sm:$0xf0]  ;;  %v4269_v20 = vld [vmem:[#allocation3 + $0x1e0] sm:$0xf0]  ;;  %v7922_v7 = vld [vmem:[#allocation38_spill] sm:$0xff] }
 0x31e   : > { %v2759_v40 = vpack.c.bf16 %v2752_v36, %v2751_v37  ;;  %2771 = vst [vmem:[#allocation3 + $0x220] sm:$0xff] %v2767_v61  ;;  %2698 = vrot.lane.b32.xlu1 %v4452_v12, %s4467_s16  ;;  %2266 = vrot.lane.b32.xlu0 %v5850_v30, %s4471_s20  ;;  %v4004_v61 = vsel %vm7573_vm2, 1.0, %v7878_v42 }
 0x31f   : > { %v2444_v47 = vpack.c.bf16 %v2437_v0, %v2436_v9  ;;  %2456 = vst [vmem:[#allocation3 + $0x160] sm:$0xff] %v2452_v34  ;;  %2488 = vrot.lane.b32.xlu2 %v4452_v12, %s4464_s13  ;;  %v4267_v6 = vld [vmem:[#allocation3 + $0x1c0] sm:$0xf]  ;;  %v4400_v48 = vld [vmem:[#allocation3 + $0x1c4] sm:$0xf] }
 0x320   : > { %2763 = vst [vmem:[#allocation3 + $0x200] sm:$0xff] %v2759_v40  ;;  %v6566_v53 = vpop.permute.xlu1 %2256  ;;  %v2253_v30 = vpop.permute.xlu0 %2252  ;;  %v4268_v13 = vor.u32 %v4404_v43, %v4267_v6  ;;  %v4272_v57 = vor.u32 %v4400_v48, %v4269_v20  ;;  %v7920_v40 = vld [vmem:[#allocation42_spill] sm:$0xff] }
 0x321   : > { %2448 = vst [vmem:[#allocation3 + $0x140] sm:$0xff] %v2444_v47  ;;  %v2284_v0 = vsel %vm7582_vm7, %v2253_v30, %v6566_v53  ;;  %v2286_v34 = vsel %vm7582_vm7, %v6280_v23, %v2253_v30  ;;  %v6574_v9 = vpop.permute.xlu2 %1933  ;;  %v2283_v41 = vsel %vm7582_vm7, %v7921_v14, %v7920_v40 }
 0x322   : > { %v2309_v12 = vmul.f32 %v4003_v32, %v2286_v34  ;;  %v2310_v31 = vmul.f32 %v4004_v61, %v2284_v0  ;;  %3217 = vmatpush.bf16.msra.mxu0 %v4268_v13  ;;  %3243 = vmatpush.bf16.msrb.mxu2 %v4272_v57  ;;  %v4453_v0 = vld [vmem:[#allocation2 + $0x8] sm:$0xff]  ;;  %v4018_v34 = vsel %vm2518_vm0, 1.0, %v7878_v42  ;;  %vm7926_vm0 = vcmp.gt.s32.totalorder %v7901_v10, 0 }
 0x323   : > { %vm2189_vm1 = vmand %vm7575_vm12, %vm7926_vm0  ;;  %vm7936_vm12 = vcmask 130048  }
 0x324   : > { %v2317_v37 = vmul.f32 %v2309_v12, %v7922_v7  ;;  %v2318_v36 = vmul.f32 %v2310_v31, %v2283_v41  ;;  %v2332_v43 = vpack.c.bf16 %v2310_v31, %v2309_v12  ;;  %v7924_v7 = vld [vmem:[#allocation17_spill] sm:$0xff] }
 0x325   : > { %v4412_v23 = vld [vmem:[#allocation3 + $0x21c] sm:$0xf0]  ;;  %v4301_v61 = vld [vmem:[#allocation3 + $0x220] sm:$0xf0] }
 0x326   : > { %v2324_v20 = vpack.c.bf16 %v2318_v36, %v2317_v37  ;;  %2336 = vst [vmem:[#allocation3 + $0xe8] sm:$0xff] %v2332_v43  ;;  %2700 = vrot.lane.b32.xlu0 %v6252_v58, %s4467_s16  ;;  %v4017_v58 = vsel %vm2517_vm14, 1.0, %v7878_v42  ;;  %v7925_v37 = vld [vmem:[#allocation34_spill] sm:$0xff]  ;;  %v2503_v43 = vsel %vm7574_vm10, %v7924_v7, %v6031_v63  ;;  %vm2188_vm14 = vmand %vm2180_vm3, %vm1970_vm15  ;;  %v4027_v63 = vsel %vm2511_vm13, 1.0, %v7878_v42 }
 0x327   : > { %2268 = vrot.lane.b32.xlu2 %v6260_v21, %s4471_s20  ;;  %v4299_v32 = vld [vmem:[#allocation3 + $0x200] sm:$0xf]  ;;  %v4408_v47 = vld [vmem:[#allocation3 + $0x204] sm:$0xf]  ;;  %v2506_v21 = vsel %vm7574_vm10, %v6309_v45, %v6290_v16  ;;  %v2505_v36 = vsel %vm7574_vm10, %v7925_v37, %v7924_v7  ;;  %vm7576_vm15 = vcmp.lt.s32.totalorder %v7901_v10, 31 }
 0x328   : > { %2328 = vst [vmem:[#allocation3 + $0xc8] sm:$0xff] %v2324_v20  ;;  %v6586_v6 = vpop.permute.xlu1 %2684  ;;  %v6588_v48 = vpop.permute.xlu0 %2054  ;;  %v4300_v30 = vor.u32 %v4412_v23, %v4299_v32  ;;  %v4304_v13 = vor.u32 %v4408_v47, %v4301_v61  ;;  %v2541_v12 = vmul.f32 %v4017_v58, %v2506_v21  ;;  %v6639_v32 = vld [vmem:[%s7414_s4] sm:$0x77]  ;;  %v2615_v47 = vsel %vm7578_vm6, %v6476_v49, %v6523_v8  ;;  %v7929_v58 = vld [vmem:[#allocation30_spill] sm:$0xff] }
 0x329   : > { %v6590_v57 = vpop.permute.xlu2 %2482  ;;  %7927 = vst [vmem:[#allocation7_spill] sm:$0xff] %v6639_v32  ;;  %v2850_v61 = vunpack.c.h.b16 %v6639_v32  ;;  %v4028_v7 = vsel %vm7576_vm15, 1.0, %v7878_v42  ;;  %vm7937_vm15 = vmmov %vm7936_vm12  ;;  %v2405_v32 = vsel %vm2395_vm8, %v6534_v11, %v6408_v52 }
 0x32a   : > { %3237 = vmatpush.bf16.msra.mxu1 %v4300_v30  ;;  %3263 = vmatpush.bf16.msra.mxu3 %v4304_v13  ;;  %v7928_v13 = vld [vmem:[#allocation39_spill] sm:$0xff] }
 0x32b   : > { %v2614_v21 = vsel %vm7578_vm6, %v7929_v58, %v7928_v13 }
 0x32f   : > { %2153 = vrot.lane.b32.xlu2 %v4453_v0, %s4470_s19  ;;  %v3995_v0 = vsel %vm2188_vm14, 1.0, %v7878_v42  ;;  %vm7932_vm14 = vcmp.lt.s32.totalorder %v4515_v1, 31 }
 0x330   : > { %v6607_v31 = vpop.permute.xlu1 %2470  ;;  %v6609_v14 = vpop.permute.xlu0 %2385 }
 0x331   : > { %v2504_v25 = vsel %vm7574_vm10, %v6290_v16, %v6607_v31  ;;  %v6615_v27 = vpop.permute.xlu2 %2692  ;;  %v2549_v16 = vmul.f32 %v2541_v12, %v2505_v36  ;;  %v7930_v36 = vld [vmem:[#allocation12_spill] sm:$0xff] }
 0x332   : > { %7923 = vst [vmem:[#allocation25_spill] sm:$0xff] %v6615_v27  ;;  %v2542_v41 = vmul.f32 %v4018_v34, %v2504_v25  ;;  %v3996_v34 = vsel %vm2189_vm1, 1.0, %v7878_v42  ;;  %v2640_v25 = vmul.f32 %v4027_v63, %v2615_v47  ;;  %vm1964_vm0 = vcmp.gt.s32.totalorder %v7930_v36, 0  ;;  %vm7933_vm1 = vmmov %vm7932_vm14  ;;  %v7934_v63 = vld [vmem:[#allocation11_spill] sm:$0xff]  ;;  %v7935_v47 = vld [vmem:[#allocation52_spill] sm:$0xff] }
 0x333   : > { %vm1965_vm2 = vcmp.gt.s32.totalorder %v7934_v63, 0  ;;  %vm1973_vm10 = vcmp.gt.s32.totalorder %v7935_v47, 0  ;;  %v7939_v27 = vld [vmem:[#allocation45_spill] sm:$0xff] }
 0x334   : > { %v2550_v20 = vmul.f32 %v2542_v41, %v2503_v43  ;;  %v2565_v23 = vpack.c.bf16 %v2542_v41, %v2541_v12  ;;  %v6656_v12 = vpack.c.b16 %v2850_v61, %v2850_v61  ;;  %v7931_v43 = vld [vmem:[#allocation53_spill] sm:$0xff]  ;;  %v7938_v61 = vld [vmem:[#allocation74_spill] sm:$0xff] }
 0x335   : > { %vm1972_vm9 = vcmp.gt.s32.totalorder %v7931_v43, 0 }
 0x336   : > { %v2557_v30 = vpack.c.bf16 %v2550_v20, %v2549_v16  ;;  %2569 = vst [vmem:[#allocation3 + $0x1a0] sm:$0xff] %v2565_v23  ;;  %4330 = vmatmul.msk.bf16.vlgmr.msra.gmra.mxu3 %vm7936_vm12, %v6656_v12  ;;  %4329 = vmatmul.msk.bf16.vlgmr.msra.gmra.mxu1 %vm7937_vm15, %v6656_v12  ;;  %vm7940_vm12 = vmmov %vm7933_vm1 }
 0x337   : > { %v2170_v37 = vsel %vm7940_vm12, %v6080_v4, %v7939_v27  ;;  %vm7941_vm15 = vmmov %vm7933_vm1 }
 0x338   : > { %2561 = vst [vmem:[#allocation3 + $0x180] sm:$0xff] %v2557_v30  ;;  %v2140_v49 = vpop.permute.xlu1 %2139  ;;  %v6658_v41 = vpop.permute.xlu0 %2264  ;;  %v6683_v30 = vsel %vm2395_vm8, %v6057_v18, %v7938_v61  ;;  %v2172_v18 = vsel %vm7941_vm15, %v7890_v28, %v6080_v4  ;;  %vm6719_vm12 = vmand %vm1965_vm2, %vm1973_vm10 }
 0x339   : > { %v2171_v16 = vsel %vm7932_vm14, %v2140_v49, %v6440_v19  ;;  %v2173_v20 = vsel %vm7933_vm1, %v6304_v54, %v2140_v49  ;;  %v6671_v23 = vpop.permute.xlu2 %2591  ;;  %vm2721_vm14 = vmand %vm2180_vm3, %vm2511_vm13  ;;  %v4384_v19 = vld [vmem:[#allocation3 + $0x144] sm:$0xf] }
 0x33a   : > { %v2212_v54 = vmul.f32 %v3995_v0, %v2173_v20  ;;  %v2213_v58 = vmul.f32 %v3996_v34, %v2171_v16  ;;  %v2613_v49 = vsel %vm7578_vm6, %v6523_v8, %v6671_v23  ;;  %v6705_v0 = vsel %vm1943_vm4, %v6170_v17, %v7888_v3  ;;  %vm1980_vm1 = vmand %vm1964_vm0, %vm1972_vm9 }
 0x33b   : > { %v2641_v34 = vmul.f32 %v4028_v7, %v2613_v49  ;;  %v2612_v8 = vsel %vm7578_vm6, %v7928_v13, %v6144_v15  ;;  %v2648_v17 = vmul.f32 %v2640_v25, %v2614_v21  ;;  %v4035_v28 = vsel %vm2721_vm14, 1.0, %v7878_v42  ;;  %vm6728_vm15 = vmand %vm1962_vm5, %vm2511_vm13  ;;  %v7946_v7 = vld [vmem:[#allocation37_spill] sm:$0xff] }
 0x33c   : > { %v2220_v16 = vmul.f32 %v2212_v54, %v2172_v18  ;;  %v2221_v20 = vmul.f32 %v2213_v58, %v2170_v37  ;;  %v2235_v4 = vpack.c.bf16 %v2213_v58, %v2212_v54  ;;  %vm7947_vm6 = vcmp.lt.s32.totalorder %v4515_v1, 32  ;;  %v7948_v58 = vld [vmem:[#allocation44_spill] sm:$0xff] }
 0x33d   : > { %v2649_v37 = vmul.f32 %v2641_v34, %v2612_v8  ;;  %v2663_v13 = vpack.c.bf16 %v2641_v34, %v2640_v25  ;;  %v6736_v54 = vsel %vm7947_vm6, %v6120_v50, %v7946_v7  ;;  %v6742_v21 = vsel %vm7582_vm7, %v6168_v26, %v7948_v58  ;;  %v4396_v18 = vld [vmem:[#allocation3 + $0x19c] sm:$0xf0]  ;;  %v4237_v27 = vld [vmem:[#allocation3 + $0x1a0] sm:$0xf0] }
 0x33e   : > { %v2227_v55 = vpack.c.bf16 %v2221_v20, %v2220_v16  ;;  %2239 = vst [vmem:[#allocation3 + $0xa8] sm:$0xff] %v2235_v4  ;;  %v3981_v49 = vsel %vm1980_vm1, 1.0, %v7878_v42  ;;  %v6745_v8 = vld [vmem:[#allocation3 + $0x100] sm:$0xf]  ;;  %v6751_v50 = vsel %vm7582_vm7, %v7920_v40, %v6168_v26  ;;  %v2712_v25 = vsel %vm7583_vm11, %v6525_v51, %v6586_v6 }
 0x33f   : > { %v2655_v34 = vpack.c.bf16 %v2649_v37, %v2648_v17  ;;  %2667 = vst [vmem:[#allocation3 + $0x1e8] sm:$0xff] %v2663_v13  ;;  %v3982_v16 = vsel %vm6719_vm12, 1.0, %v7878_v42  ;;  %vm7949_vm6 = vcmp.lt.s32.totalorder %v7901_v10, 31  ;;  %vm7950_vm5 = vcmp.lt.s32.totalorder %v7906_v46, 31  ;;  %v4235_v26 = vld [vmem:[#allocation3 + $0x180] sm:$0xf] }
 0x340   : > { %vm6764_vm13 = vmand %vm7950_vm5, %vm7949_vm6  ;;  %v4392_v40 = vld [vmem:[#allocation3 + $0x184] sm:$0xf]  ;;  %v4011_v51 = vsel %vm2180_vm3, 1.0, %v7878_v42  ;;  %v4019_v4 = vsel %vm6728_vm15, 1.0, %v7878_v42  ;;  %2231 = vst [vmem:[#allocation3 + $0x88] sm:$0xff] %v2227_v55  ;;  %v6774_v3 = vpop.permute.xlu1 %2595  ;;  %v1930_v17 = vpop.permute.xlu0 %1929  ;;  %v4236_v37 = vor.u32 %v4396_v18, %v4235_v26  ;;  %vm7953_vm3 = vcmp.lt.s32.totalorder %v4515_v1, 97 }
 0x341   : > { %v4240_v13 = vor.u32 %v4392_v40, %v4237_v27  ;;  %v4203_v58 = vld [vmem:[#allocation3 + $0x140] sm:$0xf]  ;;  %v2502_v38 = vsel %vm7953_vm3, %v6607_v31, %v6410_v22  ;;  %2659 = vst [vmem:[#allocation3 + $0x1c8] sm:$0xff] %v2655_v34  ;;  %v1949_v15 = vsel %vm1943_vm4, %v1930_v17, %v6574_v9  ;;  %v1951_v27 = vsel %vm1943_vm4, %v6474_v56, %v1930_v17  ;;  %v6790_v55 = vpop.permute.xlu2 %2688  ;;  %v4376_v26 = vld [vmem:[#allocation3 + $0x104] sm:$0xf]  ;;  %vm7954_vm1 = vmmov %vm7949_vm6 }
 0x342   : > { %v4380_v18 = vld [vmem:[#allocation3 + $0x11c] sm:$0xf0]  ;;  %v2745_v40 = vmul.f32 %v4035_v28, %v2712_v25  ;;  %v2004_v11 = vmul.f32 %v3981_v49, %v1951_v27  ;;  %v2005_v45 = vmul.f32 %v3982_v16, %v1949_v15  ;;  %v4036_v31 = vsel %vm6764_vm13, 1.0, %v7878_v42  ;;  %3218 = vmatpush.bf16.msra.mxu0 %v4236_v37  ;;  %v4205_v15 = vld [vmem:[#allocation3 + $0x160] sm:$0xf0] }
 0x343   : > { %v4388_v34 = vld [vmem:[#allocation3 + $0x15c] sm:$0xf0]  ;;  %vm7584_vm14 = vcmp.lt.s32.totalorder %v7931_v43, 31  ;;  %v2710_v56 = vsel %vm7583_vm11, %v6586_v6, %v6790_v55  ;;  %3244 = vmatpush.bf16.msrb.mxu2 %v4240_v13  ;;  %vm7955_vm12 = vcmp.gt.s32.totalorder %v7906_v46, 0  ;;  %v4172_v49 = vor.u32 %v4380_v18, %v6745_v8  ;;  %v4173_v6 = vld [vmem:[#allocation3 + $0x120] sm:$0xf0] }
 0x344   : > { %v4204_v17 = vor.u32 %v4388_v34, %v4203_v58  ;;  %vm6804_vm15 = vmand %vm7955_vm12, %vm7954_vm1  ;;  %v2543_v25 = vmul.f32 %v4019_v4, %v2502_v38  ;;  %v2012_v16 = vmul.f32 %v2004_v11, %v6042_v29  ;;  %v2013_v20 = vmul.f32 %v2005_v45, %v6091_v33 }
 0x345   : > { %v2026_v37 = vpack.c.bf16 %v2005_v45, %v2004_v11  ;;  %vm6815_vm6 = vmand %vm1964_vm0, %vm7584_vm14  ;;  %v6819_v58 = vmul.f32 %v4011_v51, %v2405_v32  ;;  %v2746_v13 = vmul.f32 %v4036_v31, %v2710_v56  ;;  %v4208_v8 = vor.u32 %v4384_v19, %v4205_v15  ;;  %v7960_v51 = vld [vmem:[#allocation46_spill] sm:$0xff] }
 0x346   : > { %v4176_v4 = vor.u32 %v4376_v26, %v4173_v6  ;;  %v2753_v29 = vmul.f32 %v2745_v40, %v6063_v2  ;;  %v2018_v38 = vpack.c.bf16 %v2013_v20, %v2012_v16  ;;  %3219 = vmatpush.bf16.msra.mxu0 %v4204_v17  ;;  %v3989_v33 = vsel %vm1972_vm9, 1.0, %v7878_v42 }
 0x347   : > { %2030 = vst [vmem:[#allocation3 + $0x30] sm:$0xff] %v2026_v37  ;;  %v3990_v45 = vsel %vm1973_vm10, 1.0, %v7878_v42  ;;  %v2754_v27 = vmul.f32 %v2746_v13, %v6164_v62  ;;  %v2768_v32 = vpack.c.bf16 %v2746_v13, %v2745_v40  ;;  %3245 = vmatpush.bf16.msrb.mxu2 %v4208_v8  ;;  %v4020_v19 = vsel %vm6804_vm15, 1.0, %v7878_v42 }
 0x348   : > { %v4021_v2 = vsel %vm6815_vm6, 1.0, %v7878_v42  ;;  %v2551_v18 = vmul.f32 %v2543_v25, %v7960_v51  ;;  %2022 = vst [vmem:[#allocation3 + $0x10] sm:$0xff] %v2018_v38  ;;  %v2051_v26 = vpop.permute.xlu1 %2050  ;;  %v2479_v11 = vpop.permute.xlu0 %2478  ;;  %v4005_v31 = vsel %vm1964_vm0, 1.0, %v7878_v42  ;;  %v4006_v62 = vsel %vm1965_vm2, 1.0, %v7878_v42  ;;  %v4275_v13 = vld [vmem:[#allocation3 + $0x1c8] sm:$0xf] }
 0x349   : > { %vm1968_vm5 = vcmp.gt.s32.totalorder %v7894_v59, 0  ;;  %v2760_v40 = vpack.c.bf16 %v2754_v27, %v2753_v29  ;;  %2772 = vst [vmem:[#allocation3 + $0x228] sm:$0xff] %v2768_v32  ;;  %vm7961_vm13 = vcmp.lt.s32.totalorder %v4515_v1, 32  ;;  %vm7963_vm1 = vcmp.lt.s32.totalorder %v4515_v1, 97  ;;  %v2261_v28 = vpop.permute.xlu2 %2260 }
 0x34a   : > { %v2070_v34 = vsel %vm7961_vm13, %v2051_v26, %v6588_v48  ;;  %vm7962_vm3 = vmmov %vm7961_vm13  ;;  %v2498_v17 = vsel %vm7963_vm1, %v2479_v11, %v6590_v57  ;;  %3220 = vmatpush.bf16.msra.mxu0 %v4172_v49  ;;  %v2282_v6 = vsel %vm7582_vm7, %v6566_v53, %v2261_v28  ;;  %vm7965_vm12 = vcmp.gt.s32.totalorder %v7912_v35, 0 }
 0x34b   : > { %v2072_v56 = vsel %vm7962_vm3, %v6389_v44, %v2051_v26  ;;  %v2102_v20 = vmul.f32 %v3990_v45, %v2070_v34  ;;  %vm7964_vm0 = vmmov %vm7963_vm1  ;;  %v6855_v15 = vmul.f32 %v4021_v2, %v2498_v17  ;;  %2764 = vst [vmem:[#allocation3 + $0x208] sm:$0xff] %v2760_v40  ;;  %v2280_v44 = vsel %vm7582_vm7, %v2261_v28, %v6658_v41  ;;  %v4405_v45 = vld [vmem:[#allocation3 + $0x1e4] sm:$0xf0]  ;;  %v7969_v26 = vld [vmem:[#allocation50_spill] sm:$0xff] }
 0x34c   : > { %v2101_v16 = vmul.f32 %v3989_v33, %v2072_v56  ;;  %v2500_v37 = vsel %vm7964_vm0, %v6410_v22, %v2479_v11  ;;  %3246 = vmatpush.bf16.msrb.mxu2 %v4176_v4  ;;  %vm1976_vm15 = vmand %vm7965_vm12, %vm1968_vm5  ;;  %v2311_v53 = vmul.f32 %v4005_v31, %v2282_v6  ;;  %v2312_v4 = vmul.f32 %v4006_v62, %v2280_v44  ;;  %v7970_v11 = vld [vmem:[#allocation27_spill] sm:$0xff]  ;;  %v7971_v31 = vld [vmem:[#allocation54_spill] sm:$0xff] }
 0x34d   : > { %v2544_v10 = vmul.f32 %v4020_v19, %v2500_v37  ;;  %v2110_v49 = vmul.f32 %v2102_v20, %v6736_v54  ;;  %v6871_v29 = vmul.f32 %v6855_v15, %v6107_v39  ;;  %v4276_v32 = vor.u32 %v4405_v45, %v4275_v13  ;;  %vm7972_vm1 = vmmov %vm7965_vm12  ;;  %v7973_v62 = vld [vmem:[#allocation26_spill] sm:$0xff]  ;;  %v7974_v40 = vld [vmem:[#allocation56_spill] sm:$0xff] }
 0x34e   : > { %v2109_v22 = vmul.f32 %v2101_v16, %v6130_v5  ;;  %v2123_v8 = vpack.c.bf16 %v2102_v20, %v2101_v16  ;;  %vm7966_vm6 = vcmp.lt.s32.totalorder %v7906_v46, 31  ;;  %v3977_v54 = vsel %vm1976_vm15, 1.0, %v7878_v42  ;;  %v7976_v17 = vld [vmem:[#allocation8_spill] sm:$0xff]  ;;  %v4401_v20 = vld [vmem:[#allocation3 + $0x1cc] sm:$0xf] }
 0x34f   : > { %v2552_v38 = vmul.f32 %v2544_v10, %v6067_v24  ;;  %v2566_v33 = vpack.c.bf16 %v2544_v10, %v2543_v25  ;;  %v4012_v5 = vsel %vm7966_vm6, 1.0, %v7878_v42  ;;  %v2319_v39 = vmul.f32 %v2311_v53, %v6751_v50  ;;  %v7967_v25 = vld [vmem:[#allocation65_spill] sm:$0xff]  ;;  %3269 = vmatpush.bf16.msrb.mxu1 %v4276_v32  ;;  %v7978_v10 = vld [vmem:[#allocation59_spill] sm:$0xff] }
 0x350   : > { %v2115_v27 = vpack.c.bf16 %v2110_v49, %v2109_v22  ;;  %2127 = vst [vmem:[#allocation3 + $0x70] sm:$0xff] %v2123_v8  ;;  %v2320_v2 = vmul.f32 %v2312_v4, %v6742_v21  ;;  %v2333_v24 = vpack.c.bf16 %v2312_v4, %v2311_v53  ;;  %vm7968_vm13 = vcmp.lt.s32.totalorder %v4515_v1, 31  ;;  %v6896_v21 = vpop.permute.xlu1 %2381  ;;  %v6898_v50 = vpop.permute.xlu0 %1941  ;;  %v7977_v37 = vld [vmem:[#allocation29_spill] sm:$0xff]  ;;  %v7979_v22 = vld [vmem:[#allocation40_spill] sm:$0xff] }
 0x351   : > { %v2558_v19 = vpack.c.bf16 %v2552_v38, %v2551_v18  ;;  %2570 = vst [vmem:[#allocation3 + $0x1a8] sm:$0xff] %v2566_v33  ;;  %v6884_v51 = vsel %vm7968_vm13, %v7967_v25, %v7891_v60  ;;  %v2402_v46 = vsel %vm2395_vm8, %v7938_v61, %v7969_v26  ;;  %v6894_v18 = vsel %vm7962_vm3, %v7971_v31, %v7970_v11  ;;  %v6917_v16 = vpop.permute.xlu2 %2272  ;;  %v4413_v8 = vld [vmem:[#allocation3 + $0x224] sm:$0xf0]  ;;  %v4277_v4 = vld [vmem:[#allocation3 + $0x1e8] sm:$0xf0]  ;;  %v7984_v11 = vld [vmem:[#allocation19_spill] sm:$0xff] }
 0x352   : > { %2119 = vst [vmem:[#allocation3 + $0x50] sm:$0xff] %v2115_v27  ;;  %v4001_v60 = vsel %vm7972_vm1, 1.0, %v7878_v42  ;;  %vm7975_vm0 = vcmp.lt.s32.totalorder %v4515_v1, 96  ;;  %v2325_v34 = vpack.c.bf16 %v2320_v2, %v2319_v39  ;;  %v2403_v56 = vsel %vm2395_vm8, %v6408_v52, %v6896_v21  ;;  %v4307_v49 = vld [vmem:[#allocation3 + $0x208] sm:$0xf] }
 0x353   : > { %v6907_v61 = vsel %vm7975_vm0, %v7974_v40, %v7973_v62  ;;  %2562 = vst [vmem:[#allocation3 + $0x188] sm:$0xff] %v2558_v19  ;;  %v1959_v28 = vsel %vm1943_vm4, %v6898_v50, %v7976_v17  ;;  %v2289_v44 = vsel %vm7582_vm7, %v7978_v10, %v7977_v37  ;;  %v2431_v6 = vmul.f32 %v4012_v5, %v2403_v56  ;;  %v7981_v45 = vld [vmem:[#allocation57_spill] sm:$0xff]  ;;  %v7982_v19 = vld [vmem:[#allocation15_spill] sm:$0xff]  ;;  %v7990_v17 = vld [vmem:[#allocation58_spill] sm:$0xff] }
 0x354   : > { %2337 = vst [vmem:[#allocation3 + $0xf0] sm:$0xff] %v2333_v24  ;;  %v2000_v13 = vmul.f32 %v3977_v54, %v1959_v28  ;;  %v2290_v52 = vsel %vm7582_vm7, %v6917_v16, %v7979_v22  ;;  %vm7980_vm12 = vcmp.lt.s32.totalorder %v7912_v35, 31  ;;  %v2438_v38 = vmul.f32 %v6819_v58, %v6683_v30  ;;  %v7983_v24 = vld [vmem:[#allocation16_spill] sm:$0xff]  ;;  %v7991_v37 = vld [vmem:[#allocation66_spill] sm:$0xff] }
 0x355   : > { %vm2186_vm15 = vmand %vm7980_vm12, %vm1968_vm5  ;;  %2329 = vst [vmem:[#allocation3 + $0xd0] sm:$0xff] %v2325_v34  ;;  %v2307_v33 = vmul.f32 %v4001_v60, %v2290_v52  ;;  %v4308_v53 = vor.u32 %v4413_v8, %v4307_v49  ;;  %vm2516_vm6 = vcmp.lt.s32.totalorder %v7981_v45, 31  ;;  %v2439_v27 = vmul.f32 %v2431_v6, %v2402_v46  ;;  %v7985_v60 = vld [vmem:[#allocation13_spill] sm:$0xff]  ;;  %v7988_v46 = vld [vmem:[#allocation31_spill] sm:$0xff] }
 0x356   : > { %v2453_v32 = vpack.c.bf16 %v2431_v6, %v6819_v58  ;;  %v2008_v5 = vmul.f32 %v2000_v13, %v6705_v0  ;;  %v4280_v54 = vor.u32 %v4401_v20, %v4277_v4  ;;  %v2024_v39 = vpack.c.bf16 %v7982_v19, %v2000_v13  ;;  %v7986_v58 = vld [vmem:[#allocation63_spill] sm:$0xff] }
 0x357   : > { %v2315_v2 = vmul.f32 %v2307_v33, %v2289_v44  ;;  %3289 = vmatpush.bf16.msrb.mxu3 %v4308_v53  ;;  %v3993_v35 = vsel %vm2186_vm15, 1.0, %v7878_v42  ;;  %vm1966_vm13 = vcmp.gt.s32.totalorder %v7983_v24, 0  ;;  %v2445_v30 = vpack.c.bf16 %v2439_v27, %v2438_v38  ;;  %v7989_v34 = vld [vmem:[#allocation75_spill] sm:$0xff] }
 0x358   : > { %2457 = vst [vmem:[#allocation3 + $0x168] sm:$0xff] %v2453_v32  ;;  %v2016_v31 = vpack.c.bf16 %v7984_v11, %v2008_v5  ;;  %vm1967_vm3 = vcmp.gt.s32.totalorder %v7985_v60, 0  ;;  %vm1975_vm1 = vcmp.gt.s32.totalorder %v7981_v45, 0  ;;  %vm7987_vm0 = vcmp.lt.s32.totalorder %v4515_v1, 32  ;;  %v4397_v28 = vld [vmem:[#allocation3 + $0x1a4] sm:$0xf0]  ;;  %v6970_v52 = vpop.permute.xlu1 %2603 }
 0x359   : > { %v6946_v0 = vsel %vm7987_vm0, %v7946_v7, %v7986_v58  ;;  %2028 = vst [vmem:[#allocation3 + $0x20] sm:$0xff] %v2024_v39  ;;  %v2323_v62 = vpack.c.bf16 %v7988_v46, %v2315_v2  ;;  %v2331_v56 = vpack.c.bf16 %v7989_v34, %v2307_v33  ;;  %vm7585_vm12 = vcmp.gt.s32.totalorder %v7990_v17, 0  ;;  %v4245_v20 = vld [vmem:[#allocation3 + $0x1a8] sm:$0xf0]  ;;  %v7993_v6 = vld [vmem:[#allocation47_spill] sm:$0xff]  ;;  %v2059_v53 = vpop.permute.xlu2 %2058 }
 0x35a   : > { %vm7992_vm15 = vcmp.lt.s32.totalorder %v4515_v1, 96  ;;  %v4029_v13 = vsel %vm7584_vm14, 1.0, %v7878_v42  ;;  %2449 = vst [vmem:[#allocation3 + $0x148] sm:$0xff] %v2445_v30  ;;  %v4243_v49 = vld [vmem:[#allocation3 + $0x188] sm:$0xf]  ;;  %vm8000_vm11 = vcmp.lt.s32.totalorder %v4515_v1, 31  ;;  %vm6993_vm14 = vmand %vm1967_vm3, %vm1975_vm1 }
 0x35b   : > { %3295 = vmatpush.bf16.msra.mxu3 %v4280_v54  ;;  %v6955_v44 = vsel %vm7992_vm15, %v7991_v37, %v7974_v40  ;;  %vm7994_vm0 = vmmov %vm7992_vm15  ;;  %v6972_v40 = vpop.permute.xlu0 %2159  ;;  %v4393_v8 = vld [vmem:[#allocation3 + $0x18c] sm:$0xf]  ;;  %2020 = vst [vmem:[#allocation3] sm:$0xff] %v2016_v31  ;;  %v4244_v4 = vor.u32 %v4397_v28, %v4243_v49  ;;  %v4032_v54 = vsel %vm2516_vm6, 1.0, %v7878_v42  ;;  %v3991_v39 = vsel %vm7585_vm12, 1.0, %v7878_v42  ;;  %v8003_v31 = vld [vmem:[#allocation10_spill] sm:$0xff] }
 0x35c   : > { %v6961_v7 = vsel %vm7994_vm0, %v7993_v6, %v7991_v37  ;;  %vm7995_vm7 = vmmov %vm7994_vm0  ;;  %vm7998_vm0 = vcmask 130048   ;;  %v4248_v27 = vor.u32 %v4393_v8, %v4245_v20  ;;  %2327 = vst [vmem:[#allocation3 + $0xc0] sm:$0xff] %v2323_v62  ;;  %v3984_v46 = vsel %vm6993_vm14, 1.0, %v7878_v42  ;;  %v7022_v62 = vld [vmem:[#allocation3 + $0x108] sm:$0xf]  ;;  %v8008_v8 = vld [vmem:[#allocation51_spill] sm:$0xff] }
 0x35d   : > { %v2611_v22 = vsel %vm7995_vm7, %v6671_v23, %v6774_v3  ;;  %vm6978_vm15 = vmand %vm1966_vm13, %vm7585_vm12  ;;  %4331 = vmatmul.msk.bf16.vlgmr.msrb.gmra.mxu3 %vm7998_vm0, %v6656_v12  ;;  %vm2182_vm7 = vcmp.lt.s32.totalorder %v7930_v36, 31  ;;  %v7999_v23 = vld [vmem:[#allocation9_spill] sm:$0xff]  ;;  %2335 = vst [vmem:[#allocation3 + $0xe0] sm:$0xff] %v2331_v56  ;;  %3270 = vmatpush.bf16.msrb.mxu1 %v4244_v4  ;;  %vm2515_vm0 = vcmp.lt.s32.totalorder %v7990_v17, 31  ;;  %vm8006_vm12 = vcmp.lt.s32.totalorder %v4515_v1, 32 }
 0x35e   : > { %v2177_v33 = vsel %vm8000_vm11, %v6972_v40, %v7999_v23  ;;  %v4013_v5 = vsel %vm2182_vm7, 1.0, %v7878_v42  ;;  %v7006_v2 = vmul.f32 %v4029_v13, %v2611_v22  ;;  %v3983_v30 = vsel %vm6978_vm15, 1.0, %v7878_v42  ;;  %v7024_v34 = vld [vmem:[#allocation3 + $0x10c] sm:$0xf]  ;;  %v4381_v37 = vld [vmem:[#allocation3 + $0x124] sm:$0xf0] }
 0x35f   : > { %v2210_v19 = vmul.f32 %v3993_v35, %v2177_v33  ;;  %3296 = vmatpush.bf16.msra.mxu3 %v4248_v27  ;;  %vm2514_vm11 = vcmp.lt.s32.totalorder %v7935_v47, 31  ;;  %v2401_v35 = vsel %vm2395_vm8, %v6896_v21, %v6609_v14  ;;  %v8004_v56 = vld [vmem:[#allocation73_spill] sm:$0xff]  ;;  %vm8005_vm15 = vcmp.lt.s32.totalorder %v4515_v1, 96 }
 0x360   : > { %v2621_v28 = vsel %vm8005_vm15, %v6970_v52, %v8004_v56  ;;  %v2068_v21 = vsel %vm8006_vm12, %v6588_v48, %v2059_v53  ;;  %v3992_v20 = vsel %vm1975_vm1, 1.0, %v7878_v42  ;;  %v7039_v6 = vld [vmem:[#allocation3 + $0x128] sm:$0xf0]  ;;  %v4030_v49 = vsel %vm2514_vm11, 1.0, %v7878_v42  ;;  %v4389_v59 = vld [vmem:[#allocation3 + $0x164] sm:$0xf0] }
 0x361   : > { %v2218_v11 = vmul.f32 %v2210_v19, %v6884_v51  ;;  %v2234_v58 = vpack.c.bf16 %v8003_v31, %v2210_v19  ;;  %v3985_v51 = vsel %vm1968_vm5, 1.0, %v7878_v42  ;;  %v8007_v13 = vld [vmem:[#allocation5_spill] sm:$0xff]  ;;  %v4031_v48 = vsel %vm2515_vm0, 1.0, %v7878_v42  ;;  %vm8009_vm5 = vmmov %vm8006_vm12 }
 0x362   : > { %vm2183_vm14 = vcmp.lt.s32.totalorder %v7934_v63, 31  ;;  %v7051_v38 = vmul.f32 %v7006_v2, %v8008_v8  ;;  %v7053_v23 = vmul.f32 %v4013_v5, %v2401_v35  ;;  %v4211_v33 = vld [vmem:[#allocation3 + $0x148] sm:$0xf]  ;;  %v4385_v4 = vld [vmem:[#allocation3 + $0x14c] sm:$0xf]  ;;  %v4180_v32 = vor.u32 %v4381_v37, %v7022_v62  ;;  %vm8011_vm12 = vmmov %vm8009_vm5 }
 0x363   : > { %v2226_v22 = vpack.c.bf16 %v8007_v13, %v2218_v11  ;;  %2238 = vst [vmem:[#allocation3 + $0xa0] sm:$0xff] %v2234_v58  ;;  %v4213_v27 = vld [vmem:[#allocation3 + $0x168] sm:$0xf0]  ;;  %v4184_v19 = vor.u32 %v7024_v34, %v7039_v6  ;;  %v7058_v11 = vmul.f32 %v4032_v54, %v2621_v28  ;;  %v7060_v31 = vmul.f32 %v3991_v39, %v2068_v21  ;;  %v1938_v58 = vpop.permute.xlu1 %1937  ;;  %v2063_v56 = vpop.permute.xlu0 %2062  ;;  %v8010_v54 = vld [vmem:[#allocation68_spill] sm:$0xff] }
 0x364   : > { %v4212_v13 = vor.u32 %v4389_v59, %v4211_v33  ;;  %v4216_v8 = vor.u32 %v4385_v4, %v4213_v27  ;;  %v1945_v5 = vsel %vm1943_vm4, %v1938_v58, %v6898_v50  ;;  %v1947_v35 = vsel %vm1943_vm4, %v6574_v9, %v1938_v58  ;;  %v2600_v34 = vpop.permute.xlu2 %2599  ;;  %v4139_v28 = vld [vmem:[#allocation3 + $0xc0] sm:$0xf]  ;;  %v4368_v21 = vld [vmem:[#allocation3 + $0xc4] sm:$0xf]  ;;  %vm8012_vm4 = vmmov %vm8005_vm15 }
 0x365   : > { %2230 = vst [vmem:[#allocation3 + $0x80] sm:$0xff] %v2226_v22  ;;  %v2066_v62 = vsel %vm8009_vm5, %v2059_v53, %v2063_v56  ;;  %v2080_v39 = vsel %vm8011_vm12, %v2063_v56, %v8010_v54  ;;  %v2006_v37 = vmul.f32 %v3983_v30, %v1947_v35  ;;  %v2007_v6 = vmul.f32 %v3984_v46, %v1945_v5  ;;  %v4372_v33 = vld [vmem:[#allocation3 + $0xdc] sm:$0xf0]  ;;  %v4141_v50 = vld [vmem:[#allocation3 + $0xe0] sm:$0xf0]  ;;  %vm8013_vm15 = vmmov %vm8012_vm4 }
 0x366   : > { %v2097_v22 = vmul.f32 %v3985_v51, %v2080_v39  ;;  %v2104_v59 = vmul.f32 %v3992_v20, %v2066_v62  ;;  %3271 = vmatpush.bf16.msrb.mxu1 %v4212_v13  ;;  %v2607_v9 = vsel %vm8012_vm4, %v2600_v34, %v6970_v52  ;;  %v2609_v53 = vsel %vm8013_vm15, %v6774_v3, %v2600_v34  ;;  %v8014_v58 = vld [vmem:[#allocation61_spill] sm:$0xff]  ;;  %v8015_v30 = vld [vmem:[#allocation60_spill] sm:$0xff]  ;;  %v8016_v5 = vld [vmem:[#allocation62_spill] sm:$0xff] }
 0x367   : > { %v4140_v4 = vor.u32 %v4372_v33, %v4139_v28  ;;  %v4144_v27 = vor.u32 %v4368_v21, %v4141_v50  ;;  %3297 = vmatpush.bf16.msra.mxu3 %v4216_v8  ;;  %v2014_v56 = vmul.f32 %v2006_v37, %v8014_v58  ;;  %v2015_v46 = vmul.f32 %v2007_v6, %v8015_v30  ;;  %v8017_v52 = vld [vmem:[#allocation70_spill] sm:$0xff]  ;;  %v4147_v3 = vld [vmem:[#allocation3 + $0xc8] sm:$0xf]  ;;  %v4369_v39 = vld [vmem:[#allocation3 + $0xcc] sm:$0xf] }
 0x368   : > { %v2027_v51 = vpack.c.bf16 %v2007_v6, %v2006_v37  ;;  %v2105_v20 = vmul.f32 %v2097_v22, %v6894_v18  ;;  %v2111_v13 = vmul.f32 %v7060_v31, %v6946_v0  ;;  %v2112_v35 = vmul.f32 %v2104_v59, %v8016_v5  ;;  %v8018_v34 = vld [vmem:[#allocation14_spill] sm:$0xff]  ;;  %vm7114_vm5 = vmand %vm2182_vm7, %vm1972_vm9  ;;  %v4149_v58 = vld [vmem:[#allocation3 + $0xe8] sm:$0xf0] }
 0x369   : > { %v2121_v62 = vpack.c.bf16 %v8017_v52, %v2097_v22  ;;  %v7086_v54 = vmul.f32 %v4030_v49, %v2609_v53  ;;  %3221 = vmatpush.bf16.msra.mxu0 %v4140_v4  ;;  %v2019_v8 = vpack.c.bf16 %v2015_v46, %v2014_v56  ;;  %v7089_v21 = vmul.f32 %v4031_v48, %v2607_v9  ;;  %vm7126_vm9 = vmand %vm2183_vm14, %vm1973_vm10  ;;  %v8024_v5 = vld [vmem:[#allocation67_spill] sm:$0xff]  ;;  %v4361_v52 = vld [vmem:[#allocation3 + $0x8c] sm:$0xf] }
 0x36a   : > { %2031 = vst [vmem:[#allocation3 + $0x38] sm:$0xff] %v2027_v51  ;;  %v2113_v28 = vpack.c.bf16 %v8018_v34, %v2105_v20  ;;  %3247 = vmatpush.bf16.msrb.mxu2 %v4144_v27  ;;  %3272 = vmatpush.bf16.msrb.mxu1 %v4180_v32  ;;  %v4364_v18 = vld [vmem:[#allocation3 + $0x9c] sm:$0xf0]  ;;  %v4109_v37 = vld [vmem:[#allocation3 + $0xa0] sm:$0xf0]  ;;  %v2116_v0 = vpack.c.bf16 %v2112_v35, %v2111_v13  ;;  %v4014_v22 = vsel %vm2183_vm14, 1.0, %v7878_v42  ;;  %vm7144_vm10 = vmand %vm1965_vm2, %vm2514_vm11 }
 0x36b   : > { %v2124_v6 = vpack.c.bf16 %v2104_v59, %v7060_v31  ;;  %2125 = vst [vmem:[#allocation3 + $0x60] sm:$0xff] %v2121_v62  ;;  %v2651_v49 = vmul.f32 %v7086_v54, %v6961_v7  ;;  %3298 = vmatpush.bf16.msra.mxu3 %v4184_v19  ;;  %v2653_v48 = vmul.f32 %v7058_v11, %v6907_v61  ;;  %v7101_v9 = vpop.permute.xlu1 %2389  ;;  %v7103_v31 = vpop.permute.xlu0 %2147  ;;  %v4373_v19 = vld [vmem:[#allocation3 + $0xe4] sm:$0xf0]  ;;  %vm7153_vm12 = vmand %vm1966_vm13, %vm2515_vm0  ;;  %vm8030_vm2 = vcmp.lt.s32.totalorder %v4515_v1, 31 }
 0x36c   : > { %v4107_v33 = vld [vmem:[#allocation3 + $0x80] sm:$0xf]  ;;  %v4360_v50 = vld [vmem:[#allocation3 + $0x84] sm:$0xf]  ;;  %2023 = vst [vmem:[#allocation3 + $0x18] sm:$0xff] %v2019_v8  ;;  %v2652_v32 = vmul.f32 %v7089_v21, %v6955_v44  ;;  %v2399_v4 = vsel %vm2395_vm8, %v6609_v14, %v7101_v9  ;;  %v7118_v44 = vpop.permute.xlu2 %2694  ;;  %v4148_v27 = vor.u32 %v4373_v19, %v4147_v3  ;;  %v4152_v46 = vor.u32 %v4369_v39, %v4149_v58  ;;  %v8023_v20 = vld [vmem:[#allocation41_spill] sm:$0xff] }
 0x36d   : > { %v4108_v59 = vor.u32 %v4364_v18, %v4107_v33  ;;  %v4112_v7 = vor.u32 %v4360_v50, %v4109_v37  ;;  %2117 = vst [vmem:[#allocation3 + $0x40] sm:$0xff] %v2113_v28  ;;  %v2656_v53 = vpack.c.bf16 %v2651_v49, %v7051_v38  ;;  %v2664_v38 = vpack.c.bf16 %v7086_v54, %v7006_v2  ;;  %v4115_v14 = vld [vmem:[#allocation3 + $0x88] sm:$0xf]  ;;  %vm7169_vm4 = vmand %vm1967_vm3, %vm2516_vm6 }
 0x36e   : > { %2120 = vst [vmem:[#allocation3 + $0x58] sm:$0xff] %v2116_v0  ;;  %v2657_v56 = vpack.c.bf16 %v2653_v48, %v2652_v32  ;;  %v2433_v30 = vmul.f32 %v4014_v22, %v2399_v4  ;;  %v2400_v13 = vsel %vm2395_vm8, %v7969_v26, %v8023_v20  ;;  %v2398_v2 = vsel %vm2395_vm8, %v8023_v20, %v8024_v5  ;;  %v4365_v3 = vld [vmem:[#allocation3 + $0xa4] sm:$0xf0]  ;;  %v4117_v0 = vld [vmem:[#allocation3 + $0xa8] sm:$0xf0]  ;;  %vm8033_vm15 = vmmov %vm8030_vm2 }
 0x36f   : > { %2128 = vst [vmem:[#allocation3 + $0x78] sm:$0xff] %v2124_v6  ;;  %v2665_v35 = vpack.c.bf16 %v7058_v11, %v7089_v21  ;;  %3222 = vmatpush.bf16.msra.mxu0 %v4108_v59  ;;  %3248 = vmatpush.bf16.msrb.mxu2 %v4112_v7  ;;  %v2440_v26 = vmul.f32 %v7053_v23, %v2400_v13  ;;  %v4083_v39 = vld [vmem:[#allocation3 + $0x48] sm:$0xf]  ;;  %v3997_v28 = vsel %vm7114_vm5, 1.0, %v7878_v42  ;;  %v3998_v33 = vsel %vm7126_vm9, 1.0, %v7878_v42 }
 0x370   : > { %2660 = vst [vmem:[#allocation3 + $0x1d0] sm:$0xff] %v2656_v53  ;;  %v2441_v54 = vmul.f32 %v2433_v30, %v2398_v2  ;;  %3273 = vmatpush.bf16.msrb.mxu1 %v4148_v27  ;;  %3299 = vmatpush.bf16.msra.mxu3 %v4152_v46  ;;  %v4357_v8 = vld [vmem:[#allocation3 + $0x64] sm:$0xf0]  ;;  %v2454_v34 = vpack.c.bf16 %v2433_v30, %v7053_v23  ;;  %v4353_v23 = vld [vmem:[#allocation3 + $0x4c] sm:$0xf]  ;;  %v4022_v50 = vsel %vm7144_vm10, 1.0, %v7878_v42 }
 0x371   : > { %2661 = vst [vmem:[#allocation3 + $0x1d8] sm:$0xff] %v2657_v56  ;;  %v8029_v21 = vld [vmem:[#allocation21_spill] sm:$0xff]  ;;  %v4116_v37 = vor.u32 %v4365_v3, %v4115_v14  ;;  %v4120_v22 = vor.u32 %v4361_v52, %v4117_v0  ;;  %v4023_v32 = vsel %vm7153_vm12, 1.0, %v7878_v42  ;;  %v4084_v19 = vor.u32 %v4357_v8, %v4083_v39  ;;  %v8038_v3 = vld [vmem:[#allocation64_spill] sm:$0xff] }
 0x372   : > { %v2169_v18 = vsel %vm8030_vm2, %v8029_v21, %v7103_v31  ;;  %2668 = vst [vmem:[#allocation3 + $0x1f0] sm:$0xff] %v2664_v38  ;;  %v2446_v49 = vpack.c.bf16 %v2441_v54, %v2440_v26  ;;  %v4085_v48 = vld [vmem:[#allocation3 + $0x68] sm:$0xf0]  ;;  %v4356_v59 = vld [vmem:[#allocation3 + $0x5c] sm:$0xf0]  ;;  %v4024_v27 = vsel %vm7169_vm4, 1.0, %v7878_v42 }
 0x373   : > { %2669 = vst [vmem:[#allocation3 + $0x1f8] sm:$0xff] %v2665_v35  ;;  %v4077_v7 = vld [vmem:[#allocation3 + $0x60] sm:$0xf0]  ;;  %v7182_v53 = vmul.f32 %v3997_v28, %v2169_v18  ;;  %v7184_v4 = vpop.permute.xlu1 %2151  ;;  %v2487_v61 = vpop.permute.xlu0 %2486  ;;  %v4088_v38 = vor.u32 %v4353_v23, %v4085_v48  ;;  %vm8034_vm5 = vcmp.lt.s32.totalorder %v4515_v1, 97  ;;  %v8036_v52 = vld [vmem:[#allocation69_spill] sm:$0xff]  ;;  %v8041_v18 = vld [vmem:[#allocation7_spill] sm:$0xff] }
 0x374   : > { %2450 = vst [vmem:[#allocation3 + $0x150] sm:$0xff] %v2446_v49  ;;  %3274 = vmatpush.bf16.msrb.mxu1 %v4116_v37  ;;  %3300 = vmatpush.bf16.msra.mxu3 %v4120_v22  ;;  %v4075_v58 = vld [vmem:[#allocation3 + $0x40] sm:$0xf]  ;;  %v4352_v56 = vld [vmem:[#allocation3 + $0x44] sm:$0xf]  ;;  %v2167_v30 = vsel %vm8033_vm15, %v7103_v31, %v7184_v4  ;;  %v2496_v46 = vsel %vm8034_vm5, %v6590_v57, %v2487_v61  ;;  %v2491_v14 = vpop.permute.xlu2 %2490  ;;  %vm8035_vm9 = vmmov %vm8034_vm5  ;;  %v2849_v37 = vunpack.c.l.b16 %v8041_v18  ;;  %vm8042_vm2 = vcmp.lt.s32.totalorder %v7931_v43, 31 }
 0x375   : > { %2458 = vst [vmem:[#allocation3 + $0x170] sm:$0xff] %v2454_v34  ;;  %v4076_v51 = vor.u32 %v4356_v59, %v4075_v58  ;;  %v4080_v20 = vor.u32 %v4352_v56, %v4077_v7  ;;  %v2215_v13 = vmul.f32 %v3998_v33, %v2167_v30  ;;  %v2546_v2 = vmul.f32 %v4022_v50, %v2496_v46  ;;  %vm8037_vm10 = vmmov %vm8034_vm5  ;;  %v4043_v26 = vld [vmem:[#allocation3] sm:$0xf]  ;;  %v4344_v54 = vld [vmem:[#allocation3 + $0x4] sm:$0xf] }
 0x376   : > { %v2494_v35 = vsel %vm8035_vm9, %v2487_v61, %v2491_v14  ;;  %v2508_v62 = vsel %vm8037_vm10, %v2491_v14, %v8036_v52  ;;  %v8039_v31 = vld [vmem:[#allocation48_spill] sm:$0xff]  ;;  %vm8040_vm12 = vmmov %vm8034_vm5  ;;  %v4051_v8 = vld [vmem:[#allocation3 + $0x8] sm:$0xf]  ;;  %v7209_v14 = vpack.c.b16 %v2849_v37, %v2849_v37 }
 0x377   : > { %v2495_v11 = vsel %vm8040_vm12, %v8039_v31, %v8038_v3  ;;  %v2547_v57 = vmul.f32 %v4023_v32, %v2494_v35  ;;  %v2548_v39 = vmul.f32 %v4024_v27, %v2508_v62  ;;  %3223 = vmatpush.bf16.msra.mxu0 %v4076_v51  ;;  %3249 = vmatpush.bf16.msrb.mxu2 %v4080_v20  ;;  %v4349_v34 = vld [vmem:[#allocation3 + $0x24] sm:$0xf0]  ;;  %v4345_v28 = vld [vmem:[#allocation3 + $0xc] sm:$0xf]  ;;  %v4348_v49 = vld [vmem:[#allocation3 + $0x1c] sm:$0xf0] }
 0x378   : > { %v4409_v21 = vld [vmem:[#allocation3 + $0x20c] sm:$0xf]  ;;  %v2236_v0 = vpack.c.bf16 %v2215_v13, %v7182_v53  ;;  %v2554_v6 = vmul.f32 %v2546_v2, %v2495_v11  ;;  %v2567_v23 = vpack.c.bf16 %v2546_v2, %v6855_v15  ;;  %3275 = vmatpush.bf16.msrb.mxu1 %v4084_v19  ;;  %3301 = vmatpush.bf16.msra.mxu3 %v4088_v38  ;;  %v4045_v22 = vld [vmem:[#allocation3 + $0x20] sm:$0xf0]  ;;  %v4283_v33 = vld [vmem:[#allocation3 + $0x1d0] sm:$0xf] }
 0x379   : > { %v2568_v50 = vpack.c.bf16 %v2548_v39, %v2547_v57  ;;  %v4044_v48 = vor.u32 %v4348_v49, %v4043_v26  ;;  %v4048_v32 = vor.u32 %v4344_v54, %v4045_v22  ;;  %v4053_v59 = vld [vmem:[#allocation3 + $0x28] sm:$0xf0]  ;;  %v4291_v61 = vld [vmem:[#allocation3 + $0x1d8] sm:$0xf]  ;;  %v4052_v58 = vor.u32 %v4349_v34, %v4051_v8  ;;  %v4406_v30 = vld [vmem:[#allocation3 + $0x1ec] sm:$0xf0] }
 0x37a   : > { %v4309_v7 = vld [vmem:[#allocation3 + $0x228] sm:$0xf0]  ;;  %2240 = vst [vmem:[#allocation3 + $0xb0] sm:$0xff] %v2236_v0  ;;  %v2559_v27 = vpack.c.bf16 %v2554_v6, %v6871_v29  ;;  %v4056_v56 = vor.u32 %v4345_v28, %v4053_v59  ;;  %v4402_v46 = vld [vmem:[#allocation3 + $0x1d4] sm:$0xf]  ;;  %v4284_v19 = vor.u32 %v4406_v30, %v4283_v33  ;;  %vm7217_vm4 = vmand %vm2182_vm7, %vm8042_vm2  ;;  %vm8051_vm12 = vcmp.lt.s32.totalorder %v4515_v1, 95 }
 0x37b   : > { %2571 = vst [vmem:[#allocation3 + $0x1b0] sm:$0xff] %v2567_v23  ;;  %3224 = vmatpush.bf16.msra.mxu0 %v4044_v48  ;;  %3250 = vmatpush.bf16.msrb.mxu2 %v4048_v32  ;;  %v4312_v15 = vor.u32 %v4409_v21, %v4309_v7  ;;  %v4407_v38 = vld [vmem:[#allocation3 + $0x1f4] sm:$0xf0]  ;;  %v7211_v20 = vpop.permute.xlu1 %2149  ;;  %v2146_v2 = vpop.permute.xlu0 %2145  ;;  %v4285_v29 = vld [vmem:[#allocation3 + $0x1f0] sm:$0xf0]  ;;  %v8045_v62 = vld [vmem:[#allocation45_spill] sm:$0xff] }
 0x37c   : > { %2563 = vst [vmem:[#allocation3 + $0x190] sm:$0xff] %v2559_v27  ;;  %3276 = vmatpush.bf16.msrb.mxu1 %v4052_v58  ;;  %3302 = vmatpush.bf16.msra.mxu3 %v4056_v56  ;;  %v4292_v51 = vor.u32 %v4407_v38, %v4291_v61  ;;  %v2166_v52 = vsel %vm8033_vm15, %v2146_v2, %v7211_v20  ;;  %vm8046_vm5 = vmmov %vm8033_vm15  ;;  %v2489_v54 = vpop.permute.xlu2 %2488  ;;  %v8048_v8 = vld [vmem:[#allocation34_spill] sm:$0xff]  ;;  %v4007_v0 = vsel %vm1966_vm13, 1.0, %v7878_v42  ;;  %v4008_v22 = vsel %vm1967_vm3, 1.0, %v7878_v42  ;;  %v8052_v48 = vld [vmem:[#allocation49_spill] sm:$0xff] }
 0x37d   : > { %2572 = vst [vmem:[#allocation3 + $0x1b8] sm:$0xff] %v2568_v50  ;;  %v2168_v26 = vsel %vm8046_vm5, %v8045_v62, %v2146_v2  ;;  %v4288_v31 = vor.u32 %v4402_v46, %v4285_v29  ;;  %v2223_v43 = vmul.f32 %v2215_v13, %v2166_v52  ;;  %vm8047_vm7 = vmmov %vm8035_vm9  ;;  %v8050_v13 = vld [vmem:[#allocation25_spill] sm:$0xff]  ;;  %v8053_v32 = vld [vmem:[#allocation55_spill] sm:$0xff]  ;;  %vm2185_vm2 = vcmp.lt.s32.totalorder %v7985_v60, 31 }
 0x37e   : > { %v2222_v36 = vmul.f32 %v7182_v53, %v2168_v26  ;;  %v2493_v11 = vsel %vm8047_vm7, %v8038_v3, %v2489_v54  ;;  %vm8049_vm9 = vmmov %vm8047_vm7  ;;  %3225 = vmatmul.bf16.vlgmr.msra.gmra.mxu0 %v7209_v14  ;;  %v4037_v53 = vsel %vm7217_vm4, 1.0, %v7878_v42  ;;  %v2708_v3 = vsel %vm8051_vm12, %v6790_v55, %v8050_v13  ;;  %3251 = vmatmul.bf16.vlgmr.msrb.gmra.mxu2 %v7209_v14  ;;  %v4219_v27 = vld [vmem:[#allocation3 + $0x150] sm:$0xf]  ;;  %v4386_v58 = vld [vmem:[#allocation3 + $0x154] sm:$0xf] }
 0x37f   : > { %3315 = vmatpush.bf16.msrb.mxu0 %v4312_v15  ;;  %3321 = vmatpush.bf16.msra.mxu2 %v4284_v19  ;;  %v2507_v34 = vsel %vm8049_vm9, %v2489_v54, %v8048_v8  ;;  %v2555_v28 = vmul.f32 %v2547_v57, %v2493_v11  ;;  %vm2724_vm10 = vmand %vm2183_vm14, %vm2514_vm11  ;;  %v2747_v37 = vmul.f32 %v4037_v53, %v2708_v3  ;;  %vm2184_vm11 = vcmp.lt.s32.totalorder %v7983_v24, 31  ;;  %v4390_v2 = vld [vmem:[#allocation3 + $0x16c] sm:$0xf0]  ;;  %v4221_v29 = vld [vmem:[#allocation3 + $0x170] sm:$0xf0] }
 0x380   : > { %3373 = vmatpush.bf16.msrb.mxu3 %v4292_v51  ;;  %v2556_v21 = vmul.f32 %v2548_v39, %v2507_v34  ;;  %3277 = vmatmul.bf16.vlgmr.msrb.gmra.mxu1 %v7209_v14  ;;  %v2228_v57 = vpack.c.bf16 %v2223_v43, %v2222_v36  ;;  %v4038_v63 = vsel %vm2724_vm10, 1.0, %v7878_v42  ;;  %vm8054_vm14 = vmmov %vm8051_vm12  ;;  %vm8056_vm3 = vcmp.lt.s32.totalorder %v4515_v1, 1  ;;  %v4382_v26 = vld [vmem:[#allocation3 + $0x12c] sm:$0xf0]  ;;  %v4189_v54 = vld [vmem:[#allocation3 + $0x130] sm:$0xf0] }
 0x381   : > { %3303 = vmatmul.bf16.vlgmr.msra.gmra.mxu3 %v7209_v14  ;;  %v2707_v59 = vsel %vm8054_vm14, %v8053_v32, %v8052_v48  ;;  %vm8055_vm13 = vmmov %vm8051_vm12  ;;  %vm8059_vm5 = vcmp.gt.s32.totalorder %v7990_v17, 0  ;;  %v4220_v52 = vor.u32 %v4390_v2, %v4219_v27  ;;  %v4224_v62 = vor.u32 %v4386_v58, %v4221_v29  ;;  %v4187_v36 = vld [vmem:[#allocation3 + $0x110] sm:$0xf]  ;;  %v4378_v43 = vld [vmem:[#allocation3 + $0x114] sm:$0xf] }
 0x382   : > { %v2560_v39 = vpack.c.bf16 %v2556_v21, %v2555_v28  ;;  %2232 = vst [vmem:[#allocation3 + $0x90] sm:$0xff] %v2228_v57  ;;  %v4398_v47 = vld [vmem:[#allocation3 + $0x1ac] sm:$0xf0]  ;;  %v4253_v18 = vld [vmem:[#allocation3 + $0x1b0] sm:$0xf0]  ;;  %vm8057_vm4 = vmmov %vm8056_vm3  ;;  %v2755_v15 = vmul.f32 %v2747_v37, %v2707_v59  ;;  %v4016_v3 = vsel %vm2185_vm2, 1.0, %v7878_v42 }
 0x383   : > { %3347 = vmatpush.bf16.msra.mxu0 %v4288_v31  ;;  %v4251_v6 = vld [vmem:[#allocation3 + $0x190] sm:$0xf]  ;;  %v4394_v55 = vld [vmem:[#allocation3 + $0x194] sm:$0xf]  ;;  %v7253_v23 = vpop.permute.xlu1 %2391  ;;  %v7255_v49 = vpop.permute.xlu0 %2696  ;;  %vm8058_vm15 = vmmov %vm8051_vm12 }
 0x384   : > { %2564 = vst [vmem:[#allocation3 + $0x198] sm:$0xff] %v2560_v39  ;;  %v4252_v33 = vor.u32 %v4398_v47, %v4251_v6  ;;  %v4256_v50 = vor.u32 %v4394_v55, %v4253_v18  ;;  %v2706_v7 = vsel %vm8055_vm13, %v8050_v13, %v7255_v49  ;;  %v2269_v61 = vpop.permute.xlu2 %2268  ;;  %v2705_v19 = vsel %vm8058_vm15, %v8052_v48, %v7118_v44  ;;  %vm7288_vm7 = vmand %vm2184_vm11, %vm8059_vm5  ;;  %v4155_v11 = vld [vmem:[#allocation3 + $0xd0] sm:$0xf]  ;;  %v4399_v21 = vld [vmem:[#allocation3 + $0x1b4] sm:$0xf0] }
 0x385   : > { %v2748_v56 = vmul.f32 %v4038_v63, %v2706_v7  ;;  %v2276_v30 = vsel %vm8056_vm3, %v2269_v61, %v6917_v16  ;;  %v2278_v46 = vsel %vm8057_vm4, %v6658_v41, %v2269_v61  ;;  %vm2193_vm9 = vmand %vm2185_vm2, %vm1975_vm1  ;;  %v3999_v34 = vsel %vm7288_vm7, 1.0, %v7878_v42  ;;  %v4374_v39 = vld [vmem:[#allocation3 + $0xec] sm:$0xf0]  ;;  %v8065_v27 = vld [vmem:[#allocation72_spill] sm:$0xff] }
 0x386   : > { %3322 = vmatpush.bf16.msra.mxu2 %v4252_v33  ;;  %v7280_v38 = vmul.f32 %v4007_v0, %v2278_v46  ;;  %v7282_v51 = vmul.f32 %v4008_v22, %v2276_v30  ;;  %v4000_v53 = vsel %vm2193_vm9, 1.0, %v7878_v42  ;;  %v4015_v13 = vsel %vm2184_vm11, 1.0, %v7878_v42  ;;  %v8064_v33 = vld [vmem:[#allocation22_spill] sm:$0xff]  ;;  %vm7348_vm4 = vmand %vm2184_vm11, %vm2515_vm0 }
 0x387   : > { %3348 = vmatpush.bf16.msra.mxu0 %v4256_v50  ;;  %v2756_v16 = vmul.f32 %v2748_v56, %v2705_v19  ;;  %v2769_v35 = vpack.c.bf16 %v2748_v56, %v2747_v37  ;;  %v4188_v18 = vor.u32 %v4382_v26, %v4187_v36  ;;  %v4192_v37 = vor.u32 %v4378_v43, %v4189_v54  ;;  %v4157_v2 = vld [vmem:[#allocation3 + $0xf0] sm:$0xf0]  ;;  %vm2726_vm15 = vmand %vm2185_vm2, %vm2516_vm6  ;;  %v4059_v17 = vld [vmem:[#allocation3 + $0x10] sm:$0xf] }
 0x388   : > { %v2334_v31 = vpack.c.bf16 %v7282_v51, %v7280_v38  ;;  %v4156_v0 = vor.u32 %v4374_v39, %v4155_v11  ;;  %vm8062_vm1 = vcmp.lt.s32.totalorder %v4515_v1, 31  ;;  %vm8068_vm13 = vcmask 130048   ;;  %v4125_v11 = vld [vmem:[#allocation3 + $0xb0] sm:$0xf0] }
 0x389   : > { %v2761_v8 = vpack.c.bf16 %v2756_v16, %v2755_v15  ;;  %2773 = vst [vmem:[#allocation3 + $0x230] sm:$0xff] %v2769_v35  ;;  %vm8063_vm10 = vmmov %vm8062_vm1  ;;  %v4123_v41 = vld [vmem:[#allocation3 + $0x90] sm:$0xf]  ;;  %v4362_v35 = vld [vmem:[#allocation3 + $0x94] sm:$0xf]  ;;  %v4040_v45 = vsel %vm2726_vm15, 1.0, %v7878_v42 }
 0x38a   : > { %3323 = vmatpush.bf16.msra.mxu2 %v4220_v52  ;;  %2338 = vst [vmem:[#allocation3 + $0xf8] sm:$0xff] %v2334_v31  ;;  %vm8066_vm12 = vmmov %vm8062_vm1  ;;  %v4366_v16 = vld [vmem:[#allocation3 + $0xac] sm:$0xf0]  ;;  %v4346_v24 = vld [vmem:[#allocation3 + $0x14] sm:$0xf]  ;;  %vm8074_vm6 = vcmp.lt.s32.totalorder %v4515_v1, 95 }
 0x38b   : > { %3349 = vmatpush.bf16.msra.mxu0 %v4224_v62  ;;  %v4259_v28 = vld [vmem:[#allocation3 + $0x198] sm:$0xf]  ;;  %2765 = vst [vmem:[#allocation3 + $0x210] sm:$0xff] %v2761_v8  ;;  %v2156_v63 = vpop.permute.xlu1 %2155  ;;  %v2394_v47 = vpop.permute.xlu0 %2393  ;;  %vm8067_vm14 = vmmov %vm8062_vm1  ;;  %v4124_v36 = vor.u32 %v4366_v16, %v4123_v41 }
 0x38c   : > { %v4260_v57 = vor.u32 %v4399_v21, %v4259_v28  ;;  %v2163_v6 = vsel %vm8062_vm1, %v2156_v63, %v6972_v40  ;;  %v2165_v55 = vsel %vm8063_vm10, %v7184_v4, %v2156_v63  ;;  %v2397_v22 = vsel %vm2395_vm8, %v7101_v9, %v2394_v47  ;;  %v2154_v48 = vpop.permute.xlu2 %2153  ;;  %v4370_v40 = vld [vmem:[#allocation3 + $0xd4] sm:$0xf]  ;;  %v8070_v28 = vld [vmem:[#allocation44_spill] sm:$0xff]  ;;  %vm8073_vm5 = vmmov %vm8068_vm13 }
 0x38d   : > { %v2411_v50 = vsel %vm2395_vm8, %v2394_v47, %v8064_v33  ;;  %v2216_v32 = vmul.f32 %v3999_v34, %v2165_v55  ;;  %v2217_v59 = vmul.f32 %v4000_v53, %v2163_v6  ;;  %v2434_v7 = vmul.f32 %v4015_v13, %v2397_v22  ;;  %v4091_v13 = vld [vmem:[#allocation3 + $0x50] sm:$0xf]  ;;  %v4354_v63 = vld [vmem:[#allocation3 + $0x54] sm:$0xf]  ;;  %v4395_v22 = vld [vmem:[#allocation3 + $0x19c] sm:$0xf] }
 0x38e   : > { %3374 = vmatpush.bf16.msrb.mxu3 %v4260_v57  ;;  %v2435_v61 = vmul.f32 %v4016_v3, %v2411_v50  ;;  %3324 = vmatpush.bf16.msra.mxu2 %v4188_v18  ;;  %v2396_v4 = vsel %vm2395_vm8, %v8024_v5, %v7253_v23  ;;  %v2410_v9 = vsel %vm2395_vm8, %v7253_v23, %v8065_v27  ;;  %vm8069_vm8 = vmmov %vm8056_vm3  ;;  %v4403_v3 = vld [vmem:[#allocation3 + $0x1dc] sm:$0xf]  ;;  %v4358_v47 = vld [vmem:[#allocation3 + $0x6c] sm:$0xf0]  ;;  %v4039_v33 = vsel %vm7348_vm4, 1.0, %v7878_v42 }
 0x38f   : > { %v2162_v58 = vsel %vm8066_vm12, %v2154_v48, %v7967_v25  ;;  %v2164_v56 = vsel %vm8067_vm14, %v7211_v20, %v2154_v48  ;;  %3350 = vmatpush.bf16.msra.mxu0 %v4192_v37  ;;  %v2237_v30 = vpack.c.bf16 %v2217_v59, %v2216_v32  ;;  %v2442_v46 = vmul.f32 %v2434_v7, %v2396_v4  ;;  %v4293_v18 = vld [vmem:[#allocation3 + $0x1f8] sm:$0xf0]  ;;  %v4350_v55 = vld [vmem:[#allocation3 + $0x2c] sm:$0xf0]  ;;  %vm8076_vm0 = vmmov %vm8074_vm6 }
 0x390   : > { %v2443_v15 = vmul.f32 %v2435_v61, %v2410_v9  ;;  %v2455_v19 = vpack.c.bf16 %v2435_v61, %v2434_v7  ;;  %4332 = vmatmul.msk.bf16.vlgmr.msrb.gmra.mxu0 %vm8068_vm13, %v6656_v12  ;;  %v2224_v5 = vmul.f32 %v2216_v32, %v2164_v56  ;;  %v2225_v29 = vmul.f32 %v2217_v59, %v2162_v58  ;;  %v4414_v52 = vld [vmem:[#allocation3 + $0x22c] sm:$0xf0]  ;;  %v4317_v20 = vld [vmem:[#allocation3 + $0x230] sm:$0xf0]  ;;  %v8075_v27 = vld [vmem:[#allocation71_spill] sm:$0xff] }
 0x391   : > { %v4160_v23 = vor.u32 %v4370_v40, %v4157_v2  ;;  %2241 = vst [vmem:[#allocation3 + $0xb8] sm:$0xff] %v2237_v30  ;;  %v4128_v53 = vor.u32 %v4362_v35, %v4125_v11  ;;  %v4296_v6 = vor.u32 %v4403_v3, %v4293_v18  ;;  %v4060_v59 = vor.u32 %v4350_v55, %v4059_v17  ;;  %v4061_v7 = vld [vmem:[#allocation3 + $0x30] sm:$0xf0]  ;;  %v4261_v40 = vld [vmem:[#allocation3 + $0x1b8] sm:$0xf0]  ;;  %vm8077_vm11 = vmmov %vm8076_vm0 }
 0x392   : > { %v2447_v25 = vpack.c.bf16 %v2443_v15, %v2442_v46  ;;  %3325 = vmatpush.bf16.msra.mxu2 %v4156_v0  ;;  %2459 = vst [vmem:[#allocation3 + $0x178] sm:$0xff] %v2455_v19  ;;  %v2229_v62 = vpack.c.bf16 %v2225_v29, %v2224_v5  ;;  %v4315_v26 = vld [vmem:[#allocation3 + $0x210] sm:$0xf]  ;;  %v4410_v54 = vld [vmem:[#allocation3 + $0x214] sm:$0xf]  ;;  %v4092_v0 = vor.u32 %v4358_v47, %v4091_v13  ;;  %v8078_v5 = vld [vmem:[#allocation33_spill] sm:$0xff] }
 0x393   : > { %3351 = vmatpush.bf16.msra.mxu0 %v4160_v23  ;;  %v2267_v31 = vpop.permute.xlu0 %2266  ;;  %v4316_v43 = vor.u32 %v4414_v52, %v4315_v26  ;;  %v4320_v8 = vor.u32 %v4410_v54, %v4317_v20  ;;  %v2699_v48 = vpop.permute.xlu1 %2698  ;;  %v4064_v58 = vor.u32 %v4346_v24, %v4061_v7  ;;  %v4264_v56 = vor.u32 %v4395_v22, %v4261_v40  ;;  %v4195_v30 = vld [vmem:[#allocation3 + $0x118] sm:$0xf]  ;;  %vm8079_vm2 = vmmov %vm8076_vm0  ;;  %v4101_v17 = vld [vmem:[#allocation3 + $0x78] sm:$0xf0] }
 0x394   : > { %2451 = vst [vmem:[#allocation3 + $0x158] sm:$0xff] %v2447_v25  ;;  %v2275_v34 = vsel %vm8069_vm8, %v2267_v31, %v7978_v10  ;;  %v2277_v21 = vsel %vm8056_vm3, %v8070_v28, %v2267_v31  ;;  %v4383_v42 = vld [vmem:[#allocation3 + $0x134] sm:$0xf0]  ;;  %v2703_v2 = vsel %vm8077_vm11, %v7118_v44, %v2699_v48  ;;  %v4197_v44 = vld [vmem:[#allocation3 + $0x138] sm:$0xf0]  ;;  %vm8080_vm7 = vmmov %vm8073_vm5  ;;  %vm3549_vm14 = vcmask 1043456  }
 0x395   : > { %2233 = vst [vmem:[#allocation3 + $0x98] sm:$0xff] %v2229_v62  ;;  %v2321_v57 = vmul.f32 %v7280_v38, %v2277_v21  ;;  %v2322_v39 = vmul.f32 %v7282_v51, %v2275_v34  ;;  %3341 = vmatpush.bf16.msra.mxu1 %v4316_v43  ;;  %v4093_v38 = vld [vmem:[#allocation3 + $0x70] sm:$0xf0]  ;;  %v4196_v16 = vor.u32 %v4383_v42, %v4195_v30  ;;  %v4379_v62 = vld [vmem:[#allocation3 + $0x11c] sm:$0xf]  ;;  %vm8081_vm9 = vmmov %vm8073_vm5 }
 0x396   : > { %3326 = vmatpush.bf16.msra.mxu2 %v4124_v36  ;;  %v4096_v51 = vor.u32 %v4354_v63, %v4093_v38  ;;  %v4375_v1 = vld [vmem:[#allocation3 + $0xf4] sm:$0xf0]  ;;  %v4200_v54 = vor.u32 %v4379_v62, %v4197_v44  ;;  %v4355_v38 = vld [vmem:[#allocation3 + $0x5c] sm:$0xf]  ;;  %vm8082_vm1 = vmmov %vm8073_vm5 }
 0x397   : > { %3352 = vmatpush.bf16.msra.mxu0 %v4128_v53  ;;  %v2326_v37 = vpack.c.bf16 %v2322_v39, %v2321_v57  ;;  %v4099_v28 = vld [vmem:[#allocation3 + $0x58] sm:$0xf]  ;;  %v4104_v55 = vor.u32 %v4355_v38, %v4101_v17  ;;  %v4347_v24 = vld [vmem:[#allocation3 + $0x1c] sm:$0xf] }
 0x398   : > { %4333 = vmatmul.msk.bf16.vlgmr.msra.gmra.mxu1 %vm8073_vm5, %v6656_v12  ;;  %v4367_v43 = vld [vmem:[#allocation3 + $0xb4] sm:$0xf0]  ;;  %v4133_v18 = vld [vmem:[#allocation3 + $0xb8] sm:$0xf0] }
 0x399   : > { %3367 = vmatpush.bf16.msrb.mxu1 %v4320_v8  ;;  %2330 = vst [vmem:[#allocation3 + $0xd8] sm:$0xff] %v2326_v37  ;;  %v4391_v50 = vld [vmem:[#allocation3 + $0x174] sm:$0xf0]  ;;  %v4229_v35 = vld [vmem:[#allocation3 + $0x178] sm:$0xf0] }
 0x39a   : > { %3327 = vmatpush.bf16.msra.mxu2 %v4092_v0  ;;  %v4165_v8 = vld [vmem:[#allocation3 + $0xf8] sm:$0xf0]  ;;  %v4359_v21 = vld [vmem:[#allocation3 + $0x74] sm:$0xf0] }
 0x39b   : > { %3353 = vmatpush.bf16.msra.mxu0 %v4096_v51  ;;  %v4227_v60 = vld [vmem:[#allocation3 + $0x158] sm:$0xf]  ;;  %v2701_v32 = vpop.permute.xlu0 %2700  ;;  %v4387_v19 = vld [vmem:[#allocation3 + $0x15c] sm:$0xf]  ;;  %v4100_v63 = vor.u32 %v4359_v21, %v4099_v28 }
 0x39c   : > { %v4228_v61 = vor.u32 %v4391_v50, %v4227_v60  ;;  %v2704_v4 = vsel %vm8074_vm6, %v7255_v49, %v2701_v32  ;;  %v2718_v9 = vsel %vm8076_vm0, %v2701_v32, %v8075_v27  ;;  %v2717_v49 = vsel %vm8079_vm2, %v2699_v48, %v8078_v5  ;;  %v4131_v31 = vld [vmem:[#allocation3 + $0x98] sm:$0xf]  ;;  %v4363_v13 = vld [vmem:[#allocation3 + $0x9c] sm:$0xf] }
 0x39d   : > { %3399 = vmatpush.bf16.msra.mxu1 %v4296_v6  ;;  %v2749_v46 = vmul.f32 %v4039_v33, %v2704_v4  ;;  %v2750_v15 = vmul.f32 %v4040_v45, %v2718_v9  ;;  %v4232_v25 = vor.u32 %v4387_v19, %v4229_v35  ;;  %v4132_v11 = vor.u32 %v4367_v43, %v4131_v31  ;;  %v4067_v0 = vld [vmem:[#allocation3 + $0x18] sm:$0xf]  ;;  %v4069_v22 = vld [vmem:[#allocation3 + $0x38] sm:$0xf0] }
 0x39e   : > { %3328 = vmatpush.bf16.msra.mxu2 %v4060_v59  ;;  %3375 = vmatpush.bf16.msrb.mxu3 %v4228_v61  ;;  %v4136_v37 = vor.u32 %v4363_v13, %v4133_v18  ;;  %v4351_v6 = vld [vmem:[#allocation3 + $0x34] sm:$0xf0]  ;;  %v4072_v33 = vor.u32 %v4347_v24, %v4069_v22 }
 0x39f   : > { %3354 = vmatpush.bf16.msra.mxu0 %v4064_v58  ;;  %v2757_v29 = vmul.f32 %v2749_v46, %v2703_v2  ;;  %v2758_v23 = vmul.f32 %v2750_v15, %v2717_v49  ;;  %v2770_v41 = vpack.c.bf16 %v2750_v15, %v2749_v46  ;;  %v4068_v51 = vor.u32 %v4351_v6, %v4067_v0 }
 0x3a0   : > { %v4163_v52 = vld [vmem:[#allocation3 + $0xd8] sm:$0xf]  ;;  %v4371_v36 = vld [vmem:[#allocation3 + $0xdc] sm:$0xf] }
 0x3a1   : > { %3400 = vmatpush.bf16.msra.mxu1 %v4264_v56  ;;  %3329 = vmatmul.bf16.vlgmr.msra.gmra.mxu2 %v7209_v14  ;;  %v2762_v20 = vpack.c.bf16 %v2758_v23, %v2757_v29  ;;  %2774 = vst [vmem:[#allocation3 + $0x238] sm:$0xff] %v2770_v41  ;;  %v4164_v26 = vor.u32 %v4375_v1, %v4163_v52 }
 0x3a2   : > { %3376 = vmatpush.bf16.msrb.mxu3 %v4196_v16  ;;  %3355 = vmatmul.bf16.vlgmr.msra.gmra.mxu0 %v7209_v14  ;;  %v4168_v34 = vor.u32 %v4371_v36, %v4165_v8 }
 0x3a3   : > { %2766 = vst [vmem:[#allocation3 + $0x218] sm:$0xff] %v2762_v20 }
 0x3a5   : > { %3401 = vmatpush.bf16.msra.mxu1 %v4232_v25 }
 0x3a6   : > { %3377 = vmatpush.bf16.msrb.mxu3 %v4164_v26 }
 0x3a8   : > { %4334 = vmatmul.msk.bf16.vlgmr.msrb.gmra.mxu1 %vm8080_vm7, %v6656_v12  ;;  %v4415_v53 = vld [vmem:[#allocation3 + $0x234] sm:$0xf0]  ;;  %v4325_v39 = vld [vmem:[#allocation3 + $0x238] sm:$0xf0] }
 0x3a9   : > { %3402 = vmatpush.bf16.msra.mxu1 %v4200_v54 }
 0x3aa   : > { %3378 = vmatpush.bf16.msrb.mxu3 %v4132_v11  ;;  %v4323_v3 = vld [vmem:[#allocation3 + $0x218] sm:$0xf]  ;;  %v4411_v57 = vld [vmem:[#allocation3 + $0x21c] sm:$0xf] }
 0x3ab   : > { %v4324_v47 = vor.u32 %v4415_v53, %v4323_v3  ;;  %v4328_v10 = vor.u32 %v4411_v57, %v4325_v39 }
 0x3ad   : > { %3403 = vmatpush.bf16.msra.mxu1 %v4168_v34  ;;  %3393 = vmatpush.bf16.msrb.mxu2 %v4324_v47 }
 0x3ae   : > { %3379 = vmatpush.bf16.msrb.mxu3 %v4100_v63  ;;  %3419 = vmatpush.bf16.msrb.mxu0 %v4328_v10 }
 0x3b1   : > { %3404 = vmatpush.bf16.msra.mxu1 %v4136_v37  ;;  %4335 = vmatmul.msk.bf16.vlgmr.msrb.gmra.mxu2 %vm8081_vm9, %v6656_v12 }
 0x3b2   : > { %3380 = vmatpush.bf16.msrb.mxu3 %v4068_v51  ;;  %4336 = vmatmul.msk.bf16.vlgmr.msrb.gmra.mxu0 %vm8082_vm1, %v6656_v12 }
 0x3b3   : > { %v3239_v45 = vpop.f32.mrf.mxu1 }
 0x3b5   : > { %3405 = vmatpush.bf16.msra.mxu1 %v4104_v55  ;;  %3381 = vmatmul.bf16.vlgmr.msrb.gmra.mxu3 %v7209_v14 }
 0x3b9   : > { %3406 = vmatpush.bf16.msra.mxu1 %v4072_v33  ;;  %v3265_v60 = vpop.f32.mrf.mxu3 }
 0x3bb   : > { %v3241_v50 = vpop.f32.mrf.mxu1 }
 0x3bc   : > { %3407 = vmatmul.bf16.vlgmr.msra.gmra.mxu1 %v7209_v14 }
 0x3c1   : > { %v3267_v48 = vpop.f32.mrf.mxu3 }
 0x3e0   : > { %v3291_v32 = vpop.f32.mrf.mxu3 }
 0x3e8   : > { %v3293_v59 = vpop.f32.mrf.mxu3 }
 0x3fb   : > { %v3226_v7 = vpop.f32.mrf.mxu0 }
 0x3fc   : > { %v3240_v40 = vadd.f32 %v3239_v45, %v3226_v7 }
 0x3fd   : > { %v3278_v61 = vpop.f32.mrf.mxu1 }
 0x3fe   : > { %v7384_v4 = vadd.f32 %v3291_v32, %v3278_v61  ;;  %v3425_v12 = vadd.f32 1e-08, %v3240_v40  ;;  %v3465_v27 = vmax.f32 %v3240_v40, 0.0 }
 0x400   : > { %v3427_v9 = vadd.f32 1e-08, %v7384_v4  ;;  %v3467_v58 = vmax.f32 %v7384_v4, 0.0  ;;  %4436 = vrcp.f32 %v3425_v12  ;;  %v3473_v56 = vmin.f32 %v3465_v27, 1.0 }
 0x401   : > { %v3252_v30 = vpop.f32.mrf.mxu2 }
 0x402   : > { %v3475_v14 = vmin.f32 %v3467_v58, 1.0  ;;  %4438 = vrcp.f32 %v3427_v9  ;;  %3570 = vst [vmem:[#allocation1] sm:$0xff] %v3473_v56  ;;  %v3266_v42 = vadd.f32 %v3265_v60, %v3252_v30 }
 0x403   : > { %v3228_v46 = vpop.f32.mrf.mxu0 }
 0x404   : > { %3572 = vst [vmem:[#allocation1 + $0x12] sm:$0xff] %v3475_v14  ;;  %v3304_v19 = vpop.f32.mrf.mxu3  ;;  %v3426_v2 = vadd.f32 1e-08, %v3266_v42  ;;  %v3466_v5 = vmax.f32 %v3266_v42, 0.0 }
 0x405   : > { %v3280_v15 = vpop.f32.mrf.mxu1 }
 0x406   : > { %v4437_v49 = vpop.eup %4436  ;;  %4440 = vrcp.f32 %v3426_v2  ;;  %v3474_v41 = vmin.f32 %v3466_v5, 1.0 }
 0x407   : > { %v3441_v23 = vmul.f32 %v4437_v49, %v3425_v12 }
 0x408   : > { %v4439_v29 = vpop.eup %4438  ;;  %3571 = vst [vmem:[#allocation1 + $0x9] sm:$0xff] %v3474_v41 }
 0x409   : > { %v3449_v16 = vsub.f32 2.0, %v3441_v23  ;;  %v3443_v35 = vmul.f32 %v4439_v29, %v3427_v9  ;;  %v3254_v25 = vpop.f32.mrf.mxu2 }
 0x40b   : > { %v3457_v52 = vmul.f32 %v4437_v49, %v3449_v16  ;;  %v3451_v26 = vsub.f32 2.0, %v3443_v35 }
 0x40c   : > { %v3306_v62 = vpop.f32.mrf.mxu3  ;;  %v4441_v44 = vpop.eup %4440 }
 0x40d   : > { %v3317_v20 = vpop.f32.mrf.mxu0  ;;  %v3481_v1 = vmul.f32 9.0, %v3457_v52  ;;  %v3442_v31 = vmul.f32 %v4441_v44, %v3426_v2  ;;  %v3459_v34 = vmul.f32 %v4439_v29, %v3451_v26 }
 0x40e   : > { %v3318_v54 = vadd.f32 %v3317_v20, %v3304_v19 }
 0x40f   : > { %v3489_v11 = vmul.f32 %v3481_v1, %v3473_v56  ;;  %v3450_v8 = vsub.f32 2.0, %v3442_v31  ;;  %v3483_v57 = vmul.f32 9.0, %v3459_v34 }
 0x410   : > { %v3428_v36 = vadd.f32 1e-08, %v3318_v54  ;;  %v3468_v43 = vmax.f32 %v3318_v54, 0.0 }
 0x411   : > { %v3458_v21 = vmul.f32 %v4441_v44, %v3450_v8  ;;  %v3497_v53 = vperm.slane %v3489_v11, 4  ;;  %v3491_v0 = vmul.f32 %v3483_v57, %v3475_v14 }
 0x412   : > { %4442 = vrcp.f32 %v3428_v36  ;;  %v3476_v28 = vmin.f32 %v3468_v43, 1.0 }
 0x413   : > { %v3482_v13 = vmul.f32 9.0, %v3458_v21  ;;  %v3505_v18 = vmul.f32 %v3497_v53, %v3240_v40  ;;  %v3499_v24 = vperm.slane %v3491_v0, 4 }
 0x414   : > { %3573 = vst [vmem:[#allocation1 + $0x1b] sm:$0xff] %v3476_v28 }
 0x415   : > { %v3319_v3 = vpop.f32.mrf.mxu0  ;;  %v3343_v39 = vpop.f32.mrf.mxu1  ;;  %v3490_v63 = vmul.f32 %v3482_v13, %v3474_v41  ;;  %v3521_v51 = vmul.f32 0.2, %v3505_v18  ;;  %vm3513_vm12 = vcmp.ge.f32.partialorder %v3505_v18, 0.0  ;;  %v3507_v7 = vmul.f32 %v3499_v24, %v7384_v4 }
 0x417   : > { %v3498_v10 = vperm.slane %v3490_v63, 4  ;;  %v3529_v48 = vsel %vm3513_vm12, %v3505_v18, %v3521_v51  ;;  %v3523_v9 = vmul.f32 0.2, %v3507_v7  ;;  %vm3515_vm8 = vcmp.ge.f32.partialorder %v3507_v7, 0.0 }
 0x418   : > { %v4443_v47 = vpop.eup %4442 }
 0x419   : > { %v3444_v37 = vmul.f32 %v4443_v47, %v3428_v36  ;;  %v3506_v38 = vmul.f32 %v3498_v10, %v3266_v42  ;;  %v3531_v49 = vsel %vm3515_vm8, %v3507_v7, %v3523_v9 }
 0x41b   : > { %v3452_v6 = vsub.f32 2.0, %v3444_v37  ;;  %vm3514_vm10 = vcmp.ge.f32.partialorder %v3506_v38, 0.0  ;;  %v3522_v17 = vmul.f32 0.2, %v3506_v38 }
 0x41d   : > { %v3460_v55 = vmul.f32 %v4443_v47, %v3452_v6  ;;  %v3345_v22 = vpop.f32.mrf.mxu1  ;;  %v3530_v33 = vsel %vm3514_vm10, %v3506_v38, %v3522_v17 }
 0x41e   : > { %v3545_v50 = vrot.slane %v3530_v33, 4 }
 0x41f   : > { %v3484_v45 = vmul.f32 9.0, %v3460_v55  ;;  %v3356_v60 = vpop.f32.mrf.mxu0 }
 0x420   : > { %v3550_v59 = vsel %vm3549_vm14, %v3529_v48, %v3545_v50 }
 0x421   : > { %v3492_v32 = vmul.f32 %v3484_v45, %v3476_v28  ;;  %3558 = vst [vmem:[%s7392_s28] sm:$0xff] %v3550_v59 }
 0x423   : > { %v3500_v61 = vperm.slane %v3492_v32, 4 }
 0x424   : > { %v3330_v40 = vpop.f32.mrf.mxu2 }
 0x425   : > { %v3508_v12 = vmul.f32 %v3500_v61, %v3318_v54  ;;  %v3344_v27 = vadd.f32 %v3343_v39, %v3330_v40  ;;  %v3369_v58 = vpop.f32.mrf.mxu1 }
 0x426   : > { %v3370_v46 = vadd.f32 %v3369_v58, %v3356_v60 }
 0x427   : > { %vm3516_vm13 = vcmp.ge.f32.partialorder %v3508_v12, 0.0  ;;  %v3524_v56 = vmul.f32 0.2, %v3508_v12  ;;  %v3429_v14 = vadd.f32 1e-08, %v3344_v27  ;;  %v3469_v30 = vmax.f32 %v3344_v27, 0.0  ;;  %v3358_v42 = vpop.f32.mrf.mxu0 }
 0x428   : > { %v3430_v4 = vadd.f32 1e-08, %v3370_v46  ;;  %v3470_v5 = vmax.f32 %v3370_v46, 0.0 }
 0x429   : > { %v3532_v15 = vsel %vm3516_vm13, %v3508_v12, %v3524_v56  ;;  %4444 = vrcp.f32 %v3429_v14  ;;  %v3477_v19 = vmin.f32 %v3469_v30, 1.0 }
 0x42a   : > { %v3546_v2 = vrot.slane %v3532_v15, 4  ;;  %4446 = vrcp.f32 %v3430_v4  ;;  %v3478_v23 = vmin.f32 %v3470_v5, 1.0 }
 0x42b   : > { %3574 = vst [vmem:[#allocation1 + $0x24] sm:$0xff] %v3477_v19 }
 0x42c   : > { %v3551_v29 = vsel %vm3549_vm14, %v3531_v49, %v3546_v2  ;;  %v3332_v41 = vpop.f32.mrf.mxu2  ;;  %3575 = vst [vmem:[#allocation1 + $0x2d] sm:$0xff] %v3478_v23 }
 0x42d   : > { %3559 = vst [vmem:[%s7392_s28 + $0x8] sm:$0xff] %v3551_v29  ;;  %v3371_v16 = vpop.f32.mrf.mxu1 }
 0x42f   : > { %v4445_v35 = vpop.eup %4444  ;;  %v3421_v25 = vpop.f32.mrf.mxu0 }
 0x430   : > { %v3445_v52 = vmul.f32 %v4445_v35, %v3429_v14  ;;  %v4447_v20 = vpop.eup %4446 }
 0x431   : > { %v3446_v44 = vmul.f32 %v4447_v20, %v3430_v4 }
 0x432   : > { %v3453_v62 = vsub.f32 2.0, %v3445_v52 }
 0x433   : > { %v3454_v54 = vsub.f32 2.0, %v3446_v44 }
 0x434   : > { %v3461_v1 = vmul.f32 %v4445_v35, %v3453_v62  ;;  %v3395_v26 = vpop.f32.mrf.mxu2 }
 0x435   : > { %v3462_v36 = vmul.f32 %v4447_v20, %v3454_v54 }
 0x436   : > { %v3485_v31 = vmul.f32 9.0, %v3461_v1 }
 0x437   : > { %v3423_v11 = vpop.f32.mrf.mxu0  ;;  %v3486_v21 = vmul.f32 9.0, %v3462_v36 }
 0x438   : > { %v3493_v8 = vmul.f32 %v3485_v31, %v3477_v19  ;;  %v3382_v34 = vpop.f32.mrf.mxu3 }
 0x439   : > { %v3408_v43 = vpop.f32.mrf.mxu1  ;;  %v3396_v53 = vadd.f32 %v3395_v26, %v3382_v34  ;;  %v3494_v39 = vmul.f32 %v3486_v21, %v3478_v23 }
 0x43a   : > { %v3422_v28 = vadd.f32 %v3421_v25, %v3408_v43  ;;  %v3501_v13 = vperm.slane %v3493_v8, 4 }
 0x43b   : > { %v3431_v63 = vadd.f32 1e-08, %v3396_v53  ;;  %v3471_v47 = vmax.f32 %v3396_v53, 0.0  ;;  %v3502_v0 = vperm.slane %v3494_v39, 4 }
 0x43c   : > { %v3432_v3 = vadd.f32 1e-08, %v3422_v28  ;;  %v3472_v57 = vmax.f32 %v3422_v28, 0.0  ;;  %v3397_v10 = vpop.f32.mrf.mxu2  ;;  %v3509_v37 = vmul.f32 %v3501_v13, %v3344_v27 }
 0x43d   : > { %v3479_v38 = vmin.f32 %v3471_v47, 1.0  ;;  %v3510_v6 = vmul.f32 %v3502_v0, %v3370_v46 }
 0x43e   : > { %4448 = vrcp.f32 %v3432_v3  ;;  %v3480_v18 = vmin.f32 %v3472_v57, 1.0  ;;  %v3525_v55 = vmul.f32 0.2, %v3509_v37  ;;  %vm3517_vm4 = vcmp.ge.f32.partialorder %v3509_v37, 0.0 }
 0x43f   : > { %4450 = vrcp.f32 %v3431_v63  ;;  %3576 = vst [vmem:[#allocation1 + $0x36] sm:$0xff] %v3479_v38  ;;  %vm3518_vm3 = vcmp.ge.f32.partialorder %v3510_v6, 0.0  ;;  %v3526_v24 = vmul.f32 0.2, %v3510_v6 }
 0x440   : > { %3577 = vst [vmem:[#allocation1 + $0x3f] sm:$0xff] %v3480_v18  ;;  %v3384_v17 = vpop.f32.mrf.mxu3  ;;  %v3533_v32 = vsel %vm3517_vm4, %v3509_v37, %v3525_v55 }
 0x441   : > { %v3410_v51 = vpop.f32.mrf.mxu1  ;;  %v3534_v45 = vsel %vm3518_vm3, %v3510_v6, %v3526_v24 }
 0x442   : > { %v3547_v50 = vrot.slane %v3534_v45, 4 }
 0x444   : > { %v4449_v22 = vpop.eup %4448  ;;  %v3552_v7 = vsel %vm3549_vm14, %v3533_v32, %v3547_v50 }
 0x445   : > { %v4451_v33 = vpop.eup %4450  ;;  %v3448_v60 = vmul.f32 %v4449_v22, %v3432_v3  ;;  %3560 = vst [vmem:[%s7392_s28 + $0x10] sm:$0xff] %v3552_v7 }
 0x446   : > { %v3447_v48 = vmul.f32 %v4451_v33, %v3431_v63 }
 0x447   : > { %v3456_v59 = vsub.f32 2.0, %v3448_v60  ;;  %v3579_v40 = vld [vmem:[#allocation1 + $0x4] ss:$9 sm:$0xff] }
 0x448   : > { %v3455_v61 = vsub.f32 2.0, %v3447_v48  ;;  %3581 = vst [vmem:[%s322_s7] sm:$0xff] %v3579_v40 }
 0x449   : > { %v3464_v12 = vmul.f32 %v4449_v22, %v3456_v59 }
 0x44a   : > { %v3463_v27 = vmul.f32 %v4451_v33, %v3455_v61 }
 0x44b   : > { %v3488_v9 = vmul.f32 9.0, %v3464_v12 }
 0x44c   : > { %v3487_v58 = vmul.f32 9.0, %v3463_v27 }
 0x44d   : > { %v3496_v56 = vmul.f32 %v3488_v9, %v3480_v18 }
 0x44e   : > { %v3495_v14 = vmul.f32 %v3487_v58, %v3479_v38 }
 0x44f   : > { %v3504_v30 = vperm.slane %v3496_v56, 4 }
 0x450   : > { %v3503_v42 = vperm.slane %v3495_v14, 4 }
 0x451   : > { %v3512_v46 = vmul.f32 %v3504_v30, %v3422_v28 }
 0x452   : > { %v3511_v15 = vmul.f32 %v3503_v42, %v3396_v53 }
 0x453   : > { %vm3520_vm15 = vcmp.ge.f32.partialorder %v3512_v46, 0.0  ;;  %v3528_v19 = vmul.f32 0.2, %v3512_v46 }
 0x454   : > { %vm3519_vm5 = vcmp.ge.f32.partialorder %v3511_v15, 0.0  ;;  %v3527_v2 = vmul.f32 0.2, %v3511_v15 }
 0x455   : > { %v3536_v4 = vsel %vm3520_vm15, %v3512_v46, %v3528_v19 }
 0x456   : > { %v3535_v5 = vsel %vm3519_vm5, %v3511_v15, %v3527_v2  ;;  %v3548_v49 = vrot.slane %v3536_v4, 4 }
 0x458   : > { %v3553_v29 = vsel %vm3549_vm14, %v3535_v5, %v3548_v49 }
 0x459   : > { %3561 = vst [vmem:[%s7392_s28 + $0x18] sm:$0xff] %v3553_v29 }
 0x45a PF: > { %s17_s21 = sadd.s32 1, %s4460_s21  }
 0x45b   : > { %p14_p4 = scmp.ge.s32.totalorder %s17_s21, 4  }
 0x45d   :  { %16 = sbr.rel (!%p14_p4) target bundleno = 1 (0x1), region = 100 }

</bundles_post_ra>
